<compile_context>
chip_gen: v7x
topology: tpu7x:2x2x1
jax: 0.10.0
libtpu: 0.0.40
codegen_flags: <defaults>
</compile_context>

<pallas_src>
import jax
import jax.numpy as jnp
from jax.experimental import pallas as pl
from jax.experimental.pallas import tpu as pltpu

# ----- Experiment constants (from `exp = Experiment(...)`) -----
MODEL_DIM = 128
N_SAMPLES = 2 ** 15
WEIGHT_INIT = 0.1

# ----- Leaf constructor defaults -----
N_ATOMS = 2048
ATOM_SIZE = 512
FACTOR = 1

LRELU_SLOPE = 0.2   # LinearOutputStack uses leaky_relu(x, 0.2) between hidden layers
SEL_CHUNK = 512     # atom-axis chunk for the selection-head epilogue

_VMEM = pl.BlockSpec(memory_space=pltpu.MemorySpace.VMEM)  # whole array resident in VMEM
_SMEM = pl.BlockSpec(memory_space=pltpu.MemorySpace.SMEM)  # small scalars / indices
_ANY = pl.BlockSpec(memory_space=pl.ANY)                   # leave in HBM, manual DMA


def _lrelu(h):
    return jnp.where(h > 0, h, LRELU_SLOPE * h)


# --------------------------------------------------------------------------------------
# Kernel 1: packed to_time|to_amp head + chunked to_selection head + epilogues
#           (sigmoid*factor+times, amp**2, max_norm -> exp -> +gumbel -> hard argmax).
# --------------------------------------------------------------------------------------
def _leaf_heads_kernel(times_ref, x_ref, g_ref,
                       pw1, pb1, pw2, pb2, pw3, pb3,
                       sw1, sb1, sw2, sb2, sw3, sb3,
                       time_ref, amp_ref, idx_ref, s_scratch):
    x = x_ref[...]                                               # (M, 128)
    m = x.shape[0]

    # ---- packed to_time | to_amp heads: 3 matmuls instead of 6 ---------------------
    h = _lrelu(jnp.dot(x, pw1[...], preferred_element_type=jnp.float32) + pb1[...])
    h = _lrelu(jnp.dot(h, pw2[...], preferred_element_type=jnp.float32) + pb2[...])
    out = jnp.dot(h, pw3[...], preferred_element_type=jnp.float32) + pb3[...]
    t_raw = out[:, 0:1]                                          # time head output
    a_raw = out[:, 1:2]                                          # amp head output
    time_ref[...] = (1.0 / (1.0 + jnp.exp(-t_raw))) * FACTOR + times_ref[...]
    amp_ref[...] = a_raw * a_raw

    # ---- to_selection hidden layers -------------------------------------------------
    hs = _lrelu(jnp.dot(x, sw1[...], preferred_element_type=jnp.float32) + sb1[...])
    hs = _lrelu(jnp.dot(hs, sw2[...], preferred_element_type=jnp.float32) + sb2[...])

    n_chunks = N_ATOMS // SEL_CHUNK

    # pass 1: layer-3 in chunks -> VMEM scratch + global max|s| (for max_norm)
    mx = jnp.zeros((m, 1), jnp.float32)
    for c in range(n_chunks):
        lo = c * SEL_CHUNK
        s_c = (jnp.dot(hs, sw3[:, lo:lo + SEL_CHUNK],
                       preferred_element_type=jnp.float32)
               + sb3[:, lo:lo + SEL_CHUNK])
        s_scratch[:, lo:lo + SEL_CHUNK] = s_c
        mx = jnp.maximum(mx, jnp.max(jnp.abs(s_c), axis=-1, keepdims=True))
    inv = 1.0 / (mx + 1e-8)

    # pass 2: running (max, argmax) of exp(max_norm(s)) + gumbel  (forward of
    # F.gumbel_softmax(exp(max_norm(s)), tau=1, hard=True) is argmax(logits + g))
    best = jnp.full((m, 1), -jnp.inf, jnp.float32)
    bidx = jnp.zeros((m, 1), jnp.int32)
    for c in range(n_chunks):
        lo = c * SEL_CHUNK
        y_c = jnp.exp(s_scratch[:, lo:lo + SEL_CHUNK] * inv) + g_ref[:, lo:lo + SEL_CHUNK]
        cmax = jnp.max(y_c, axis=-1, keepdims=True)
        iota = jax.lax.broadcasted_iota(jnp.int32, (m, SEL_CHUNK), 1)
        cidx = jnp.min(jnp.where(y_c >= cmax, iota, jnp.int32(N_ATOMS)),
                       axis=-1, keepdims=True) + lo
        take = cmax > best                                       # strict: first max wins
        bidx = jnp.where(take, cidx, bidx)
        best = jnp.maximum(best, cmax)
    idx_ref[...] = bidx                                          # (M, 1) int32


def _pack_scalar_heads(t, a):
    """Pack to_time & to_amp LinearOutputStacks into one 3-matmul stack (host-side)."""
    z = jnp.zeros((MODEL_DIM, MODEL_DIM), jnp.float32)
    w1 = jnp.concatenate([t["w1"], a["w1"]], axis=1)             # (128, 256)
    b1 = jnp.concatenate([t["b1"], a["b1"]], axis=1)             # (1, 256)
    w2 = jnp.concatenate([jnp.concatenate([t["w2"], z], axis=1),
                          jnp.concatenate([z, a["w2"]], axis=1)], axis=0)  # (256, 256)
    b2 = jnp.concatenate([t["b2"], a["b2"]], axis=1)             # (1, 256)
    w3 = jnp.zeros((2 * MODEL_DIM, MODEL_DIM), jnp.float32)      # lane 0: time, lane 1: amp
    w3 = w3.at[:MODEL_DIM, 0].set(t["w3"][:, 0])
    w3 = w3.at[MODEL_DIM:, 1].set(a["w3"][:, 0])
    b3 = jnp.zeros((1, MODEL_DIM), jnp.float32)
    b3 = b3.at[0, 0].set(t["b3"][0, 0])
    b3 = b3.at[0, 1].set(a["b3"][0, 0])
    return w1, b1, w2, b2, w3, b3


def leaf_heads(params, xf, times_f, gumbel):
    m = xf.shape[0]
    pw1, pb1, pw2, pb2, pw3, pb3 = _pack_scalar_heads(params["to_time"], params["to_amp"])
    s = params["to_selection"]
    args = (times_f, xf, gumbel,
            pw1, pb1, pw2, pb2, pw3, pb3,
            s["w1"], s["b1"], s["w2"], s["b2"], s["w3"], s["b3"])
    return pl.pallas_call(
        _leaf_heads_kernel,
        out_shape=(jax.ShapeDtypeStruct((m, 1), jnp.float32),    # time
                   jax.ShapeDtypeStruct((m, 1), jnp.float32),    # amp**2
                   jax.ShapeDtypeStruct((m, 1), jnp.int32)),     # selected atom index
        in_specs=[_VMEM] * len(args),
        out_specs=(_VMEM, _VMEM, _VMEM),
        scratch_shapes=[pltpu.VMEM((m, N_ATOMS), jnp.float32)],  # selection scores
    )(*args)


# --------------------------------------------------------------------------------------
# Kernel 2: DMA-gather only the M selected atom rows from HBM directly into the output
#           ref, L2-normalize those rows, scale by amp.  Indices live in SMEM.
# --------------------------------------------------------------------------------------
def _gather_atoms_kernel(idx_ref, amp_ref, atoms_ref, o_ref, sem_ref):
    m = o_ref.shape[0]
    copies = [
        pltpu.make_async_copy(
            atoms_ref.at[pl.ds(idx_ref[r, 0], 1)],               # (1, atom_size) HBM row
            o_ref.at[pl.ds(r, 1)],                               # straight into output
            sem_ref.at[r])
        for r in range(m)
    ]
    for cp in copies:
        cp.start()
    for cp in copies:
        cp.wait()
    a = o_ref[...]                                               # (M, atom_size)
    norms = jnp.sqrt(jnp.sum(a * a, axis=-1, keepdims=True))     # L2 norm of only M rows
    o_ref[...] = (a / (norms + 1e-8)) * amp_ref[...]             # normed_atoms * amp


def gather_atoms(idx, amp, atoms):
    m = idx.shape[0]
    return pl.pallas_call(
        _gather_atoms_kernel,
        out_shape=jax.ShapeDtypeStruct((m, ATOM_SIZE), jnp.float32),
        in_specs=[_SMEM, _VMEM, _ANY],
        out_specs=_VMEM,
        scratch_shapes=[pltpu.SemaphoreType.DMA((m,))],
    )(idx, amp, atoms)


# --------------------------------------------------------------------------------------
# fft_shift + event sum, fused in the frequency domain.
# irfft is linear, so summing the shifted spectra over events before the inverse FFT is
# exact and cuts the irfft batch from B*E to B.
# TODO(synk): no Pallas FFT primitive exists; rfft/irfft stay as XLA ops.
# --------------------------------------------------------------------------------------
def fft_shift_sum(a, shift):
    n_samples = a.shape[-1]
    shift_samples = (shift * 0.5) * n_samples                    # (B, E, 1)
    a = jnp.pad(a, ((0, 0), (0, 0), (0, n_samples * 2)))
    spec = jnp.fft.rfft(a, axis=-1, norm="ortho")
    n_coeffs = spec.shape[-1]
    k = (jnp.arange(n_coeffs) * 2j * jnp.pi) / n_coeffs          # (n_coeffs,) complex
    phase = jnp.exp(-k[None, None, :] * shift_samples)           # (B, E, n_coeffs)
    spec = jnp.sum(spec * phase, axis=1, keepdims=True)          # sum events (linearity)
    samples = jnp.fft.irfft(spec, axis=-1, norm="ortho")         # (B, 1, 3*n_samples)
    return samples[..., :n_samples]


# --------------------------------------------------------------------------------------
# Parameters (deterministic synthetic init, same shapes as the PyTorch module)
# --------------------------------------------------------------------------------------
def init_head(key, out_channels):
    k1, k2, k3 = jax.random.split(key, 3)
    return dict(
        w1=jax.random.normal(k1, (MODEL_DIM, MODEL_DIM), jnp.float32) * WEIGHT_INIT,
        b1=jnp.zeros((1, MODEL_DIM), jnp.float32),
        w2=jax.random.normal(k2, (MODEL_DIM, MODEL_DIM), jnp.float32) * WEIGHT_INIT,
        b2=jnp.zeros((1, MODEL_DIM), jnp.float32),
        w3=jax.random.normal(k3, (MODEL_DIM, out_channels), jnp.float32) * WEIGHT_INIT,
        b3=jnp.zeros((1, out_channels), jnp.float32),
    )


def init_leaf_params(key):
    kt, ks, ka, katoms = jax.random.split(key, 4)
    return dict(
        to_time=init_head(kt, 1),
        to_selection=init_head(ks, N_ATOMS),
        to_amp=init_head(ka, 1),
        atoms=jax.random.uniform(katoms, (N_ATOMS, ATOM_SIZE), jnp.float32,
                                 minval=-1.0, maxval=1.0),
    )


# --------------------------------------------------------------------------------------
# Leaf.forward
# --------------------------------------------------------------------------------------
def leaf_forward(params, x, times, key):
    b, e, d = x.shape
    m = b * e
    xf = x.reshape(m, d)
    times_f = times.reshape(m, 1)

    # TODO(synk): pltpu.prng_* has no interpret-mode lowering; Gumbel noise drawn here.
    gumbel = jax.random.gumbel(key, (m, N_ATOMS), jnp.float32)

    # fused heads: time (sigmoid*factor+times), amp**2, hard gumbel-softmax argmax idx
    time_f, amp_f, idx = leaf_heads(params, xf, times_f, gumbel)  # (M,1),(M,1),(M,1)

    # gather + l2-normalize only the M selected atoms, scale by amp
    atoms_sel = gather_atoms(idx, amp_f, params["atoms"])         # (M, atom_size)

    # pad atoms out to n_samples, fractional shift + event sum in frequency domain
    atoms_full = jnp.pad(atoms_sel.reshape(b, e, ATOM_SIZE),
                         ((0, 0), (0, 0), (0, N_SAMPLES - ATOM_SIZE)))
    return fft_shift_sum(atoms_full, time_f.reshape(b, e, 1))     # (B, 1, n_samples)


# --------------------------------------------------------------------------------------
if __name__ == "__main__":
    key = jax.random.PRNGKey(0)
    kp, kx, kt, kg = jax.random.split(key, 4)

    params = init_leaf_params(kp)

    B, E = 2, 8                                                   # batch=2, n_events=8
    x = jax.random.normal(kx, (B, E, MODEL_DIM), jnp.float32)
    times = jax.random.uniform(kt, (B, E, 1), jnp.float32, minval=0.0, maxval=0.25)

    out = jax.jit(leaf_forward)(params, x, times, kg)
    out = jax.block_until_ready(out)
    assert out.shape == (B, 1, N_SAMPLES) and out.dtype == jnp.float32
    assert bool(jnp.all(jnp.isfinite(out)))
    print("KERNEL_OK")
</pallas_src>

<mosaic_0001>
module attributes {stable_mosaic.version = 11 : i64} {
  func.func @_gather_atoms_kernel(%arg0: memref<16x1xi32, #tpu.memory_space<smem>>, %arg1: memref<16x1xf32, #tpu.memory_space<vmem>>, %arg2: memref<2048x512xf32, #tpu.memory_space<any>>, %arg3: memref<16x512xf32, #tpu.memory_space<vmem>>, %arg4: memref<16x!tpu.dma_semaphore, #tpu.memory_space<semaphore_mem>>) attributes {dimension_semantics = [], scalar_prefetch = 0 : i64, scratch_operands = 1 : i64, tpu.core_type = #tpu.core_type<tc>} {
    %c0 = arith.constant 0 : index
    %c0_0 = arith.constant 0 : index
    %0 = memref.load %arg0[%c0, %c0_0] : memref<16x1xi32, #tpu.memory_space<smem>>
    %c1 = arith.constant 1 : index
    %c0_1 = arith.constant 0 : index
    %1 = memref.load %arg0[%c1, %c0_1] : memref<16x1xi32, #tpu.memory_space<smem>>
    %c2 = arith.constant 2 : index
    %c0_2 = arith.constant 0 : index
    %2 = memref.load %arg0[%c2, %c0_2] : memref<16x1xi32, #tpu.memory_space<smem>>
    %c3 = arith.constant 3 : index
    %c0_3 = arith.constant 0 : index
    %3 = memref.load %arg0[%c3, %c0_3] : memref<16x1xi32, #tpu.memory_space<smem>>
    %c4 = arith.constant 4 : index
    %c0_4 = arith.constant 0 : index
    %4 = memref.load %arg0[%c4, %c0_4] : memref<16x1xi32, #tpu.memory_space<smem>>
    %c5 = arith.constant 5 : index
    %c0_5 = arith.constant 0 : index
    %5 = memref.load %arg0[%c5, %c0_5] : memref<16x1xi32, #tpu.memory_space<smem>>
    %c6 = arith.constant 6 : index
    %c0_6 = arith.constant 0 : index
    %6 = memref.load %arg0[%c6, %c0_6] : memref<16x1xi32, #tpu.memory_space<smem>>
    %c7 = arith.constant 7 : index
    %c0_7 = arith.constant 0 : index
    %7 = memref.load %arg0[%c7, %c0_7] : memref<16x1xi32, #tpu.memory_space<smem>>
    %c8 = arith.constant 8 : index
    %c0_8 = arith.constant 0 : index
    %8 = memref.load %arg0[%c8, %c0_8] : memref<16x1xi32, #tpu.memory_space<smem>>
    %c9 = arith.constant 9 : index
    %c0_9 = arith.constant 0 : index
    %9 = memref.load %arg0[%c9, %c0_9] : memref<16x1xi32, #tpu.memory_space<smem>>
    %c10 = arith.constant 10 : index
    %c0_10 = arith.constant 0 : index
    %10 = memref.load %arg0[%c10, %c0_10] : memref<16x1xi32, #tpu.memory_space<smem>>
    %c11 = arith.constant 11 : index
    %c0_11 = arith.constant 0 : index
    %11 = memref.load %arg0[%c11, %c0_11] : memref<16x1xi32, #tpu.memory_space<smem>>
    %c12 = arith.constant 12 : index
    %c0_12 = arith.constant 0 : index
    %12 = memref.load %arg0[%c12, %c0_12] : memref<16x1xi32, #tpu.memory_space<smem>>
    %c13 = arith.constant 13 : index
    %c0_13 = arith.constant 0 : index
    %13 = memref.load %arg0[%c13, %c0_13] : memref<16x1xi32, #tpu.memory_space<smem>>
    %c14 = arith.constant 14 : index
    %c0_14 = arith.constant 0 : index
    %14 = memref.load %arg0[%c14, %c0_14] : memref<16x1xi32, #tpu.memory_space<smem>>
    %c15 = arith.constant 15 : index
    %c0_15 = arith.constant 0 : index
    %15 = memref.load %arg0[%c15, %c0_15] : memref<16x1xi32, #tpu.memory_space<smem>>
    %c0_i32 = arith.constant 0 : i32
    %c0_i32_16 = arith.constant 0 : i32
    %16 = tpu.memref_slice %arg2[%0, %c0_i32_16] : memref<2048x512xf32, #tpu.memory_space<any>> -> memref<1x512xf32, #tpu.memory_space<any>>
    %c0_i32_17 = arith.constant 0 : i32
    %c0_i32_18 = arith.constant 0 : i32
    %17 = tpu.memref_slice %arg3[%c0_i32_17, %c0_i32_18] : memref<16x512xf32, #tpu.memory_space<vmem>> -> memref<1x512xf32, #tpu.memory_space<vmem>>
    %18 = tpu.memref_slice %arg4[%c0_i32] : memref<16x!tpu.dma_semaphore, #tpu.memory_space<semaphore_mem>> -> memref<1x!tpu.dma_semaphore, #tpu.memory_space<semaphore_mem>>
    %19 = tpu.memref_squeeze %18 : memref<1x!tpu.dma_semaphore, #tpu.memory_space<semaphore_mem>> -> memref<!tpu.dma_semaphore, #tpu.memory_space<semaphore_mem>>
    tpu.enqueue_dma source(%16 : memref<1x512xf32, #tpu.memory_space<any>>) target(%17 : memref<1x512xf32, #tpu.memory_space<vmem>>) target_semaphore(%19 : memref<!tpu.dma_semaphore, #tpu.memory_space<semaphore_mem>>)
    %c1_i32 = arith.constant 1 : i32
    %c0_i32_19 = arith.constant 0 : i32
    %20 = tpu.memref_slice %arg2[%1, %c0_i32_19] : memref<2048x512xf32, #tpu.memory_space<any>> -> memref<1x512xf32, #tpu.memory_space<any>>
    %c1_i32_20 = arith.constant 1 : i32
    %c0_i32_21 = arith.constant 0 : i32
    %21 = tpu.memref_slice %arg3[%c1_i32_20, %c0_i32_21] : memref<16x512xf32, #tpu.memory_space<vmem>> -> memref<1x512xf32, #tpu.memory_space<vmem>>
    %22 = tpu.memref_slice %arg4[%c1_i32] : memref<16x!tpu.dma_semaphore, #tpu.memory_space<semaphore_mem>> -> memref<1x!tpu.dma_semaphore, #tpu.memory_space<semaphore_mem>>
    %23 = tpu.memref_squeeze %22 : memref<1x!tpu.dma_semaphore, #tpu.memory_space<semaphore_mem>> -> memref<!tpu.dma_semaphore, #tpu.memory_space<semaphore_mem>>
    tpu.enqueue_dma source(%20 : memref<1x512xf32, #tpu.memory_space<any>>) target(%21 : memref<1x512xf32, #tpu.memory_space<vmem>>) target_semaphore(%23 : memref<!tpu.dma_semaphore, #tpu.memory_space<semaphore_mem>>)
    %c2_i32 = arith.constant 2 : i32
    %c0_i32_22 = arith.constant 0 : i32
    %24 = tpu.memref_slice %arg2[%2, %c0_i32_22] : memref<2048x512xf32, #tpu.memory_space<any>> -> memref<1x512xf32, #tpu.memory_space<any>>
    %c2_i32_23 = arith.constant 2 : i32
    %c0_i32_24 = arith.constant 0 : i32
    %25 = tpu.memref_slice %arg3[%c2_i32_23, %c0_i32_24] : memref<16x512xf32, #tpu.memory_space<vmem>> -> memref<1x512xf32, #tpu.memory_space<vmem>>
    %26 = tpu.memref_slice %arg4[%c2_i32] : memref<16x!tpu.dma_semaphore, #tpu.memory_space<semaphore_mem>> -> memref<1x!tpu.dma_semaphore, #tpu.memory_space<semaphore_mem>>
    %27 = tpu.memref_squeeze %26 : memref<1x!tpu.dma_semaphore, #tpu.memory_space<semaphore_mem>> -> memref<!tpu.dma_semaphore, #tpu.memory_space<semaphore_mem>>
    tpu.enqueue_dma source(%24 : memref<1x512xf32, #tpu.memory_space<any>>) target(%25 : memref<1x512xf32, #tpu.memory_space<vmem>>) target_semaphore(%27 : memref<!tpu.dma_semaphore, #tpu.memory_space<semaphore_mem>>)
    %c3_i32 = arith.constant 3 : i32
    %c0_i32_25 = arith.constant 0 : i32
    %28 = tpu.memref_slice %arg2[%3, %c0_i32_25] : memref<2048x512xf32, #tpu.memory_space<any>> -> memref<1x512xf32, #tpu.memory_space<any>>
    %c3_i32_26 = arith.constant 3 : i32
    %c0_i32_27 = arith.constant 0 : i32
    %29 = tpu.memref_slice %arg3[%c3_i32_26, %c0_i32_27] : memref<16x512xf32, #tpu.memory_space<vmem>> -> memref<1x512xf32, #tpu.memory_space<vmem>>
    %30 = tpu.memref_slice %arg4[%c3_i32] : memref<16x!tpu.dma_semaphore, #tpu.memory_space<semaphore_mem>> -> memref<1x!tpu.dma_semaphore, #tpu.memory_space<semaphore_mem>>
    %31 = tpu.memref_squeeze %30 : memref<1x!tpu.dma_semaphore, #tpu.memory_space<semaphore_mem>> -> memref<!tpu.dma_semaphore, #tpu.memory_space<semaphore_mem>>
    tpu.enqueue_dma source(%28 : memref<1x512xf32, #tpu.memory_space<any>>) target(%29 : memref<1x512xf32, #tpu.memory_space<vmem>>) target_semaphore(%31 : memref<!tpu.dma_semaphore, #tpu.memory_space<semaphore_mem>>)
    %c4_i32 = arith.constant 4 : i32
    %c0_i32_28 = arith.constant 0 : i32
    %32 = tpu.memref_slice %arg2[%4, %c0_i32_28] : memref<2048x512xf32, #tpu.memory_space<any>> -> memref<1x512xf32, #tpu.memory_space<any>>
    %c4_i32_29 = arith.constant 4 : i32
    %c0_i32_30 = arith.constant 0 : i32
    %33 = tpu.memref_slice %arg3[%c4_i32_29, %c0_i32_30] : memref<16x512xf32, #tpu.memory_space<vmem>> -> memref<1x512xf32, #tpu.memory_space<vmem>>
    %34 = tpu.memref_slice %arg4[%c4_i32] : memref<16x!tpu.dma_semaphore, #tpu.memory_space<semaphore_mem>> -> memref<1x!tpu.dma_semaphore, #tpu.memory_space<semaphore_mem>>
    %35 = tpu.memref_squeeze %34 : memref<1x!tpu.dma_semaphore, #tpu.memory_space<semaphore_mem>> -> memref<!tpu.dma_semaphore, #tpu.memory_space<semaphore_mem>>
    tpu.enqueue_dma source(%32 : memref<1x512xf32, #tpu.memory_space<any>>) target(%33 : memref<1x512xf32, #tpu.memory_space<vmem>>) target_semaphore(%35 : memref<!tpu.dma_semaphore, #tpu.memory_space<semaphore_mem>>)
    %c5_i32 = arith.constant 5 : i32
    %c0_i32_31 = arith.constant 0 : i32
    %36 = tpu.memref_slice %arg2[%5, %c0_i32_31] : memref<2048x512xf32, #tpu.memory_space<any>> -> memref<1x512xf32, #tpu.memory_space<any>>
    %c5_i32_32 = arith.constant 5 : i32
    %c0_i32_33 = arith.constant 0 : i32
    %37 = tpu.memref_slice %arg3[%c5_i32_32, %c0_i32_33] : memref<16x512xf32, #tpu.memory_space<vmem>> -> memref<1x512xf32, #tpu.memory_space<vmem>>
    %38 = tpu.memref_slice %arg4[%c5_i32] : memref<16x!tpu.dma_semaphore, #tpu.memory_space<semaphore_mem>> -> memref<1x!tpu.dma_semaphore, #tpu.memory_space<semaphore_mem>>
    %39 = tpu.memref_squeeze %38 : memref<1x!tpu.dma_semaphore, #tpu.memory_space<semaphore_mem>> -> memref<!tpu.dma_semaphore, #tpu.memory_space<semaphore_mem>>
    tpu.enqueue_dma source(%36 : memref<1x512xf32, #tpu.memory_space<any>>) target(%37 : memref<1x512xf32, #tpu.memory_space<vmem>>) target_semaphore(%39 : memref<!tpu.dma_semaphore, #tpu.memory_space<semaphore_mem>>)
    %c6_i32 = arith.constant 6 : i32
    %c0_i32_34 = arith.constant 0 : i32
    %40 = tpu.memref_slice %arg2[%6, %c0_i32_34] : memref<2048x512xf32, #tpu.memory_space<any>> -> memref<1x512xf32, #tpu.memory_space<any>>
    %c6_i32_35 = arith.constant 6 : i32
    %c0_i32_36 = arith.constant 0 : i32
    %41 = tpu.memref_slice %arg3[%c6_i32_35, %c0_i32_36] : memref<16x512xf32, #tpu.memory_space<vmem>> -> memref<1x512xf32, #tpu.memory_space<vmem>>
    %42 = tpu.memref_slice %arg4[%c6_i32] : memref<16x!tpu.dma_semaphore, #tpu.memory_space<semaphore_mem>> -> memref<1x!tpu.dma_semaphore, #tpu.memory_space<semaphore_mem>>
    %43 = tpu.memref_squeeze %42 : memref<1x!tpu.dma_semaphore, #tpu.memory_space<semaphore_mem>> -> memref<!tpu.dma_semaphore, #tpu.memory_space<semaphore_mem>>
    tpu.enqueue_dma source(%40 : memref<1x512xf32, #tpu.memory_space<any>>) target(%41 : memref<1x512xf32, #tpu.memory_space<vmem>>) target_semaphore(%43 : memref<!tpu.dma_semaphore, #tpu.memory_space<semaphore_mem>>)
    %c7_i32 = arith.constant 7 : i32
    %c0_i32_37 = arith.constant 0 : i32
    %44 = tpu.memref_slice %arg2[%7, %c0_i32_37] : memref<2048x512xf32, #tpu.memory_space<any>> -> memref<1x512xf32, #tpu.memory_space<any>>
    %c7_i32_38 = arith.constant 7 : i32
    %c0_i32_39 = arith.constant 0 : i32
    %45 = tpu.memref_slice %arg3[%c7_i32_38, %c0_i32_39] : memref<16x512xf32, #tpu.memory_space<vmem>> -> memref<1x512xf32, #tpu.memory_space<vmem>>
    %46 = tpu.memref_slice %arg4[%c7_i32] : memref<16x!tpu.dma_semaphore, #tpu.memory_space<semaphore_mem>> -> memref<1x!tpu.dma_semaphore, #tpu.memory_space<semaphore_mem>>
    %47 = tpu.memref_squeeze %46 : memref<1x!tpu.dma_semaphore, #tpu.memory_space<semaphore_mem>> -> memref<!tpu.dma_semaphore, #tpu.memory_space<semaphore_mem>>
    tpu.enqueue_dma source(%44 : memref<1x512xf32, #tpu.memory_space<any>>) target(%45 : memref<1x512xf32, #tpu.memory_space<vmem>>) target_semaphore(%47 : memref<!tpu.dma_semaphore, #tpu.memory_space<semaphore_mem>>)
    %c8_i32 = arith.constant 8 : i32
    %c0_i32_40 = arith.constant 0 : i32
    %48 = tpu.memref_slice %arg2[%8, %c0_i32_40] : memref<2048x512xf32, #tpu.memory_space<any>> -> memref<1x512xf32, #tpu.memory_space<any>>
    %c8_i32_41 = arith.constant 8 : i32
    %c0_i32_42 = arith.constant 0 : i32
    %49 = tpu.memref_slice %arg3[%c8_i32_41, %c0_i32_42] : memref<16x512xf32, #tpu.memory_space<vmem>> -> memref<1x512xf32, #tpu.memory_space<vmem>>
    %50 = tpu.memref_slice %arg4[%c8_i32] : memref<16x!tpu.dma_semaphore, #tpu.memory_space<semaphore_mem>> -> memref<1x!tpu.dma_semaphore, #tpu.memory_space<semaphore_mem>>
    %51 = tpu.memref_squeeze %50 : memref<1x!tpu.dma_semaphore, #tpu.memory_space<semaphore_mem>> -> memref<!tpu.dma_semaphore, #tpu.memory_space<semaphore_mem>>
    tpu.enqueue_dma source(%48 : memref<1x512xf32, #tpu.memory_space<any>>) target(%49 : memref<1x512xf32, #tpu.memory_space<vmem>>) target_semaphore(%51 : memref<!tpu.dma_semaphore, #tpu.memory_space<semaphore_mem>>)
    %c9_i32 = arith.constant 9 : i32
    %c0_i32_43 = arith.constant 0 : i32
    %52 = tpu.memref_slice %arg2[%9, %c0_i32_43] : memref<2048x512xf32, #tpu.memory_space<any>> -> memref<1x512xf32, #tpu.memory_space<any>>
    %c9_i32_44 = arith.constant 9 : i32
    %c0_i32_45 = arith.constant 0 : i32
    %53 = tpu.memref_slice %arg3[%c9_i32_44, %c0_i32_45] : memref<16x512xf32, #tpu.memory_space<vmem>> -> memref<1x512xf32, #tpu.memory_space<vmem>>
    %54 = tpu.memref_slice %arg4[%c9_i32] : memref<16x!tpu.dma_semaphore, #tpu.memory_space<semaphore_mem>> -> memref<1x!tpu.dma_semaphore, #tpu.memory_space<semaphore_mem>>
    %55 = tpu.memref_squeeze %54 : memref<1x!tpu.dma_semaphore, #tpu.memory_space<semaphore_mem>> -> memref<!tpu.dma_semaphore, #tpu.memory_space<semaphore_mem>>
    tpu.enqueue_dma source(%52 : memref<1x512xf32, #tpu.memory_space<any>>) target(%53 : memref<1x512xf32, #tpu.memory_space<vmem>>) target_semaphore(%55 : memref<!tpu.dma_semaphore, #tpu.memory_space<semaphore_mem>>)
    %c10_i32 = arith.constant 10 : i32
    %c0_i32_46 = arith.constant 0 : i32
    %56 = tpu.memref_slice %arg2[%10, %c0_i32_46] : memref<2048x512xf32, #tpu.memory_space<any>> -> memref<1x512xf32, #tpu.memory_space<any>>
    %c10_i32_47 = arith.constant 10 : i32
    %c0_i32_48 = arith.constant 0 : i32
    %57 = tpu.memref_slice %arg3[%c10_i32_47, %c0_i32_48] : memref<16x512xf32, #tpu.memory_space<vmem>> -> memref<1x512xf32, #tpu.memory_space<vmem>>
    %58 = tpu.memref_slice %arg4[%c10_i32] : memref<16x!tpu.dma_semaphore, #tpu.memory_space<semaphore_mem>> -> memref<1x!tpu.dma_semaphore, #tpu.memory_space<semaphore_mem>>
    %59 = tpu.memref_squeeze %58 : memref<1x!tpu.dma_semaphore, #tpu.memory_space<semaphore_mem>> -> memref<!tpu.dma_semaphore, #tpu.memory_space<semaphore_mem>>
    tpu.enqueue_dma source(%56 : memref<1x512xf32, #tpu.memory_space<any>>) target(%57 : memref<1x512xf32, #tpu.memory_space<vmem>>) target_semaphore(%59 : memref<!tpu.dma_semaphore, #tpu.memory_space<semaphore_mem>>)
    %c11_i32 = arith.constant 11 : i32
    %c0_i32_49 = arith.constant 0 : i32
    %60 = tpu.memref_slice %arg2[%11, %c0_i32_49] : memref<2048x512xf32, #tpu.memory_space<any>> -> memref<1x512xf32, #tpu.memory_space<any>>
    %c11_i32_50 = arith.constant 11 : i32
    %c0_i32_51 = arith.constant 0 : i32
    %61 = tpu.memref_slice %arg3[%c11_i32_50, %c0_i32_51] : memref<16x512xf32, #tpu.memory_space<vmem>> -> memref<1x512xf32, #tpu.memory_space<vmem>>
    %62 = tpu.memref_slice %arg4[%c11_i32] : memref<16x!tpu.dma_semaphore, #tpu.memory_space<semaphore_mem>> -> memref<1x!tpu.dma_semaphore, #tpu.memory_space<semaphore_mem>>
    %63 = tpu.memref_squeeze %62 : memref<1x!tpu.dma_semaphore, #tpu.memory_space<semaphore_mem>> -> memref<!tpu.dma_semaphore, #tpu.memory_space<semaphore_mem>>
    tpu.enqueue_dma source(%60 : memref<1x512xf32, #tpu.memory_space<any>>) target(%61 : memref<1x512xf32, #tpu.memory_space<vmem>>) target_semaphore(%63 : memref<!tpu.dma_semaphore, #tpu.memory_space<semaphore_mem>>)
    %c12_i32 = arith.constant 12 : i32
    %c0_i32_52 = arith.constant 0 : i32
    %64 = tpu.memref_slice %arg2[%12, %c0_i32_52] : memref<2048x512xf32, #tpu.memory_space<any>> -> memref<1x512xf32, #tpu.memory_space<any>>
    %c12_i32_53 = arith.constant 12 : i32
    %c0_i32_54 = arith.constant 0 : i32
    %65 = tpu.memref_slice %arg3[%c12_i32_53, %c0_i32_54] : memref<16x512xf32, #tpu.memory_space<vmem>> -> memref<1x512xf32, #tpu.memory_space<vmem>>
    %66 = tpu.memref_slice %arg4[%c12_i32] : memref<16x!tpu.dma_semaphore, #tpu.memory_space<semaphore_mem>> -> memref<1x!tpu.dma_semaphore, #tpu.memory_space<semaphore_mem>>
    %67 = tpu.memref_squeeze %66 : memref<1x!tpu.dma_semaphore, #tpu.memory_space<semaphore_mem>> -> memref<!tpu.dma_semaphore, #tpu.memory_space<semaphore_mem>>
    tpu.enqueue_dma source(%64 : memref<1x512xf32, #tpu.memory_space<any>>) target(%65 : memref<1x512xf32, #tpu.memory_space<vmem>>) target_semaphore(%67 : memref<!tpu.dma_semaphore, #tpu.memory_space<semaphore_mem>>)
    %c13_i32 = arith.constant 13 : i32
    %c0_i32_55 = arith.constant 0 : i32
    %68 = tpu.memref_slice %arg2[%13, %c0_i32_55] : memref<2048x512xf32, #tpu.memory_space<any>> -> memref<1x512xf32, #tpu.memory_space<any>>
    %c13_i32_56 = arith.constant 13 : i32
    %c0_i32_57 = arith.constant 0 : i32
    %69 = tpu.memref_slice %arg3[%c13_i32_56, %c0_i32_57] : memref<16x512xf32, #tpu.memory_space<vmem>> -> memref<1x512xf32, #tpu.memory_space<vmem>>
    %70 = tpu.memref_slice %arg4[%c13_i32] : memref<16x!tpu.dma_semaphore, #tpu.memory_space<semaphore_mem>> -> memref<1x!tpu.dma_semaphore, #tpu.memory_space<semaphore_mem>>
    %71 = tpu.memref_squeeze %70 : memref<1x!tpu.dma_semaphore, #tpu.memory_space<semaphore_mem>> -> memref<!tpu.dma_semaphore, #tpu.memory_space<semaphore_mem>>
    tpu.enqueue_dma source(%68 : memref<1x512xf32, #tpu.memory_space<any>>) target(%69 : memref<1x512xf32, #tpu.memory_space<vmem>>) target_semaphore(%71 : memref<!tpu.dma_semaphore, #tpu.memory_space<semaphore_mem>>)
    %c14_i32 = arith.constant 14 : i32
    %c0_i32_58 = arith.constant 0 : i32
    %72 = tpu.memref_slice %arg2[%14, %c0_i32_58] : memref<2048x512xf32, #tpu.memory_space<any>> -> memref<1x512xf32, #tpu.memory_space<any>>
    %c14_i32_59 = arith.constant 14 : i32
    %c0_i32_60 = arith.constant 0 : i32
    %73 = tpu.memref_slice %arg3[%c14_i32_59, %c0_i32_60] : memref<16x512xf32, #tpu.memory_space<vmem>> -> memref<1x512xf32, #tpu.memory_space<vmem>>
    %74 = tpu.memref_slice %arg4[%c14_i32] : memref<16x!tpu.dma_semaphore, #tpu.memory_space<semaphore_mem>> -> memref<1x!tpu.dma_semaphore, #tpu.memory_space<semaphore_mem>>
    %75 = tpu.memref_squeeze %74 : memref<1x!tpu.dma_semaphore, #tpu.memory_space<semaphore_mem>> -> memref<!tpu.dma_semaphore, #tpu.memory_space<semaphore_mem>>
    tpu.enqueue_dma source(%72 : memref<1x512xf32, #tpu.memory_space<any>>) target(%73 : memref<1x512xf32, #tpu.memory_space<vmem>>) target_semaphore(%75 : memref<!tpu.dma_semaphore, #tpu.memory_space<semaphore_mem>>)
    %c15_i32 = arith.constant 15 : i32
    %c0_i32_61 = arith.constant 0 : i32
    %76 = tpu.memref_slice %arg2[%15, %c0_i32_61] : memref<2048x512xf32, #tpu.memory_space<any>> -> memref<1x512xf32, #tpu.memory_space<any>>
    %c15_i32_62 = arith.constant 15 : i32
    %c0_i32_63 = arith.constant 0 : i32
    %77 = tpu.memref_slice %arg3[%c15_i32_62, %c0_i32_63] : memref<16x512xf32, #tpu.memory_space<vmem>> -> memref<1x512xf32, #tpu.memory_space<vmem>>
    %78 = tpu.memref_slice %arg4[%c15_i32] : memref<16x!tpu.dma_semaphore, #tpu.memory_space<semaphore_mem>> -> memref<1x!tpu.dma_semaphore, #tpu.memory_space<semaphore_mem>>
    %79 = tpu.memref_squeeze %78 : memref<1x!tpu.dma_semaphore, #tpu.memory_space<semaphore_mem>> -> memref<!tpu.dma_semaphore, #tpu.memory_space<semaphore_mem>>
    tpu.enqueue_dma source(%76 : memref<1x512xf32, #tpu.memory_space<any>>) target(%77 : memref<1x512xf32, #tpu.memory_space<vmem>>) target_semaphore(%79 : memref<!tpu.dma_semaphore, #tpu.memory_space<semaphore_mem>>)
    %c0_i32_64 = arith.constant 0 : i32
    %c0_i32_65 = arith.constant 0 : i32
    %80 = tpu.memref_slice %arg2[%0, %c0_i32_65] : memref<2048x512xf32, #tpu.memory_space<any>> -> memref<1x512xf32, #tpu.memory_space<any>>
    %c0_i32_66 = arith.constant 0 : i32
    %c0_i32_67 = arith.constant 0 : i32
    %81 = tpu.memref_slice %arg3[%c0_i32_66, %c0_i32_67] : memref<16x512xf32, #tpu.memory_space<vmem>> -> memref<1x512xf32, #tpu.memory_space<vmem>>
    %82 = tpu.memref_slice %arg4[%c0_i32_64] : memref<16x!tpu.dma_semaphore, #tpu.memory_space<semaphore_mem>> -> memref<1x!tpu.dma_semaphore, #tpu.memory_space<semaphore_mem>>
    %83 = tpu.memref_squeeze %82 : memref<1x!tpu.dma_semaphore, #tpu.memory_space<semaphore_mem>> -> memref<!tpu.dma_semaphore, #tpu.memory_space<semaphore_mem>>
    tpu.wait_dma2 semaphore(%83 : memref<!tpu.dma_semaphore, #tpu.memory_space<semaphore_mem>>) src(%80 : memref<1x512xf32, #tpu.memory_space<any>>) dst(%81 : memref<1x512xf32, #tpu.memory_space<vmem>>)
    %c1_i32_68 = arith.constant 1 : i32
    %c0_i32_69 = arith.constant 0 : i32
    %84 = tpu.memref_slice %arg2[%1, %c0_i32_69] : memref<2048x512xf32, #tpu.memory_space<any>> -> memref<1x512xf32, #tpu.memory_space<any>>
    %c1_i32_70 = arith.constant 1 : i32
    %c0_i32_71 = arith.constant 0 : i32
    %85 = tpu.memref_slice %arg3[%c1_i32_70, %c0_i32_71] : memref<16x512xf32, #tpu.memory_space<vmem>> -> memref<1x512xf32, #tpu.memory_space<vmem>>
    %86 = tpu.memref_slice %arg4[%c1_i32_68] : memref<16x!tpu.dma_semaphore, #tpu.memory_space<semaphore_mem>> -> memref<1x!tpu.dma_semaphore, #tpu.memory_space<semaphore_mem>>
    %87 = tpu.memref_squeeze %86 : memref<1x!tpu.dma_semaphore, #tpu.memory_space<semaphore_mem>> -> memref<!tpu.dma_semaphore, #tpu.memory_space<semaphore_mem>>
    tpu.wait_dma2 semaphore(%87 : memref<!tpu.dma_semaphore, #tpu.memory_space<semaphore_mem>>) src(%84 : memref<1x512xf32, #tpu.memory_space<any>>) dst(%85 : memref<1x512xf32, #tpu.memory_space<vmem>>)
    %c2_i32_72 = arith.constant 2 : i32
    %c0_i32_73 = arith.constant 0 : i32
    %88 = tpu.memref_slice %arg2[%2, %c0_i32_73] : memref<2048x512xf32, #tpu.memory_space<any>> -> memref<1x512xf32, #tpu.memory_space<any>>
    %c2_i32_74 = arith.constant 2 : i32
    %c0_i32_75 = arith.constant 0 : i32
    %89 = tpu.memref_slice %arg3[%c2_i32_74, %c0_i32_75] : memref<16x512xf32, #tpu.memory_space<vmem>> -> memref<1x512xf32, #tpu.memory_space<vmem>>
    %90 = tpu.memref_slice %arg4[%c2_i32_72] : memref<16x!tpu.dma_semaphore, #tpu.memory_space<semaphore_mem>> -> memref<1x!tpu.dma_semaphore, #tpu.memory_space<semaphore_mem>>
    %91 = tpu.memref_squeeze %90 : memref<1x!tpu.dma_semaphore, #tpu.memory_space<semaphore_mem>> -> memref<!tpu.dma_semaphore, #tpu.memory_space<semaphore_mem>>
    tpu.wait_dma2 semaphore(%91 : memref<!tpu.dma_semaphore, #tpu.memory_space<semaphore_mem>>) src(%88 : memref<1x512xf32, #tpu.memory_space<any>>) dst(%89 : memref<1x512xf32, #tpu.memory_space<vmem>>)
    %c3_i32_76 = arith.constant 3 : i32
    %c0_i32_77 = arith.constant 0 : i32
    %92 = tpu.memref_slice %arg2[%3, %c0_i32_77] : memref<2048x512xf32, #tpu.memory_space<any>> -> memref<1x512xf32, #tpu.memory_space<any>>
    %c3_i32_78 = arith.constant 3 : i32
    %c0_i32_79 = arith.constant 0 : i32
    %93 = tpu.memref_slice %arg3[%c3_i32_78, %c0_i32_79] : memref<16x512xf32, #tpu.memory_space<vmem>> -> memref<1x512xf32, #tpu.memory_space<vmem>>
    %94 = tpu.memref_slice %arg4[%c3_i32_76] : memref<16x!tpu.dma_semaphore, #tpu.memory_space<semaphore_mem>> -> memref<1x!tpu.dma_semaphore, #tpu.memory_space<semaphore_mem>>
    %95 = tpu.memref_squeeze %94 : memref<1x!tpu.dma_semaphore, #tpu.memory_space<semaphore_mem>> -> memref<!tpu.dma_semaphore, #tpu.memory_space<semaphore_mem>>
    tpu.wait_dma2 semaphore(%95 : memref<!tpu.dma_semaphore, #tpu.memory_space<semaphore_mem>>) src(%92 : memref<1x512xf32, #tpu.memory_space<any>>) dst(%93 : memref<1x512xf32, #tpu.memory_space<vmem>>)
    %c4_i32_80 = arith.constant 4 : i32
    %c0_i32_81 = arith.constant 0 : i32
    %96 = tpu.memref_slice %arg2[%4, %c0_i32_81] : memref<2048x512xf32, #tpu.memory_space<any>> -> memref<1x512xf32, #tpu.memory_space<any>>
    %c4_i32_82 = arith.constant 4 : i32
    %c0_i32_83 = arith.constant 0 : i32
    %97 = tpu.memref_slice %arg3[%c4_i32_82, %c0_i32_83] : memref<16x512xf32, #tpu.memory_space<vmem>> -> memref<1x512xf32, #tpu.memory_space<vmem>>
    %98 = tpu.memref_slice %arg4[%c4_i32_80] : memref<16x!tpu.dma_semaphore, #tpu.memory_space<semaphore_mem>> -> memref<1x!tpu.dma_semaphore, #tpu.memory_space<semaphore_mem>>
    %99 = tpu.memref_squeeze %98 : memref<1x!tpu.dma_semaphore, #tpu.memory_space<semaphore_mem>> -> memref<!tpu.dma_semaphore, #tpu.memory_space<semaphore_mem>>
    tpu.wait_dma2 semaphore(%99 : memref<!tpu.dma_semaphore, #tpu.memory_space<semaphore_mem>>) src(%96 : memref<1x512xf32, #tpu.memory_space<any>>) dst(%97 : memref<1x512xf32, #tpu.memory_space<vmem>>)
    %c5_i32_84 = arith.constant 5 : i32
    %c0_i32_85 = arith.constant 0 : i32
    %100 = tpu.memref_slice %arg2[%5, %c0_i32_85] : memref<2048x512xf32, #tpu.memory_space<any>> -> memref<1x512xf32, #tpu.memory_space<any>>
    %c5_i32_86 = arith.constant 5 : i32
    %c0_i32_87 = arith.constant 0 : i32
    %101 = tpu.memref_slice %arg3[%c5_i32_86, %c0_i32_87] : memref<16x512xf32, #tpu.memory_space<vmem>> -> memref<1x512xf32, #tpu.memory_space<vmem>>
    %102 = tpu.memref_slice %arg4[%c5_i32_84] : memref<16x!tpu.dma_semaphore, #tpu.memory_space<semaphore_mem>> -> memref<1x!tpu.dma_semaphore, #tpu.memory_space<semaphore_mem>>
    %103 = tpu.memref_squeeze %102 : memref<1x!tpu.dma_semaphore, #tpu.memory_space<semaphore_mem>> -> memref<!tpu.dma_semaphore, #tpu.memory_space<semaphore_mem>>
    tpu.wait_dma2 semaphore(%103 : memref<!tpu.dma_semaphore, #tpu.memory_space<semaphore_mem>>) src(%100 : memref<1x512xf32, #tpu.memory_space<any>>) dst(%101 : memref<1x512xf32, #tpu.memory_space<vmem>>)
    %c6_i32_88 = arith.constant 6 : i32
    %c0_i32_89 = arith.constant 0 : i32
    %104 = tpu.memref_slice %arg2[%6, %c0_i32_89] : memref<2048x512xf32, #tpu.memory_space<any>> -> memref<1x512xf32, #tpu.memory_space<any>>
    %c6_i32_90 = arith.constant 6 : i32
    %c0_i32_91 = arith.constant 0 : i32
    %105 = tpu.memref_slice %arg3[%c6_i32_90, %c0_i32_91] : memref<16x512xf32, #tpu.memory_space<vmem>> -> memref<1x512xf32, #tpu.memory_space<vmem>>
    %106 = tpu.memref_slice %arg4[%c6_i32_88] : memref<16x!tpu.dma_semaphore, #tpu.memory_space<semaphore_mem>> -> memref<1x!tpu.dma_semaphore, #tpu.memory_space<semaphore_mem>>
    %107 = tpu.memref_squeeze %106 : memref<1x!tpu.dma_semaphore, #tpu.memory_space<semaphore_mem>> -> memref<!tpu.dma_semaphore, #tpu.memory_space<semaphore_mem>>
    tpu.wait_dma2 semaphore(%107 : memref<!tpu.dma_semaphore, #tpu.memory_space<semaphore_mem>>) src(%104 : memref<1x512xf32, #tpu.memory_space<any>>) dst(%105 : memref<1x512xf32, #tpu.memory_space<vmem>>)
    %c7_i32_92 = arith.constant 7 : i32
    %c0_i32_93 = arith.constant 0 : i32
    %108 = tpu.memref_slice %arg2[%7, %c0_i32_93] : memref<2048x512xf32, #tpu.memory_space<any>> -> memref<1x512xf32, #tpu.memory_space<any>>
    %c7_i32_94 = arith.constant 7 : i32
    %c0_i32_95 = arith.constant 0 : i32
    %109 = tpu.memref_slice %arg3[%c7_i32_94, %c0_i32_95] : memref<16x512xf32, #tpu.memory_space<vmem>> -> memref<1x512xf32, #tpu.memory_space<vmem>>
    %110 = tpu.memref_slice %arg4[%c7_i32_92] : memref<16x!tpu.dma_semaphore, #tpu.memory_space<semaphore_mem>> -> memref<1x!tpu.dma_semaphore, #tpu.memory_space<semaphore_mem>>
    %111 = tpu.memref_squeeze %110 : memref<1x!tpu.dma_semaphore, #tpu.memory_space<semaphore_mem>> -> memref<!tpu.dma_semaphore, #tpu.memory_space<semaphore_mem>>
    tpu.wait_dma2 semaphore(%111 : memref<!tpu.dma_semaphore, #tpu.memory_space<semaphore_mem>>) src(%108 : memref<1x512xf32, #tpu.memory_space<any>>) dst(%109 : memref<1x512xf32, #tpu.memory_space<vmem>>)
    %c8_i32_96 = arith.constant 8 : i32
    %c0_i32_97 = arith.constant 0 : i32
    %112 = tpu.memref_slice %arg2[%8, %c0_i32_97] : memref<2048x512xf32, #tpu.memory_space<any>> -> memref<1x512xf32, #tpu.memory_space<any>>
    %c8_i32_98 = arith.constant 8 : i32
    %c0_i32_99 = arith.constant 0 : i32
    %113 = tpu.memref_slice %arg3[%c8_i32_98, %c0_i32_99] : memref<16x512xf32, #tpu.memory_space<vmem>> -> memref<1x512xf32, #tpu.memory_space<vmem>>
    %114 = tpu.memref_slice %arg4[%c8_i32_96] : memref<16x!tpu.dma_semaphore, #tpu.memory_space<semaphore_mem>> -> memref<1x!tpu.dma_semaphore, #tpu.memory_space<semaphore_mem>>
    %115 = tpu.memref_squeeze %114 : memref<1x!tpu.dma_semaphore, #tpu.memory_space<semaphore_mem>> -> memref<!tpu.dma_semaphore, #tpu.memory_space<semaphore_mem>>
    tpu.wait_dma2 semaphore(%115 : memref<!tpu.dma_semaphore, #tpu.memory_space<semaphore_mem>>) src(%112 : memref<1x512xf32, #tpu.memory_space<any>>) dst(%113 : memref<1x512xf32, #tpu.memory_space<vmem>>)
    %c9_i32_100 = arith.constant 9 : i32
    %c0_i32_101 = arith.constant 0 : i32
    %116 = tpu.memref_slice %arg2[%9, %c0_i32_101] : memref<2048x512xf32, #tpu.memory_space<any>> -> memref<1x512xf32, #tpu.memory_space<any>>
    %c9_i32_102 = arith.constant 9 : i32
    %c0_i32_103 = arith.constant 0 : i32
    %117 = tpu.memref_slice %arg3[%c9_i32_102, %c0_i32_103] : memref<16x512xf32, #tpu.memory_space<vmem>> -> memref<1x512xf32, #tpu.memory_space<vmem>>
    %118 = tpu.memref_slice %arg4[%c9_i32_100] : memref<16x!tpu.dma_semaphore, #tpu.memory_space<semaphore_mem>> -> memref<1x!tpu.dma_semaphore, #tpu.memory_space<semaphore_mem>>
    %119 = tpu.memref_squeeze %118 : memref<1x!tpu.dma_semaphore, #tpu.memory_space<semaphore_mem>> -> memref<!tpu.dma_semaphore, #tpu.memory_space<semaphore_mem>>
    tpu.wait_dma2 semaphore(%119 : memref<!tpu.dma_semaphore, #tpu.memory_space<semaphore_mem>>) src(%116 : memref<1x512xf32, #tpu.memory_space<any>>) dst(%117 : memref<1x512xf32, #tpu.memory_space<vmem>>)
    %c10_i32_104 = arith.constant 10 : i32
    %c0_i32_105 = arith.constant 0 : i32
    %120 = tpu.memref_slice %arg2[%10, %c0_i32_105] : memref<2048x512xf32, #tpu.memory_space<any>> -> memref<1x512xf32, #tpu.memory_space<any>>
    %c10_i32_106 = arith.constant 10 : i32
    %c0_i32_107 = arith.constant 0 : i32
    %121 = tpu.memref_slice %arg3[%c10_i32_106, %c0_i32_107] : memref<16x512xf32, #tpu.memory_space<vmem>> -> memref<1x512xf32, #tpu.memory_space<vmem>>
    %122 = tpu.memref_slice %arg4[%c10_i32_104] : memref<16x!tpu.dma_semaphore, #tpu.memory_space<semaphore_mem>> -> memref<1x!tpu.dma_semaphore, #tpu.memory_space<semaphore_mem>>
    %123 = tpu.memref_squeeze %122 : memref<1x!tpu.dma_semaphore, #tpu.memory_space<semaphore_mem>> -> memref<!tpu.dma_semaphore, #tpu.memory_space<semaphore_mem>>
    tpu.wait_dma2 semaphore(%123 : memref<!tpu.dma_semaphore, #tpu.memory_space<semaphore_mem>>) src(%120 : memref<1x512xf32, #tpu.memory_space<any>>) dst(%121 : memref<1x512xf32, #tpu.memory_space<vmem>>)
    %c11_i32_108 = arith.constant 11 : i32
    %c0_i32_109 = arith.constant 0 : i32
    %124 = tpu.memref_slice %arg2[%11, %c0_i32_109] : memref<2048x512xf32, #tpu.memory_space<any>> -> memref<1x512xf32, #tpu.memory_space<any>>
    %c11_i32_110 = arith.constant 11 : i32
    %c0_i32_111 = arith.constant 0 : i32
    %125 = tpu.memref_slice %arg3[%c11_i32_110, %c0_i32_111] : memref<16x512xf32, #tpu.memory_space<vmem>> -> memref<1x512xf32, #tpu.memory_space<vmem>>
    %126 = tpu.memref_slice %arg4[%c11_i32_108] : memref<16x!tpu.dma_semaphore, #tpu.memory_space<semaphore_mem>> -> memref<1x!tpu.dma_semaphore, #tpu.memory_space<semaphore_mem>>
    %127 = tpu.memref_squeeze %126 : memref<1x!tpu.dma_semaphore, #tpu.memory_space<semaphore_mem>> -> memref<!tpu.dma_semaphore, #tpu.memory_space<semaphore_mem>>
    tpu.wait_dma2 semaphore(%127 : memref<!tpu.dma_semaphore, #tpu.memory_space<semaphore_mem>>) src(%124 : memref<1x512xf32, #tpu.memory_space<any>>) dst(%125 : memref<1x512xf32, #tpu.memory_space<vmem>>)
    %c12_i32_112 = arith.constant 12 : i32
    %c0_i32_113 = arith.constant 0 : i32
    %128 = tpu.memref_slice %arg2[%12, %c0_i32_113] : memref<2048x512xf32, #tpu.memory_space<any>> -> memref<1x512xf32, #tpu.memory_space<any>>
    %c12_i32_114 = arith.constant 12 : i32
    %c0_i32_115 = arith.constant 0 : i32
    %129 = tpu.memref_slice %arg3[%c12_i32_114, %c0_i32_115] : memref<16x512xf32, #tpu.memory_space<vmem>> -> memref<1x512xf32, #tpu.memory_space<vmem>>
    %130 = tpu.memref_slice %arg4[%c12_i32_112] : memref<16x!tpu.dma_semaphore, #tpu.memory_space<semaphore_mem>> -> memref<1x!tpu.dma_semaphore, #tpu.memory_space<semaphore_mem>>
    %131 = tpu.memref_squeeze %130 : memref<1x!tpu.dma_semaphore, #tpu.memory_space<semaphore_mem>> -> memref<!tpu.dma_semaphore, #tpu.memory_space<semaphore_mem>>
    tpu.wait_dma2 semaphore(%131 : memref<!tpu.dma_semaphore, #tpu.memory_space<semaphore_mem>>) src(%128 : memref<1x512xf32, #tpu.memory_space<any>>) dst(%129 : memref<1x512xf32, #tpu.memory_space<vmem>>)
    %c13_i32_116 = arith.constant 13 : i32
    %c0_i32_117 = arith.constant 0 : i32
    %132 = tpu.memref_slice %arg2[%13, %c0_i32_117] : memref<2048x512xf32, #tpu.memory_space<any>> -> memref<1x512xf32, #tpu.memory_space<any>>
    %c13_i32_118 = arith.constant 13 : i32
    %c0_i32_119 = arith.constant 0 : i32
    %133 = tpu.memref_slice %arg3[%c13_i32_118, %c0_i32_119] : memref<16x512xf32, #tpu.memory_space<vmem>> -> memref<1x512xf32, #tpu.memory_space<vmem>>
    %134 = tpu.memref_slice %arg4[%c13_i32_116] : memref<16x!tpu.dma_semaphore, #tpu.memory_space<semaphore_mem>> -> memref<1x!tpu.dma_semaphore, #tpu.memory_space<semaphore_mem>>
    %135 = tpu.memref_squeeze %134 : memref<1x!tpu.dma_semaphore, #tpu.memory_space<semaphore_mem>> -> memref<!tpu.dma_semaphore, #tpu.memory_space<semaphore_mem>>
    tpu.wait_dma2 semaphore(%135 : memref<!tpu.dma_semaphore, #tpu.memory_space<semaphore_mem>>) src(%132 : memref<1x512xf32, #tpu.memory_space<any>>) dst(%133 : memref<1x512xf32, #tpu.memory_space<vmem>>)
    %c14_i32_120 = arith.constant 14 : i32
    %c0_i32_121 = arith.constant 0 : i32
    %136 = tpu.memref_slice %arg2[%14, %c0_i32_121] : memref<2048x512xf32, #tpu.memory_space<any>> -> memref<1x512xf32, #tpu.memory_space<any>>
    %c14_i32_122 = arith.constant 14 : i32
    %c0_i32_123 = arith.constant 0 : i32
    %137 = tpu.memref_slice %arg3[%c14_i32_122, %c0_i32_123] : memref<16x512xf32, #tpu.memory_space<vmem>> -> memref<1x512xf32, #tpu.memory_space<vmem>>
    %138 = tpu.memref_slice %arg4[%c14_i32_120] : memref<16x!tpu.dma_semaphore, #tpu.memory_space<semaphore_mem>> -> memref<1x!tpu.dma_semaphore, #tpu.memory_space<semaphore_mem>>
    %139 = tpu.memref_squeeze %138 : memref<1x!tpu.dma_semaphore, #tpu.memory_space<semaphore_mem>> -> memref<!tpu.dma_semaphore, #tpu.memory_space<semaphore_mem>>
    tpu.wait_dma2 semaphore(%139 : memref<!tpu.dma_semaphore, #tpu.memory_space<semaphore_mem>>) src(%136 : memref<1x512xf32, #tpu.memory_space<any>>) dst(%137 : memref<1x512xf32, #tpu.memory_space<vmem>>)
    %c15_i32_124 = arith.constant 15 : i32
    %c0_i32_125 = arith.constant 0 : i32
    %140 = tpu.memref_slice %arg2[%15, %c0_i32_125] : memref<2048x512xf32, #tpu.memory_space<any>> -> memref<1x512xf32, #tpu.memory_space<any>>
    %c15_i32_126 = arith.constant 15 : i32
    %c0_i32_127 = arith.constant 0 : i32
    %141 = tpu.memref_slice %arg3[%c15_i32_126, %c0_i32_127] : memref<16x512xf32, #tpu.memory_space<vmem>> -> memref<1x512xf32, #tpu.memory_space<vmem>>
    %142 = tpu.memref_slice %arg4[%c15_i32_124] : memref<16x!tpu.dma_semaphore, #tpu.memory_space<semaphore_mem>> -> memref<1x!tpu.dma_semaphore, #tpu.memory_space<semaphore_mem>>
    %143 = tpu.memref_squeeze %142 : memref<1x!tpu.dma_semaphore, #tpu.memory_space<semaphore_mem>> -> memref<!tpu.dma_semaphore, #tpu.memory_space<semaphore_mem>>
    tpu.wait_dma2 semaphore(%143 : memref<!tpu.dma_semaphore, #tpu.memory_space<semaphore_mem>>) src(%140 : memref<1x512xf32, #tpu.memory_space<any>>) dst(%141 : memref<1x512xf32, #tpu.memory_space<vmem>>)
    %c0_128 = arith.constant 0 : index
    %c0_129 = arith.constant 0 : index
    %144 = vector.load %arg3[%c0_128, %c0_129] : memref<16x512xf32, #tpu.memory_space<vmem>>, vector<16x512xf32>
    %145 = arith.mulf %144, %144 : vector<16x512xf32>
    %cst = arith.constant dense<0.000000e+00> : vector<16xf32>
    %146 = vector.multi_reduction <add>, %145, %cst [1] : vector<16x512xf32> to vector<16xf32>
    %147 = vector.shape_cast %146 : vector<16xf32> to vector<16x1xf32>
    %148 = math.sqrt %147 : vector<16x1xf32>
    %cst_130 = arith.constant 9.99999993E-9 : f32
    %149 = vector.broadcast %cst_130 : f32 to vector<16x1xf32>
    %150 = arith.addf %148, %149 : vector<16x1xf32>
    %151 = vector.broadcast %150 : vector<16x1xf32> to vector<16x512xf32>
    %152 = arith.divf %144, %151 : vector<16x512xf32>
    %c0_131 = arith.constant 0 : index
    %c0_132 = arith.constant 0 : index
    %153 = vector.load %arg1[%c0_131, %c0_132] : memref<16x1xf32, #tpu.memory_space<vmem>>, vector<16x1xf32>
    %154 = vector.broadcast %153 : vector<16x1xf32> to vector<16x512xf32>
    %155 = arith.mulf %152, %154 : vector<16x512xf32>
    %c0_133 = arith.constant 0 : index
    %c0_134 = arith.constant 0 : index
    %156 = vector.load %arg3[%c0_133, %c0_134] : memref<16x512xf32, #tpu.memory_space<vmem>>, vector<16x512xf32>
    tpu.vector_store %arg3[%c0_133, %c0_134], %155 {strides = array<i32>} : memref<16x512xf32, #tpu.memory_space<vmem>>, vector<16x512xf32>,
    return
  }
}

module attributes {stable_mosaic.version = 11 : i64} {
  func.func @_leaf_heads_kernel(%arg0: memref<16x1xf32, #tpu.memory_space<vmem>>, %arg1: memref<16x128xf32, #tpu.memory_space<vmem>>, %arg2: memref<16x2048xf32, #tpu.memory_space<vmem>>, %arg3: memref<128x256xf32, #tpu.memory_space<vmem>>, %arg4: memref<1x256xf32, #tpu.memory_space<vmem>>, %arg5: memref<256x256xf32, #tpu.memory_space<vmem>>, %arg6: memref<1x256xf32, #tpu.memory_space<vmem>>, %arg7: memref<256x128xf32, #tpu.memory_space<vmem>>, %arg8: memref<1x128xf32, #tpu.memory_space<vmem>>, %arg9: memref<128x128xf32, #tpu.memory_space<vmem>>, %arg10: memref<1x128xf32, #tpu.memory_space<vmem>>, %arg11: memref<128x128xf32, #tpu.memory_space<vmem>>, %arg12: memref<1x128xf32, #tpu.memory_space<vmem>>, %arg13: memref<128x2048xf32, #tpu.memory_space<vmem>>, %arg14: memref<1x2048xf32, #tpu.memory_space<vmem>>, %arg15: memref<16x1xf32, #tpu.memory_space<vmem>>, %arg16: memref<16x1xf32, #tpu.memory_space<vmem>>, %arg17: memref<16x1xi32, #tpu.memory_space<vmem>>, %arg18: memref<16x2048xf32, #tpu.memory_space<vmem>>) attributes {dimension_semantics = [], scalar_prefetch = 0 : i64, scratch_operands = 1 : i64, tpu.core_type = #tpu.core_type<tc>} {
    %c0 = arith.constant 0 : index
    %c0_0 = arith.constant 0 : index
    %0 = vector.load %arg1[%c0, %c0_0] : memref<16x128xf32, #tpu.memory_space<vmem>>, vector<16x128xf32>
    %c0_1 = arith.constant 0 : index
    %c0_2 = arith.constant 0 : index
    %1 = vector.load %arg3[%c0_1, %c0_2] : memref<128x256xf32, #tpu.memory_space<vmem>>, vector<128x256xf32>
    %cst = arith.constant dense<0.000000e+00> : vector<16x256xf32>
    %2 = tpu.matmul %0, %1, %cst {dimension_numbers = #tpu.dot_dimension_numbers<[1], [0], [0], [1], [0, 0, 1, 1], [], []>} : vector<16x128xf32>, vector<128x256xf32>, vector<16x256xf32> -> vector<16x256xf32>
    %c0_3 = arith.constant 0 : index
    %c0_4 = arith.constant 0 : index
    %3 = vector.load %arg4[%c0_3, %c0_4] : memref<1x256xf32, #tpu.memory_space<vmem>>, vector<1x256xf32>
    %4 = vector.broadcast %3 : vector<1x256xf32> to vector<16x256xf32>
    %5 = arith.addf %2, %4 : vector<16x256xf32>
    %cst_5 = arith.constant 0.000000e+00 : f32
    %6 = vector.broadcast %cst_5 : f32 to vector<16x256xf32>
    %7 = arith.cmpf ogt, %5, %6 : vector<16x256xf32>
    %cst_6 = arith.constant 2.000000e-01 : f32
    %8 = vector.broadcast %cst_6 : f32 to vector<16x256xf32>
    %9 = arith.mulf %8, %5 : vector<16x256xf32>
    %10 = arith.select %7, %5, %9 : vector<16x256xi1>, vector<16x256xf32>
    %c0_7 = arith.constant 0 : index
    %c0_8 = arith.constant 0 : index
    %11 = vector.load %arg5[%c0_7, %c0_8] : memref<256x256xf32, #tpu.memory_space<vmem>>, vector<256x256xf32>
    %cst_9 = arith.constant dense<0.000000e+00> : vector<16x256xf32>
    %12 = tpu.matmul %10, %11, %cst_9 {dimension_numbers = #tpu.dot_dimension_numbers<[1], [0], [0], [1], [0, 0, 1, 1], [], []>} : vector<16x256xf32>, vector<256x256xf32>, vector<16x256xf32> -> vector<16x256xf32>
    %c0_10 = arith.constant 0 : index
    %c0_11 = arith.constant 0 : index
    %13 = vector.load %arg6[%c0_10, %c0_11] : memref<1x256xf32, #tpu.memory_space<vmem>>, vector<1x256xf32>
    %14 = vector.broadcast %13 : vector<1x256xf32> to vector<16x256xf32>
    %15 = arith.addf %12, %14 : vector<16x256xf32>
    %cst_12 = arith.constant 0.000000e+00 : f32
    %16 = vector.broadcast %cst_12 : f32 to vector<16x256xf32>
    %17 = arith.cmpf ogt, %15, %16 : vector<16x256xf32>
    %cst_13 = arith.constant 2.000000e-01 : f32
    %18 = vector.broadcast %cst_13 : f32 to vector<16x256xf32>
    %19 = arith.mulf %18, %15 : vector<16x256xf32>
    %20 = arith.select %17, %15, %19 : vector<16x256xi1>, vector<16x256xf32>
    %c0_14 = arith.constant 0 : index
    %c0_15 = arith.constant 0 : index
    %21 = vector.load %arg7[%c0_14, %c0_15] : memref<256x128xf32, #tpu.memory_space<vmem>>, vector<256x128xf32>
    %cst_16 = arith.constant dense<0.000000e+00> : vector<16x128xf32>
    %22 = tpu.matmul %20, %21, %cst_16 {dimension_numbers = #tpu.dot_dimension_numbers<[1], [0], [0], [1], [0, 0, 1, 1], [], []>} : vector<16x256xf32>, vector<256x128xf32>, vector<16x128xf32> -> vector<16x128xf32>
    %c0_17 = arith.constant 0 : index
    %c0_18 = arith.constant 0 : index
    %23 = vector.load %arg8[%c0_17, %c0_18] : memref<1x128xf32, #tpu.memory_space<vmem>>, vector<1x128xf32>
    %24 = vector.broadcast %23 : vector<1x128xf32> to vector<16x128xf32>
    %25 = arith.addf %22, %24 : vector<16x128xf32>
    %26 = vector.extract_strided_slice %25 {offsets = [0, 0], sizes = [16, 1], strides = [1, 1]} : vector<16x128xf32> to vector<16x1xf32>
    %27 = vector.extract_strided_slice %25 {offsets = [0, 1], sizes = [16, 1], strides = [1, 1]} : vector<16x128xf32> to vector<16x1xf32>
    %cst_19 = arith.constant 0.000000e+00 : f32
    %28 = vector.broadcast %cst_19 : f32 to vector<16x1xf32>
    %29 = arith.subf %28, %26 : vector<16x1xf32>
    %30 = math.exp %29 : vector<16x1xf32>
    %cst_20 = arith.constant 1.000000e+00 : f32
    %31 = vector.broadcast %cst_20 : f32 to vector<16x1xf32>
    %32 = arith.addf %31, %30 : vector<16x1xf32>
    %cst_21 = arith.constant 1.000000e+00 : f32
    %33 = vector.broadcast %cst_21 : f32 to vector<16x1xf32>
    %34 = arith.divf %33, %32 : vector<16x1xf32>
    %cst_22 = arith.constant 1.000000e+00 : f32
    %35 = vector.broadcast %cst_22 : f32 to vector<16x1xf32>
    %36 = arith.mulf %34, %35 : vector<16x1xf32>
    %c0_23 = arith.constant 0 : index
    %c0_24 = arith.constant 0 : index
    %37 = vector.load %arg0[%c0_23, %c0_24] : memref<16x1xf32, #tpu.memory_space<vmem>>, vector<16x1xf32>
    %38 = arith.addf %36, %37 : vector<16x1xf32>
    %c0_25 = arith.constant 0 : index
    %c0_26 = arith.constant 0 : index
    %39 = vector.load %arg15[%c0_25, %c0_26] : memref<16x1xf32, #tpu.memory_space<vmem>>, vector<16x1xf32>
    tpu.vector_store %arg15[%c0_25, %c0_26], %38 {strides = array<i32>} : memref<16x1xf32, #tpu.memory_space<vmem>>, vector<16x1xf32>,
    %40 = arith.mulf %27, %27 : vector<16x1xf32>
    %c0_27 = arith.constant 0 : index
    %c0_28 = arith.constant 0 : index
    %41 = vector.load %arg16[%c0_27, %c0_28] : memref<16x1xf32, #tpu.memory_space<vmem>>, vector<16x1xf32>
    tpu.vector_store %arg16[%c0_27, %c0_28], %40 {strides = array<i32>} : memref<16x1xf32, #tpu.memory_space<vmem>>, vector<16x1xf32>,
    %c0_29 = arith.constant 0 : index
    %c0_30 = arith.constant 0 : index
    %42 = vector.load %arg9[%c0_29, %c0_30] : memref<128x128xf32, #tpu.memory_space<vmem>>, vector<128x128xf32>
    %cst_31 = arith.constant dense<0.000000e+00> : vector<16x128xf32>
    %43 = tpu.matmul %0, %42, %cst_31 {dimension_numbers = #tpu.dot_dimension_numbers<[1], [0], [0], [1], [0, 0, 1, 1], [], []>} : vector<16x128xf32>, vector<128x128xf32>, vector<16x128xf32> -> vector<16x128xf32>
    %c0_32 = arith.constant 0 : index
    %c0_33 = arith.constant 0 : index
    %44 = vector.load %arg10[%c0_32, %c0_33] : memref<1x128xf32, #tpu.memory_space<vmem>>, vector<1x128xf32>
    %45 = vector.broadcast %44 : vector<1x128xf32> to vector<16x128xf32>
    %46 = arith.addf %43, %45 : vector<16x128xf32>
    %cst_34 = arith.constant 0.000000e+00 : f32
    %47 = vector.broadcast %cst_34 : f32 to vector<16x128xf32>
    %48 = arith.cmpf ogt, %46, %47 : vector<16x128xf32>
    %cst_35 = arith.constant 2.000000e-01 : f32
    %49 = vector.broadcast %cst_35 : f32 to vector<16x128xf32>
    %50 = arith.mulf %49, %46 : vector<16x128xf32>
    %51 = arith.select %48, %46, %50 : vector<16x128xi1>, vector<16x128xf32>
    %c0_36 = arith.constant 0 : index
    %c0_37 = arith.constant 0 : index
    %52 = vector.load %arg11[%c0_36, %c0_37] : memref<128x128xf32, #tpu.memory_space<vmem>>, vector<128x128xf32>
    %cst_38 = arith.constant dense<0.000000e+00> : vector<16x128xf32>
    %53 = tpu.matmul %51, %52, %cst_38 {dimension_numbers = #tpu.dot_dimension_numbers<[1], [0], [0], [1], [0, 0, 1, 1], [], []>} : vector<16x128xf32>, vector<128x128xf32>, vector<16x128xf32> -> vector<16x128xf32>
    %c0_39 = arith.constant 0 : index
    %c0_40 = arith.constant 0 : index
    %54 = vector.load %arg12[%c0_39, %c0_40] : memref<1x128xf32, #tpu.memory_space<vmem>>, vector<1x128xf32>
    %55 = vector.broadcast %54 : vector<1x128xf32> to vector<16x128xf32>
    %56 = arith.addf %53, %55 : vector<16x128xf32>
    %cst_41 = arith.constant 0.000000e+00 : f32
    %57 = vector.broadcast %cst_41 : f32 to vector<16x128xf32>
    %58 = arith.cmpf ogt, %56, %57 : vector<16x128xf32>
    %cst_42 = arith.constant 2.000000e-01 : f32
    %59 = vector.broadcast %cst_42 : f32 to vector<16x128xf32>
    %60 = arith.mulf %59, %56 : vector<16x128xf32>
    %61 = arith.select %58, %56, %60 : vector<16x128xi1>, vector<16x128xf32>
    %cst_43 = arith.constant 0.000000e+00 : f32
    %62 = vector.broadcast %cst_43 : f32 to vector<16x1xf32>
    %c0_44 = arith.constant 0 : index
    %c0_45 = arith.constant 0 : index
    %63 = vector.load %arg13[%c0_44, %c0_45] : memref<128x2048xf32, #tpu.memory_space<vmem>>, vector<128x512xf32>
    %cst_46 = arith.constant dense<0.000000e+00> : vector<16x512xf32>
    %64 = tpu.matmul %61, %63, %cst_46 {dimension_numbers = #tpu.dot_dimension_numbers<[1], [0], [0], [1], [0, 0, 1, 1], [], []>} : vector<16x128xf32>, vector<128x512xf32>, vector<16x512xf32> -> vector<16x512xf32>
    %c0_47 = arith.constant 0 : index
    %c0_48 = arith.constant 0 : index
    %65 = vector.load %arg14[%c0_47, %c0_48] : memref<1x2048xf32, #tpu.memory_space<vmem>>, vector<1x512xf32>
    %66 = vector.broadcast %65 : vector<1x512xf32> to vector<16x512xf32>
    %67 = arith.addf %64, %66 : vector<16x512xf32>
    %c0_49 = arith.constant 0 : index
    %c0_50 = arith.constant 0 : index
    %68 = vector.load %arg18[%c0_49, %c0_50] : memref<16x2048xf32, #tpu.memory_space<vmem>>, vector<16x512xf32>
    tpu.vector_store %arg18[%c0_49, %c0_50], %67 {strides = array<i32>} : memref<16x2048xf32, #tpu.memory_space<vmem>>, vector<16x512xf32>,
    %69 = math.absf %67 : vector<16x512xf32>
    %cst_51 = arith.constant dense<0xFF800000> : vector<16xf32>
    %70 = vector.multi_reduction <maximumf>, %69, %cst_51 [1] : vector<16x512xf32> to vector<16xf32>
    %71 = vector.shape_cast %70 : vector<16xf32> to vector<16x1xf32>
    %72 = arith.maximumf %62, %71 : vector<16x1xf32>
    %c0_52 = arith.constant 0 : index
    %c512 = arith.constant 512 : index
    %73 = vector.load %arg13[%c0_52, %c512] : memref<128x2048xf32, #tpu.memory_space<vmem>>, vector<128x512xf32>
    %cst_53 = arith.constant dense<0.000000e+00> : vector<16x512xf32>
    %74 = tpu.matmul %61, %73, %cst_53 {dimension_numbers = #tpu.dot_dimension_numbers<[1], [0], [0], [1], [0, 0, 1, 1], [], []>} : vector<16x128xf32>, vector<128x512xf32>, vector<16x512xf32> -> vector<16x512xf32>
    %c0_54 = arith.constant 0 : index
    %c512_55 = arith.constant 512 : index
    %75 = vector.load %arg14[%c0_54, %c512_55] : memref<1x2048xf32, #tpu.memory_space<vmem>>, vector<1x512xf32>
    %76 = vector.broadcast %75 : vector<1x512xf32> to vector<16x512xf32>
    %77 = arith.addf %74, %76 : vector<16x512xf32>
    %c0_56 = arith.constant 0 : index
    %c512_57 = arith.constant 512 : index
    %78 = vector.load %arg18[%c0_56, %c512_57] : memref<16x2048xf32, #tpu.memory_space<vmem>>, vector<16x512xf32>
    tpu.vector_store %arg18[%c0_56, %c512_57], %77 {strides = array<i32>} : memref<16x2048xf32, #tpu.memory_space<vmem>>, vector<16x512xf32>,
    %79 = math.absf %77 : vector<16x512xf32>
    %cst_58 = arith.constant dense<0xFF800000> : vector<16xf32>
    %80 = vector.multi_reduction <maximumf>, %79, %cst_58 [1] : vector<16x512xf32> to vector<16xf32>
    %81 = vector.shape_cast %80 : vector<16xf32> to vector<16x1xf32>
    %82 = arith.maximumf %72, %81 : vector<16x1xf32>
    %c0_59 = arith.constant 0 : index
    %c1024 = arith.constant 1024 : index
    %83 = vector.load %arg13[%c0_59, %c1024] : memref<128x2048xf32, #tpu.memory_space<vmem>>, vector<128x512xf32>
    %cst_60 = arith.constant dense<0.000000e+00> : vector<16x512xf32>
    %84 = tpu.matmul %61, %83, %cst_60 {dimension_numbers = #tpu.dot_dimension_numbers<[1], [0], [0], [1], [0, 0, 1, 1], [], []>} : vector<16x128xf32>, vector<128x512xf32>, vector<16x512xf32> -> vector<16x512xf32>
    %c0_61 = arith.constant 0 : index
    %c1024_62 = arith.constant 1024 : index
    %85 = vector.load %arg14[%c0_61, %c1024_62] : memref<1x2048xf32, #tpu.memory_space<vmem>>, vector<1x512xf32>
    %86 = vector.broadcast %85 : vector<1x512xf32> to vector<16x512xf32>
    %87 = arith.addf %84, %86 : vector<16x512xf32>
    %c0_63 = arith.constant 0 : index
    %c1024_64 = arith.constant 1024 : index
    %88 = vector.load %arg18[%c0_63, %c1024_64] : memref<16x2048xf32, #tpu.memory_space<vmem>>, vector<16x512xf32>
    tpu.vector_store %arg18[%c0_63, %c1024_64], %87 {strides = array<i32>} : memref<16x2048xf32, #tpu.memory_space<vmem>>, vector<16x512xf32>,
    %89 = math.absf %87 : vector<16x512xf32>
    %cst_65 = arith.constant dense<0xFF800000> : vector<16xf32>
    %90 = vector.multi_reduction <maximumf>, %89, %cst_65 [1] : vector<16x512xf32> to vector<16xf32>
    %91 = vector.shape_cast %90 : vector<16xf32> to vector<16x1xf32>
    %92 = arith.maximumf %82, %91 : vector<16x1xf32>
    %c0_66 = arith.constant 0 : index
    %c1536 = arith.constant 1536 : index
    %93 = vector.load %arg13[%c0_66, %c1536] : memref<128x2048xf32, #tpu.memory_space<vmem>>, vector<128x512xf32>
    %cst_67 = arith.constant dense<0.000000e+00> : vector<16x512xf32>
    %94 = tpu.matmul %61, %93, %cst_67 {dimension_numbers = #tpu.dot_dimension_numbers<[1], [0], [0], [1], [0, 0, 1, 1], [], []>} : vector<16x128xf32>, vector<128x512xf32>, vector<16x512xf32> -> vector<16x512xf32>
    %c0_68 = arith.constant 0 : index
    %c1536_69 = arith.constant 1536 : index
    %95 = vector.load %arg14[%c0_68, %c1536_69] : memref<1x2048xf32, #tpu.memory_space<vmem>>, vector<1x512xf32>
    %96 = vector.broadcast %95 : vector<1x512xf32> to vector<16x512xf32>
    %97 = arith.addf %94, %96 : vector<16x512xf32>
    %c0_70 = arith.constant 0 : index
    %c1536_71 = arith.constant 1536 : index
    %98 = vector.load %arg18[%c0_70, %c1536_71] : memref<16x2048xf32, #tpu.memory_space<vmem>>, vector<16x512xf32>
    tpu.vector_store %arg18[%c0_70, %c1536_71], %97 {strides = array<i32>} : memref<16x2048xf32, #tpu.memory_space<vmem>>, vector<16x512xf32>,
    %99 = math.absf %97 : vector<16x512xf32>
    %cst_72 = arith.constant dense<0xFF800000> : vector<16xf32>
    %100 = vector.multi_reduction <maximumf>, %99, %cst_72 [1] : vector<16x512xf32> to vector<16xf32>
    %101 = vector.shape_cast %100 : vector<16xf32> to vector<16x1xf32>
    %102 = arith.maximumf %92, %101 : vector<16x1xf32>
    %cst_73 = arith.constant 9.99999993E-9 : f32
    %103 = vector.broadcast %cst_73 : f32 to vector<16x1xf32>
    %104 = arith.addf %102, %103 : vector<16x1xf32>
    %cst_74 = arith.constant 1.000000e+00 : f32
    %105 = vector.broadcast %cst_74 : f32 to vector<16x1xf32>
    %106 = arith.divf %105, %104 : vector<16x1xf32>
    %cst_75 = arith.constant 0xFF800000 : f32
    %107 = vector.broadcast %cst_75 : f32 to vector<16x1xf32>
    %c0_i32 = arith.constant 0 : i32
    %108 = vector.broadcast %c0_i32 : i32 to vector<16x1xi32>
    %c0_76 = arith.constant 0 : index
    %c0_77 = arith.constant 0 : index
    %109 = vector.load %arg18[%c0_76, %c0_77] : memref<16x2048xf32, #tpu.memory_space<vmem>>, vector<16x512xf32>
    %110 = vector.broadcast %106 : vector<16x1xf32> to vector<16x512xf32>
    %111 = arith.mulf %109, %110 : vector<16x512xf32>
    %112 = math.exp %111 : vector<16x512xf32>
    %c0_78 = arith.constant 0 : index
    %c0_79 = arith.constant 0 : index
    %113 = vector.load %arg2[%c0_78, %c0_79] : memref<16x2048xf32, #tpu.memory_space<vmem>>, vector<16x512xf32>
    %114 = arith.addf %112, %113 : vector<16x512xf32>
    %cst_80 = arith.constant dense<0xFF800000> : vector<16xf32>
    %115 = vector.multi_reduction <maximumf>, %114, %cst_80 [1] : vector<16x512xf32> to vector<16xf32>
    %116 = vector.shape_cast %115 : vector<16xf32> to vector<16x1xf32>
    %117 = tpu.iota {dimensions = array<i32: 1>} : vector<16x512xi32>
    %118 = vector.broadcast %116 : vector<16x1xf32> to vector<16x512xf32>
    %119 = arith.cmpf oge, %114, %118 : vector<16x512xf32>
    %c2048_i32 = arith.constant 2048 : i32
    %120 = vector.broadcast %c2048_i32 : i32 to vector<16x512xi32>
    %121 = arith.select %119, %117, %120 : vector<16x512xi1>, vector<16x512xi32>
    %cst_81 = arith.constant dense<2147483647> : vector<16xi32>
    %122 = vector.multi_reduction <minsi>, %121, %cst_81 [1] : vector<16x512xi32> to vector<16xi32>
    %123 = vector.shape_cast %122 : vector<16xi32> to vector<16x1xi32>
    %c0_i32_82 = arith.constant 0 : i32
    %124 = vector.broadcast %c0_i32_82 : i32 to vector<16x1xi32>
    %125 = arith.addi %123, %124 : vector<16x1xi32>
    %126 = arith.cmpf ogt, %116, %107 : vector<16x1xf32>
    %127 = arith.select %126, %125, %108 : vector<16x1xi1>, vector<16x1xi32>
    %128 = arith.maximumf %107, %116 : vector<16x1xf32>
    %c0_83 = arith.constant 0 : index
    %c512_84 = arith.constant 512 : index
    %129 = vector.load %arg18[%c0_83, %c512_84] : memref<16x2048xf32, #tpu.memory_space<vmem>>, vector<16x512xf32>
    %130 = vector.broadcast %106 : vector<16x1xf32> to vector<16x512xf32>
    %131 = arith.mulf %129, %130 : vector<16x512xf32>
    %132 = math.exp %131 : vector<16x512xf32>
    %c0_85 = arith.constant 0 : index
    %c512_86 = arith.constant 512 : index
    %133 = vector.load %arg2[%c0_85, %c512_86] : memref<16x2048xf32, #tpu.memory_space<vmem>>, vector<16x512xf32>
    %134 = arith.addf %132, %133 : vector<16x512xf32>
    %cst_87 = arith.constant dense<0xFF800000> : vector<16xf32>
    %135 = vector.multi_reduction <maximumf>, %134, %cst_87 [1] : vector<16x512xf32> to vector<16xf32>
    %136 = vector.shape_cast %135 : vector<16xf32> to vector<16x1xf32>
    %137 = tpu.iota {dimensions = array<i32: 1>} : vector<16x512xi32>
    %138 = vector.broadcast %136 : vector<16x1xf32> to vector<16x512xf32>
    %139 = arith.cmpf oge, %134, %138 : vector<16x512xf32>
    %c2048_i32_88 = arith.constant 2048 : i32
    %140 = vector.broadcast %c2048_i32_88 : i32 to vector<16x512xi32>
    %141 = arith.select %139, %137, %140 : vector<16x512xi1>, vector<16x512xi32>
    %cst_89 = arith.constant dense<2147483647> : vector<16xi32>
    %142 = vector.multi_reduction <minsi>, %141, %cst_89 [1] : vector<16x512xi32> to vector<16xi32>
    %143 = vector.shape_cast %142 : vector<16xi32> to vector<16x1xi32>
    %c512_i32 = arith.constant 512 : i32
    %144 = vector.broadcast %c512_i32 : i32 to vector<16x1xi32>
    %145 = arith.addi %143, %144 : vector<16x1xi32>
    %146 = arith.cmpf ogt, %136, %128 : vector<16x1xf32>
    %147 = arith.select %146, %145, %127 : vector<16x1xi1>, vector<16x1xi32>
    %148 = arith.maximumf %128, %136 : vector<16x1xf32>
    %c0_90 = arith.constant 0 : index
    %c1024_91 = arith.constant 1024 : index
    %149 = vector.load %arg18[%c0_90, %c1024_91] : memref<16x2048xf32, #tpu.memory_space<vmem>>, vector<16x512xf32>
    %150 = vector.broadcast %106 : vector<16x1xf32> to vector<16x512xf32>
    %151 = arith.mulf %149, %150 : vector<16x512xf32>
    %152 = math.exp %151 : vector<16x512xf32>
    %c0_92 = arith.constant 0 : index
    %c1024_93 = arith.constant 1024 : index
    %153 = vector.load %arg2[%c0_92, %c1024_93] : memref<16x2048xf32, #tpu.memory_space<vmem>>, vector<16x512xf32>
    %154 = arith.addf %152, %153 : vector<16x512xf32>
    %cst_94 = arith.constant dense<0xFF800000> : vector<16xf32>
    %155 = vector.multi_reduction <maximumf>, %154, %cst_94 [1] : vector<16x512xf32> to vector<16xf32>
    %156 = vector.shape_cast %155 : vector<16xf32> to vector<16x1xf32>
    %157 = tpu.iota {dimensions = array<i32: 1>} : vector<16x512xi32>
    %158 = vector.broadcast %156 : vector<16x1xf32> to vector<16x512xf32>
    %159 = arith.cmpf oge, %154, %158 : vector<16x512xf32>
    %c2048_i32_95 = arith.constant 2048 : i32
    %160 = vector.broadcast %c2048_i32_95 : i32 to vector<16x512xi32>
    %161 = arith.select %159, %157, %160 : vector<16x512xi1>, vector<16x512xi32>
    %cst_96 = arith.constant dense<2147483647> : vector<16xi32>
    %162 = vector.multi_reduction <minsi>, %161, %cst_96 [1] : vector<16x512xi32> to vector<16xi32>
    %163 = vector.shape_cast %162 : vector<16xi32> to vector<16x1xi32>
    %c1024_i32 = arith.constant 1024 : i32
    %164 = vector.broadcast %c1024_i32 : i32 to vector<16x1xi32>
    %165 = arith.addi %163, %164 : vector<16x1xi32>
    %166 = arith.cmpf ogt, %156, %148 : vector<16x1xf32>
    %167 = arith.select %166, %165, %147 : vector<16x1xi1>, vector<16x1xi32>
    %168 = arith.maximumf %148, %156 : vector<16x1xf32>
    %c0_97 = arith.constant 0 : index
    %c1536_98 = arith.constant 1536 : index
    %169 = vector.load %arg18[%c0_97, %c1536_98] : memref<16x2048xf32, #tpu.memory_space<vmem>>, vector<16x512xf32>
    %170 = vector.broadcast %106 : vector<16x1xf32> to vector<16x512xf32>
    %171 = arith.mulf %169, %170 : vector<16x512xf32>
    %172 = math.exp %171 : vector<16x512xf32>
    %c0_99 = arith.constant 0 : index
    %c1536_100 = arith.constant 1536 : index
    %173 = vector.load %arg2[%c0_99, %c1536_100] : memref<16x2048xf32, #tpu.memory_space<vmem>>, vector<16x512xf32>
    %174 = arith.addf %172, %173 : vector<16x512xf32>
    %cst_101 = arith.constant dense<0xFF800000> : vector<16xf32>
    %175 = vector.multi_reduction <maximumf>, %174, %cst_101 [1] : vector<16x512xf32> to vector<16xf32>
    %176 = vector.shape_cast %175 : vector<16xf32> to vector<16x1xf32>
    %177 = tpu.iota {dimensions = array<i32: 1>} : vector<16x512xi32>
    %178 = vector.broadcast %176 : vector<16x1xf32> to vector<16x512xf32>
    %179 = arith.cmpf oge, %174, %178 : vector<16x512xf32>
    %c2048_i32_102 = arith.constant 2048 : i32
    %180 = vector.broadcast %c2048_i32_102 : i32 to vector<16x512xi32>
    %181 = arith.select %179, %177, %180 : vector<16x512xi1>, vector<16x512xi32>
    %cst_103 = arith.constant dense<2147483647> : vector<16xi32>
    %182 = vector.multi_reduction <minsi>, %181, %cst_103 [1] : vector<16x512xi32> to vector<16xi32>
    %183 = vector.shape_cast %182 : vector<16xi32> to vector<16x1xi32>
    %c1536_i32 = arith.constant 1536 : i32
    %184 = vector.broadcast %c1536_i32 : i32 to vector<16x1xi32>
    %185 = arith.addi %183, %184 : vector<16x1xi32>
    %186 = arith.cmpf ogt, %176, %168 : vector<16x1xf32>
    %187 = arith.select %186, %185, %167 : vector<16x1xi1>, vector<16x1xi32>
    %c0_104 = arith.constant 0 : index
    %c0_105 = arith.constant 0 : index
    %188 = vector.load %arg17[%c0_104, %c0_105] : memref<16x1xi32, #tpu.memory_space<vmem>>, vector<16x1xi32>
    tpu.vector_store %arg17[%c0_104, %c0_105], %187 {strides = array<i32>} : memref<16x1xi32, #tpu.memory_space<vmem>>, vector<16x1xi32>,
    return
  }
}

</mosaic_0001>

<bundles_post_ra>
// kernel: leaf_forward.3
= control target key start
LH: loop header
LB: loop body
LE: loop exit
PB: predicated region body
PF: predicated region fallthrough
CT: control target
= control target key end

     0   :  { %8 = vsyncpa [#allocation4], 0  ;;  %s1481_s0 = inlined_call_operand.vmem [shape: s32[16,1], index: 0, kind: input, shape index: {}]   ;;  %s1482_s1 = inlined_call_operand.vmem [shape: f32[16,1], index: 1, kind: input, shape index: {}]   ;;  %s1483_s2 = inlined_call_operand.hbm [shape: f32[2048,512], index: 2, kind: input, shape index: {}]   ;;  %s1484_s3 = inlined_call_operand.vmem [shape: f32[16,512], index: 3, kind: output, shape index: {}]  }
   0x1   :  { %s14_s14 = sshll.u32 %s1481_s0, 4  ;;  %s15_s14 = int_to_ptr.vmem [resolvable:$true] %s14_s14 }
   0x2   :  { %s620_s15 = scalar_lea.vmem %s15_s14, 256  ;;  %p625_p1 = scmp.lt.s32.totalorder %s15_s14, %s15_s14 }
   0x3   :  { %p621_p0 = scmp.ne.s32.totalorder %s15_s14, %s620_s15  ;;  %p626_p2 = scmp.lt.s32.totalorder %s620_s15, %s620_s15 }
   0x5   :  { %p627_p3 = por %p626_p2, %p625_p1 }
   0x7   :  { %p628_p4 = pnand %p627_p3, %p621_p0 }
   0x9   :  { %631 = shalt.err (!%p628_p4)
}
   0xa   :  { %s1050_s16 = smov [#allocation3]   ;;  %s1051_s17 = smov 128  }
   0xb   :  { %s1052_s18 = smov 8  }
   0xc   :  { %20 = dma.vmem_to_smem %s15_s14, 256, %s1050_s16, [#allocation4], %s1051_s17, %s1051_s17, %s1052_s18  }
   0xd   :  { %1016 = dma.done.wait [#allocation4], 256  }
   0xe   :  { %1017 = vsyncadd [#allocation4], 4294967040 }
   0xf   :  { %26 = sfence }
  0x10   :  { %s27_s19 = sld [smem:[#allocation3]]  ;;  %s50_s21 = sshll.u32 %s1484_s3, 4  ;;  %s1083_s21 = int_to_ptr.vmem [resolvable:$true] %s50_s21 }
  0x11   :  { %s1085_s22 = sld [smem:[#allocation3 + $0x80]]  ;;  %s60_s25 = scalar_lea.vmem %s1484_s3, 1 }
  0x12   :  { %s63_s26 = sshll.u32 %s60_s25, 4  ;;  %s1090_s27 = sld [smem:[#allocation3 + $0x100]]  ;;  %s1092_s26 = int_to_ptr.vmem [resolvable:$true] %s63_s26 }
  0x13   :  { %s73_s30 = scalar_lea.vmem %s1484_s3, 2  ;;  %s1097_s5 = sld [smem:[#allocation3 + $0x180]] }
  0x14   :  { %s76_s4 = sshll.u32 %s73_s30, 4  ;;  %s1109_s23 = scalar_lea.hbm %s1483_s2, 131072  ;;  %s1099_s4 = int_to_ptr.vmem [resolvable:$true] %s76_s4 }
  0x16   :  { %s43_s6 = sshrl.u32 %s27_s19, 3  ;;  %s44_s7 = sand.u32 7, %s27_s19  }
  0x17   :  { %s557_s8 = sshll.u32 %s43_s6, 5  ;;  %s54_s10 = sshrl.u32 %s1085_s22, 3 }
  0x18   :  { %s46_s9 = sadd.s32 %s557_s8, %s44_s7  ;;  %s55_s12 = sand.u32 7, %s1085_s22  }
  0x19   :  { %s558_s11 = sshll.u32 %s46_s9, 4  ;;  %s559_s16 = sshll.u32 %s54_s10, 5 }
  0x1a   :  { %s48_s15 = scalar_lea.hbm %s1483_s2, %s558_s11 }
  0x1b   :  { %s632_s18 = scalar_lea.hbm %s48_s15, 64  ;;  %p635_p6 = scmp.lt.u32.totalorder %s48_s15, %s1483_s2 }
  0x1c   :  { %p633_p5 = scmp.ne.s32.totalorder %s48_s15, %s632_s18  ;;  %p636_p7 = scmp.lt.u32.totalorder %s1109_s23, %s632_s18 }
  0x1d   :  { %p638_p9 = scmp.lt.u32.totalorder %s632_s18, %s48_s15 }
  0x1e   :  { %p637_p8 = por %p636_p7, %p635_p6 }
  0x20   :  { %p639_p10 = por %p638_p9, %p637_p8 }
  0x22   :  { %p640_p11 = pnand %p639_p10, %p633_p5 }
  0x24   :  { %643 = shalt.err (!%p640_p11)  }
  0x25   :  { %s644_s22 = scalar_lea.vmem %s1083_s21, 64  ;;  %s1118_s25 = scalar_lea.vmem %s1083_s21, 1024 }
  0x26   :  { %p645_p12 = scmp.ne.s32.totalorder %s1083_s21, %s644_s22  ;;  %p649_p13 = scmp.lt.s32.totalorder %s1083_s21, %s1083_s21 }
  0x27   :  { %p650_p0 = scmp.lt.s32.totalorder %s1118_s25, %s644_s22 }
  0x29   :  { %p651_p1 = por %p650_p0, %p649_p13 }
  0x2b   :  { %p652_p2 = pnand %p651_p1, %p645_p12 }
  0x2d   :  { %655 = shalt.err (!%p652_p2)  }
  0x2e   :  { %s1053_s28 = smov 1   ;;  %s57_s29 = sadd.s32 %s559_s16, %s55_s12 }
  0x2f   :  { %53 = dma.hbm_to_vmem [thread:$0]  %s48_s15, 64, %s1083_s21, [#allocation2], %s1051_s17, %s1051_s17, %s1053_s28 }
  0x30   :  { %s67_s30 = sshrl.u32 %s1090_s27, 3  ;;  %s560_s6 = sshll.u32 %s57_s29, 4 }
  0x31   :  { %s68_s7 = sand.u32 7, %s1090_s27   ;;  %s59_s10 = scalar_lea.hbm %s1483_s2, %s560_s6 }
  0x32   :  { %s561_s11 = sshll.u32 %s67_s30, 5  ;;  %s656_s13 = scalar_lea.hbm %s59_s10, 64 }
  0x33   :  { %p657_p3 = scmp.ne.s32.totalorder %s59_s10, %s656_s13  ;;  %p659_p4 = scmp.lt.u32.totalorder %s59_s10, %s1483_s2 }
  0x34   :  { %p660_p5 = scmp.lt.u32.totalorder %s1109_s23, %s656_s13  ;;  %p662_p7 = scmp.lt.u32.totalorder %s656_s13, %s59_s10 }
  0x36   :  { %p661_p6 = por %p660_p5, %p659_p4 }
  0x38   :  { %p663_p8 = por %p662_p7, %p661_p6 }
  0x3a   :  { %p664_p9 = pnand %p663_p8, %p657_p3 }
  0x3c   :  { %667 = shalt.err (!%p664_p9)  }
  0x3d   :  { %s668_s27 = scalar_lea.vmem %s1092_s26, 64  ;;  %p673_p11 = scmp.lt.s32.totalorder %s1092_s26, %s1083_s21 }
  0x3e   :  { %p669_p10 = scmp.ne.s32.totalorder %s1092_s26, %s668_s27  ;;  %p674_p12 = scmp.lt.s32.totalorder %s1118_s25, %s668_s27 }
  0x40   :  { %p675_p13 = por %p674_p12, %p673_p11 }
  0x42   :  { %p676_p0 = pnand %p675_p13, %p669_p10 }
  0x44   :  { %679 = shalt.err (!%p676_p0)  }
  0x45   :  { %66 = dma.hbm_to_vmem [thread:$0]  %s59_s10, 64, %s1092_s26, [#allocation2 + $0x1], %s1051_s17, %s1051_s17, %s1053_s28 }
  0x46   :  { %s70_s12 = sadd.s32 %s561_s11, %s68_s7  ;;  %s80_s15 = sshrl.u32 %s1097_s5, 3 }
  0x47   :  { %s562_s16 = sshll.u32 %s70_s12, 4  ;;  %s81_s20 = sand.u32 7, %s1097_s5  }
  0x48   :  { %s72_s24 = scalar_lea.hbm %s1483_s2, %s562_s16  ;;  %s563_s22 = sshll.u32 %s80_s15, 5 }
  0x49   :  { %s680_s29 = scalar_lea.hbm %s72_s24, 64  ;;  %p683_p2 = scmp.lt.u32.totalorder %s72_s24, %s1483_s2 }
  0x4a   :  { %p681_p1 = scmp.ne.s32.totalorder %s72_s24, %s680_s29  ;;  %p684_p3 = scmp.lt.u32.totalorder %s1109_s23, %s680_s29 }
  0x4b   :  { %p686_p5 = scmp.lt.u32.totalorder %s680_s29, %s72_s24 }
  0x4c   :  { %p685_p4 = por %p684_p3, %p683_p2 }
  0x4e   :  { %p687_p6 = por %p686_p5, %p685_p4 }
  0x50   :  { %p688_p7 = pnand %p687_p6, %p681_p1 }
  0x52   :  { %691 = shalt.err (!%p688_p7)  }
  0x53   :  { %s692_s26 = scalar_lea.vmem %s1099_s4, 64  ;;  %p697_p9 = scmp.lt.s32.totalorder %s1099_s4, %s1083_s21 }
  0x54   :  { %p693_p8 = scmp.ne.s32.totalorder %s1099_s4, %s692_s26  ;;  %p698_p10 = scmp.lt.s32.totalorder %s1118_s25, %s692_s26 }
  0x56   :  { %p699_p11 = por %p698_p10, %p697_p9 }
  0x58   :  { %p700_p12 = pnand %p699_p11, %p693_p8 }
  0x5a   :  { %703 = shalt.err (!%p700_p12)  }
  0x5b   :  { %79 = dma.hbm_to_vmem [thread:$0]  %s72_s24, 64, %s1099_s4, [#allocation2 + $0x2], %s1051_s17, %s1051_s17, %s1053_s28 }
  0x5c   :  { %s83_s5 = sadd.s32 %s563_s22, %s81_s20  ;;  %s86_s9 = scalar_lea.vmem %s1484_s3, 3 }
  0x5d   :  { %s564_s10 = sshll.u32 %s83_s5, 4  ;;  %s89_s11 = sshll.u32 %s86_s9, 4  ;;  %s90_s11 = int_to_ptr.vmem [resolvable:$true] %s89_s11 }
  0x5e   :  { %s85_s18 = scalar_lea.hbm %s1483_s2, %s564_s10 }
  0x5f   :  { %s704_s27 = scalar_lea.hbm %s85_s18, 64  ;;  %p707_p0 = scmp.lt.u32.totalorder %s85_s18, %s1483_s2 }
  0x60   :  { %p705_p13 = scmp.ne.s32.totalorder %s85_s18, %s704_s27  ;;  %p708_p1 = scmp.lt.u32.totalorder %s1109_s23, %s704_s27 }
  0x61   :  { %p710_p3 = scmp.lt.u32.totalorder %s704_s27, %s85_s18 }
  0x62   :  { %p709_p2 = por %p708_p1, %p707_p0 }
  0x64   :  { %p711_p4 = por %p710_p3, %p709_p2 }
  0x66   :  { %p712_p5 = pnand %p711_p4, %p705_p13 }
  0x68   :  { %715 = shalt.err (!%p712_p5)  }
  0x69   :  { %s716_s4 = scalar_lea.vmem %s90_s11, 64  ;;  %p721_p7 = scmp.lt.s32.totalorder %s90_s11, %s1083_s21 }
  0x6a   :  { %p717_p6 = scmp.ne.s32.totalorder %s90_s11, %s716_s4  ;;  %p722_p8 = scmp.lt.s32.totalorder %s1118_s25, %s716_s4 }
  0x6c   :  { %p723_p9 = por %p722_p8, %p721_p7 }
  0x6e   :  { %p724_p10 = pnand %p723_p9, %p717_p6 }
  0x70   :  { %727 = shalt.err (!%p724_p10)  }
  0x71   :  { %92 = dma.hbm_to_vmem [thread:$0]  %s85_s18, 64, %s90_s11, [#allocation2 + $0x3], %s1051_s17, %s1051_s17, %s1053_s28 }
  0x72   :  { %s545_s16 = sld [smem:[#allocation3 + $0x200]]  ;;  %s99_s19 = scalar_lea.vmem %s1484_s3, 4 }
  0x73   :  { %s102_s24 = sshll.u32 %s99_s19, 4  ;;  %s546_s22 = sld [smem:[#allocation3 + $0x280]]  ;;  %s1181_s24 = int_to_ptr.vmem [resolvable:$true] %s102_s24 }
  0x74   :  { %s112_s6 = scalar_lea.vmem %s1484_s3, 5  ;;  %s1186_s5 = sld [smem:[#allocation3 + $0x300]] }
  0x75   :  { %s115_s26 = sshll.u32 %s112_s6, 4  ;;  %s125_s9 = scalar_lea.vmem %s1484_s3, 6  ;;  %s1188_s26 = int_to_ptr.vmem [resolvable:$true] %s115_s26 }
  0x76   :  { %s1193_s10 = sshll.u32 %s125_s9, 4  ;;  %s1195_s11 = sld [smem:[#allocation3 + $0x380]]  ;;  %s129_s10 = int_to_ptr.vmem [resolvable:$true] %s1193_s10 }
  0x78   :  { %s93_s13 = sshrl.u32 %s545_s16, 3  ;;  %s94_s14 = sand.u32 7, %s545_s16  }
  0x79   :  { %s565_s18 = sshll.u32 %s93_s13, 5  ;;  %s106_s27 = sshrl.u32 %s546_s22, 3 }
  0x7a   :  { %s96_s12 = sadd.s32 %s565_s18, %s94_s14  ;;  %s107_s15 = sand.u32 7, %s546_s22  }
  0x7b   :  { %s566_s4 = sshll.u32 %s96_s12, 4  ;;  %s567_s20 = sshll.u32 %s106_s27, 5 }
  0x7c   :  { %s98_s29 = scalar_lea.hbm %s1483_s2, %s566_s4  ;;  %s109_s30 = sadd.s32 %s567_s20, %s107_s15 }
  0x7d   :  { %s728_s6 = scalar_lea.hbm %s98_s29, 64  ;;  %p731_p12 = scmp.lt.u32.totalorder %s98_s29, %s1483_s2 }
  0x7e   :  { %p729_p11 = scmp.ne.s32.totalorder %s98_s29, %s728_s6  ;;  %p732_p13 = scmp.lt.u32.totalorder %s1109_s23, %s728_s6 }
  0x7f   :  { %p734_p1 = scmp.lt.u32.totalorder %s728_s6, %s98_s29 }
  0x80   :  { %p733_p0 = por %p732_p13, %p731_p12 }
  0x82   :  { %p735_p2 = por %p734_p1, %p733_p0 }
  0x84   :  { %p736_p3 = pnand %p735_p2, %p729_p11 }
  0x86   :  { %739 = shalt.err (!%p736_p3)  }
  0x87   :  { %s740_s16 = scalar_lea.vmem %s1181_s24, 64  ;;  %p745_p5 = scmp.lt.s32.totalorder %s1181_s24, %s1083_s21 }
  0x88   :  { %p741_p4 = scmp.ne.s32.totalorder %s1181_s24, %s740_s16  ;;  %p746_p6 = scmp.lt.s32.totalorder %s1118_s25, %s740_s16 }
  0x8a   :  { %p747_p7 = por %p746_p6, %p745_p5 }
  0x8c   :  { %p748_p8 = pnand %p747_p7, %p741_p4 }
  0x8e   :  { %751 = shalt.err (!%p748_p8)  }
  0x8f   :  { %105 = dma.hbm_to_vmem [thread:$0]  %s98_s29, 64, %s1181_s24, [#allocation2 + $0x4], %s1051_s17, %s1051_s17, %s1053_s28 }
  0x90   :  { %s568_s22 = sshll.u32 %s109_s30, 4  ;;  %s119_s9 = sshrl.u32 %s1186_s5, 3 }
  0x91   :  { %s111_s18 = scalar_lea.hbm %s1483_s2, %s568_s22  ;;  %s120_s27 = sand.u32 7, %s1186_s5  }
  0x92   :  { %s752_s12 = scalar_lea.hbm %s111_s18, 64  ;;  %p755_p10 = scmp.lt.u32.totalorder %s111_s18, %s1483_s2 }
  0x93   :  { %p753_p9 = scmp.ne.s32.totalorder %s111_s18, %s752_s12  ;;  %p756_p11 = scmp.lt.u32.totalorder %s1109_s23, %s752_s12 }
  0x94   :  { %p758_p13 = scmp.lt.u32.totalorder %s752_s12, %s111_s18 }
  0x95   :  { %p757_p12 = por %p756_p11, %p755_p10 }
  0x97   :  { %p759_p0 = por %p758_p13, %p757_p12 }
  0x99   :  { %p760_p1 = pnand %p759_p0, %p753_p9 }
  0x9b   :  { %763 = shalt.err (!%p760_p1)  }
  0x9c   :  { %s764_s24 = scalar_lea.vmem %s1188_s26, 64  ;;  %p769_p3 = scmp.lt.s32.totalorder %s1188_s26, %s1083_s21 }
  0x9d   :  { %p765_p2 = scmp.ne.s32.totalorder %s1188_s26, %s764_s24  ;;  %p770_p4 = scmp.lt.s32.totalorder %s1118_s25, %s764_s24 }
  0x9f   :  { %p771_p5 = por %p770_p4, %p769_p3 }
  0xa1   :  { %p772_p6 = pnand %p771_p5, %p765_p2 }
  0xa3   :  { %775 = shalt.err (!%p772_p6)  }
  0xa4   :  { %118 = dma.hbm_to_vmem [thread:$0]  %s111_s18, 64, %s1188_s26, [#allocation2 + $0x5], %s1051_s17, %s1051_s17, %s1053_s28 }
  0xa5   :  { %s569_s5 = sshll.u32 %s119_s9, 5  ;;  %s132_s0 = sshrl.u32 %s1195_s11, 3 }
  0xa6   :  { %s122_s20 = sadd.s32 %s569_s5, %s120_s27  ;;  %s133_s29 = sand.u32 7, %s1195_s11  }
  0xa7   :  { %s570_s19 = sshll.u32 %s122_s20, 4  ;;  %s571_s8 = sshll.u32 %s132_s0, 5 }
  0xa8   :  { %s124_s7 = scalar_lea.hbm %s1483_s2, %s570_s19 }
  0xa9   :  { %s776_s16 = scalar_lea.hbm %s124_s7, 64  ;;  %p779_p8 = scmp.lt.u32.totalorder %s124_s7, %s1483_s2 }
  0xaa   :  { %p777_p7 = scmp.ne.s32.totalorder %s124_s7, %s776_s16  ;;  %p780_p9 = scmp.lt.u32.totalorder %s1109_s23, %s776_s16 }
  0xab   :  { %p782_p11 = scmp.lt.u32.totalorder %s776_s16, %s124_s7 }
  0xac   :  { %p781_p10 = por %p780_p9, %p779_p8 }
  0xae   :  { %p783_p12 = por %p782_p11, %p781_p10 }
  0xb0   :  { %p784_p13 = pnand %p783_p12, %p777_p7 }
  0xb2   :  { %787 = shalt.err (!%p784_p13)  }
  0xb3   :  { %s788_s26 = scalar_lea.vmem %s129_s10, 64  ;;  %p793_p1 = scmp.lt.s32.totalorder %s129_s10, %s1083_s21 }
  0xb4   :  { %p789_p0 = scmp.ne.s32.totalorder %s129_s10, %s788_s26  ;;  %p794_p2 = scmp.lt.s32.totalorder %s1118_s25, %s788_s26 }
  0xb6   :  { %p795_p3 = por %p794_p2, %p793_p1 }
  0xb8   :  { %p796_p4 = pnand %p795_p3, %p789_p0 }
  0xba   :  { %799 = shalt.err (!%p796_p4)  }
  0xbb   :  { %131 = dma.hbm_to_vmem [thread:$0]  %s124_s7, 64, %s129_s10, [#allocation2 + $0x6], %s1051_s17, %s1051_s17, %s1053_s28 }
  0xbc   :  { %s135_s11 = sadd.s32 %s571_s8, %s133_s29  ;;  %s138_s18 = scalar_lea.vmem %s1484_s3, 7 }
  0xbd   :  { %s572_s27 = sshll.u32 %s135_s11, 4  ;;  %s141_s12 = sshll.u32 %s138_s18, 4  ;;  %s142_s12 = int_to_ptr.vmem [resolvable:$true] %s141_s12 }
  0xbe   :  { %s137_s24 = scalar_lea.hbm %s1483_s2, %s572_s27 }
  0xbf   :  { %s800_s5 = scalar_lea.hbm %s137_s24, 64  ;;  %p803_p6 = scmp.lt.u32.totalorder %s137_s24, %s1483_s2 }
  0xc0   :  { %p801_p5 = scmp.ne.s32.totalorder %s137_s24, %s800_s5  ;;  %p804_p7 = scmp.lt.u32.totalorder %s1109_s23, %s800_s5 }
  0xc1   :  { %p806_p9 = scmp.lt.u32.totalorder %s800_s5, %s137_s24 }
  0xc2   :  { %p805_p8 = por %p804_p7, %p803_p6 }
  0xc4   :  { %p807_p10 = por %p806_p9, %p805_p8 }
  0xc6   :  { %p808_p11 = pnand %p807_p10, %p801_p5 }
  0xc8   :  { %811 = shalt.err (!%p808_p11)  }
  0xc9   :  { %s812_s10 = scalar_lea.vmem %s142_s12, 64  ;;  %p817_p13 = scmp.lt.s32.totalorder %s142_s12, %s1083_s21 }
  0xca   :  { %p813_p12 = scmp.ne.s32.totalorder %s142_s12, %s812_s10  ;;  %p818_p0 = scmp.lt.s32.totalorder %s1118_s25, %s812_s10 }
  0xcc   :  { %p819_p1 = por %p818_p0, %p817_p13 }
  0xce   :  { %p820_p2 = pnand %p819_p1, %p813_p12 }
  0xd0   :  { %823 = shalt.err (!%p820_p2)  }
  0xd1   :  { %144 = dma.hbm_to_vmem [thread:$0]  %s137_s24, 64, %s142_s12, [#allocation2 + $0x7], %s1051_s17, %s1051_s17, %s1053_s28 }
  0xd2   :  { %s549_s19 = sld [smem:[#allocation3 + $0x400]]  ;;  %s151_s6 = scalar_lea.vmem %s1484_s3, 32 }
  0xd3   :  { %s154_s7 = sshll.u32 %s151_s6, 4  ;;  %s550_s8 = sld [smem:[#allocation3 + $0x480]]  ;;  %s1264_s7 = int_to_ptr.vmem [resolvable:$true] %s154_s7 }
  0xd4   :  { %s164_s13 = scalar_lea.vmem %s1484_s3, 33  ;;  %s1269_s11 = sld [smem:[#allocation3 + $0x500]] }
  0xd5   :  { %s167_s26 = sshll.u32 %s164_s13, 4  ;;  %s177_s18 = scalar_lea.vmem %s1484_s3, 34  ;;  %s1271_s26 = int_to_ptr.vmem [resolvable:$true] %s167_s26 }
  0xd6   :  { %s1276_s27 = sshll.u32 %s177_s18, 4  ;;  %s1278_s12 = sld [smem:[#allocation3 + $0x580]]  ;;  %s181_s27 = int_to_ptr.vmem [resolvable:$true] %s1276_s27 }
  0xd8   :  { %s145_s15 = sshrl.u32 %s549_s19, 3  ;;  %s146_s4 = sand.u32 7, %s549_s19  }
  0xd9   :  { %s573_s24 = sshll.u32 %s145_s15, 5  ;;  %s158_s5 = sshrl.u32 %s550_s8, 3 }
  0xda   :  { %s148_s20 = sadd.s32 %s573_s24, %s146_s4  ;;  %s159_s0 = sand.u32 7, %s550_s8  }
  0xdb   :  { %s574_s10 = sshll.u32 %s148_s20, 4  ;;  %s575_s29 = sshll.u32 %s158_s5, 5 }
  0xdc   :  { %s150_s16 = scalar_lea.hbm %s1483_s2, %s574_s10  ;;  %s161_s22 = sadd.s32 %s575_s29, %s159_s0 }
  0xdd   :  { %s824_s13 = scalar_lea.hbm %s150_s16, 64  ;;  %p827_p4 = scmp.lt.u32.totalorder %s150_s16, %s1483_s2 }
  0xde   :  { %p825_p3 = scmp.ne.s32.totalorder %s150_s16, %s824_s13  ;;  %p828_p5 = scmp.lt.u32.totalorder %s1109_s23, %s824_s13 }
  0xdf   :  { %p830_p7 = scmp.lt.u32.totalorder %s824_s13, %s150_s16 }
  0xe0   :  { %p829_p6 = por %p828_p5, %p827_p4 }
  0xe2   :  { %p831_p8 = por %p830_p7, %p829_p6 }
  0xe4   :  { %p832_p9 = pnand %p831_p8, %p825_p3 }
  0xe6   :  { %835 = shalt.err (!%p832_p9)  }
  0xe7   :  { %s836_s19 = scalar_lea.vmem %s1264_s7, 64  ;;  %p841_p11 = scmp.lt.s32.totalorder %s1264_s7, %s1083_s21 }
  0xe8   :  { %p837_p10 = scmp.ne.s32.totalorder %s1264_s7, %s836_s19  ;;  %p842_p12 = scmp.lt.s32.totalorder %s1118_s25, %s836_s19 }
  0xea   :  { %p843_p13 = por %p842_p12, %p841_p11 }
  0xec   :  { %p844_p0 = pnand %p843_p13, %p837_p10 }
  0xee   :  { %847 = shalt.err (!%p844_p0)  }
  0xef   :  { %157 = dma.hbm_to_vmem [thread:$0]  %s150_s16, 64, %s1264_s7, [#allocation2 + $0x8], %s1051_s17, %s1051_s17, %s1053_s28 }
  0xf0   :  { %s576_s8 = sshll.u32 %s161_s22, 4  ;;  %s171_s18 = sshrl.u32 %s1269_s11, 3 }
  0xf1   :  { %s163_s24 = scalar_lea.hbm %s1483_s2, %s576_s8  ;;  %s172_s5 = sand.u32 7, %s1269_s11  }
  0xf2   :  { %s848_s20 = scalar_lea.hbm %s163_s24, 64  ;;  %p851_p2 = scmp.lt.u32.totalorder %s163_s24, %s1483_s2 }
  0xf3   :  { %p849_p1 = scmp.ne.s32.totalorder %s163_s24, %s848_s20  ;;  %p852_p3 = scmp.lt.u32.totalorder %s1109_s23, %s848_s20 }
  0xf4   :  { %p854_p5 = scmp.lt.u32.totalorder %s848_s20, %s163_s24 }
  0xf5   :  { %p853_p4 = por %p852_p3, %p851_p2 }
  0xf7   :  { %p855_p6 = por %p854_p5, %p853_p4 }
  0xf9   :  { %p856_p7 = pnand %p855_p6, %p849_p1 }
  0xfb   :  { %859 = shalt.err (!%p856_p7)  }
  0xfc   :  { %s860_s7 = scalar_lea.vmem %s1271_s26, 64  ;;  %p865_p9 = scmp.lt.s32.totalorder %s1271_s26, %s1083_s21 }
  0xfd   :  { %p861_p8 = scmp.ne.s32.totalorder %s1271_s26, %s860_s7  ;;  %p866_p10 = scmp.lt.s32.totalorder %s1118_s25, %s860_s7 }
  0xff   :  { %p867_p11 = por %p866_p10, %p865_p9 }
 0x101   :  { %p868_p12 = pnand %p867_p11, %p861_p8 }
 0x103   :  { %871 = shalt.err (!%p868_p12)  }
 0x104   :  { %170 = dma.hbm_to_vmem [thread:$0]  %s163_s24, 64, %s1271_s26, [#allocation2 + $0x9], %s1051_s17, %s1051_s17, %s1053_s28 }
 0x105   :  { %s577_s11 = sshll.u32 %s171_s18, 5  ;;  %s184_s30 = sshrl.u32 %s1278_s12, 3 }
 0x106   :  { %s174_s29 = sadd.s32 %s577_s11, %s172_s5  ;;  %s185_s16 = sand.u32 7, %s1278_s12  }
 0x107   :  { %s578_s6 = sshll.u32 %s174_s29, 4  ;;  %s579_s14 = sshll.u32 %s184_s30, 5 }
 0x108   :  { %s176_s9 = scalar_lea.hbm %s1483_s2, %s578_s6 }
 0x109   :  { %s872_s19 = scalar_lea.hbm %s176_s9, 64  ;;  %p875_p0 = scmp.lt.u32.totalorder %s176_s9, %s1483_s2 }
 0x10a   :  { %p873_p13 = scmp.ne.s32.totalorder %s176_s9, %s872_s19  ;;  %p876_p1 = scmp.lt.u32.totalorder %s1109_s23, %s872_s19 }
 0x10b   :  { %p878_p3 = scmp.lt.u32.totalorder %s872_s19, %s176_s9 }
 0x10c   :  { %p877_p2 = por %p876_p1, %p875_p0 }
 0x10e   :  { %p879_p4 = por %p878_p3, %p877_p2 }
 0x110   :  { %p880_p5 = pnand %p879_p4, %p873_p13 }
 0x112   :  { %883 = shalt.err (!%p880_p5)  }
 0x113   :  { %s884_s26 = scalar_lea.vmem %s181_s27, 64  ;;  %p889_p7 = scmp.lt.s32.totalorder %s181_s27, %s1083_s21 }
 0x114   :  { %p885_p6 = scmp.ne.s32.totalorder %s181_s27, %s884_s26  ;;  %p890_p8 = scmp.lt.s32.totalorder %s1118_s25, %s884_s26 }
 0x116   :  { %p891_p9 = por %p890_p8, %p889_p7 }
 0x118   :  { %p892_p10 = pnand %p891_p9, %p885_p6 }
 0x11a   :  { %895 = shalt.err (!%p892_p10)  }
 0x11b   :  { %183 = dma.hbm_to_vmem [thread:$0]  %s176_s9, 64, %s181_s27, [#allocation2 + $0xa], %s1051_s17, %s1051_s17, %s1053_s28 }
 0x11c   :  { %s187_s12 = sadd.s32 %s579_s14, %s185_s16  ;;  %s190_s24 = scalar_lea.vmem %s1484_s3, 35 }
 0x11d   :  { %s580_s5 = sshll.u32 %s187_s12, 4  ;;  %s193_s20 = sshll.u32 %s190_s24, 4  ;;  %s194_s20 = int_to_ptr.vmem [resolvable:$true] %s193_s20 }
 0x11e   :  { %s189_s7 = scalar_lea.hbm %s1483_s2, %s580_s5 }
 0x11f   :  { %s896_s11 = scalar_lea.hbm %s189_s7, 64  ;;  %p899_p12 = scmp.lt.u32.totalorder %s189_s7, %s1483_s2 }
 0x120   :  { %p897_p11 = scmp.ne.s32.totalorder %s189_s7, %s896_s11  ;;  %p900_p13 = scmp.lt.u32.totalorder %s1109_s23, %s896_s11 }
 0x121   :  { %p902_p1 = scmp.lt.u32.totalorder %s896_s11, %s189_s7 }
 0x122   :  { %p901_p0 = por %p900_p13, %p899_p12 }
 0x124   :  { %p903_p2 = por %p902_p1, %p901_p0 }
 0x126   :  { %p904_p3 = pnand %p903_p2, %p897_p11 }
 0x128   :  { %907 = shalt.err (!%p904_p3)  }
 0x129   :  { %s908_s27 = scalar_lea.vmem %s194_s20, 64  ;;  %p913_p5 = scmp.lt.s32.totalorder %s194_s20, %s1083_s21 }
 0x12a   :  { %p909_p4 = scmp.ne.s32.totalorder %s194_s20, %s908_s27  ;;  %p914_p6 = scmp.lt.s32.totalorder %s1118_s25, %s908_s27 }
 0x12c   :  { %p915_p7 = por %p914_p6, %p913_p5 }
 0x12e   :  { %p916_p8 = pnand %p915_p7, %p909_p4 }
 0x130   :  { %919 = shalt.err (!%p916_p8)  }
 0x131   :  { %196 = dma.hbm_to_vmem [thread:$0]  %s189_s7, 64, %s194_s20, [#allocation2 + $0xb], %s1051_s17, %s1051_s17, %s1053_s28 }
 0x132   :  { %s553_s6 = sld [smem:[#allocation3 + $0x600]]  ;;  %s203_s13 = scalar_lea.vmem %s1484_s3, 36 }
 0x133   :  { %s206_s9 = sshll.u32 %s203_s13, 4  ;;  %s554_s14 = sld [smem:[#allocation3 + $0x680]]  ;;  %s1347_s9 = int_to_ptr.vmem [resolvable:$true] %s206_s9 }
 0x134   :  { %s216_s15 = scalar_lea.vmem %s1484_s3, 37  ;;  %s1352_s12 = sld [smem:[#allocation3 + $0x700]] }
 0x135   :  { %s219_s26 = sshll.u32 %s216_s15, 4  ;;  %s229_s24 = scalar_lea.vmem %s1484_s3, 38  ;;  %s1354_s26 = int_to_ptr.vmem [resolvable:$true] %s219_s26 }
 0x136   :  { %s1359_s5 = sshll.u32 %s229_s24, 4  ;;  %s1361_s20 = sld [smem:[#allocation3 + $0x780]]  ;;  %s233_s5 = int_to_ptr.vmem [resolvable:$true] %s1359_s5 }
 0x138   :  { %s197_s0 = sshrl.u32 %s553_s6, 3  ;;  %s198_s10 = sand.u32 7, %s553_s6  }
 0x139   :  { %s581_s7 = sshll.u32 %s197_s0, 5  ;;  %s210_s11 = sshrl.u32 %s554_s14, 3 }
 0x13a   :  { %s200_s29 = sadd.s32 %s581_s7, %s198_s10  ;;  %s211_s30 = sand.u32 7, %s554_s14  }
 0x13b   :  { %s582_s27 = sshll.u32 %s200_s29, 4  ;;  %s583_s16 = sshll.u32 %s210_s11, 5 }
 0x13c   :  { %s202_s19 = scalar_lea.hbm %s1483_s2, %s582_s27  ;;  %s213_s8 = sadd.s32 %s583_s16, %s211_s30 }
 0x13d   :  { %s920_s15 = scalar_lea.hbm %s202_s19, 64  ;;  %p923_p10 = scmp.lt.u32.totalorder %s202_s19, %s1483_s2 }
 0x13e   :  { %p921_p9 = scmp.ne.s32.totalorder %s202_s19, %s920_s15  ;;  %p924_p11 = scmp.lt.u32.totalorder %s1109_s23, %s920_s15 }
 0x13f   :  { %p926_p13 = scmp.lt.u32.totalorder %s920_s15, %s202_s19 }
 0x140   :  { %p925_p12 = por %p924_p11, %p923_p10 }
 0x142   :  { %p927_p0 = por %p926_p13, %p925_p12 }
 0x144   :  { %p928_p1 = pnand %p927_p0, %p921_p9 }
 0x146   :  { %931 = shalt.err (!%p928_p1)  }
 0x147   :  { %s932_s6 = scalar_lea.vmem %s1347_s9, 64  ;;  %p937_p3 = scmp.lt.s32.totalorder %s1347_s9, %s1083_s21 }
 0x148   :  { %p933_p2 = scmp.ne.s32.totalorder %s1347_s9, %s932_s6  ;;  %p938_p4 = scmp.lt.s32.totalorder %s1118_s25, %s932_s6 }
 0x14a   :  { %p939_p5 = por %p938_p4, %p937_p3 }
 0x14c   :  { %p940_p6 = pnand %p939_p5, %p933_p2 }
 0x14e   :  { %943 = shalt.err (!%p940_p6)  }
 0x14f   :  { %209 = dma.hbm_to_vmem [thread:$0]  %s202_s19, 64, %s1347_s9, [#allocation2 + $0xc], %s1051_s17, %s1051_s17, %s1053_s28 }
 0x150   :  { %s584_s14 = sshll.u32 %s213_s8, 4  ;;  %s223_s24 = sshrl.u32 %s1352_s12, 3 }
 0x151   :  { %s215_s7 = scalar_lea.hbm %s1483_s2, %s584_s14  ;;  %s224_s11 = sand.u32 7, %s1352_s12  }
 0x152   :  { %s944_s29 = scalar_lea.hbm %s215_s7, 64  ;;  %p947_p8 = scmp.lt.u32.totalorder %s215_s7, %s1483_s2 }
 0x153   :  { %p945_p7 = scmp.ne.s32.totalorder %s215_s7, %s944_s29  ;;  %p948_p9 = scmp.lt.u32.totalorder %s1109_s23, %s944_s29 }
 0x154   :  { %p950_p11 = scmp.lt.u32.totalorder %s944_s29, %s215_s7 }
 0x155   :  { %p949_p10 = por %p948_p9, %p947_p8 }
 0x157   :  { %p951_p12 = por %p950_p11, %p949_p10 }
 0x159   :  { %p952_p13 = pnand %p951_p12, %p945_p7 }
 0x15b   :  { %955 = shalt.err (!%p952_p13)  }
 0x15c   :  { %s956_s9 = scalar_lea.vmem %s1354_s26, 64  ;;  %p961_p1 = scmp.lt.s32.totalorder %s1354_s26, %s1083_s21 }
 0x15d   :  { %p957_p0 = scmp.ne.s32.totalorder %s1354_s26, %s956_s9  ;;  %p962_p2 = scmp.lt.s32.totalorder %s1118_s25, %s956_s9 }
 0x15f   :  { %p963_p3 = por %p962_p2, %p961_p1 }
 0x161   :  { %p964_p4 = pnand %p963_p3, %p957_p0 }
 0x163   :  { %967 = shalt.err (!%p964_p4)  }
 0x164   :  { %222 = dma.hbm_to_vmem [thread:$0]  %s215_s7, 64, %s1354_s26, [#allocation2 + $0xd], %s1051_s17, %s1051_s17, %s1053_s28 }
 0x165   :  { %s585_s12 = sshll.u32 %s223_s24, 5  ;;  %s236_s22 = sshrl.u32 %s1361_s20, 3 }
 0x166   :  { %s226_s16 = sadd.s32 %s585_s12, %s224_s11  ;;  %s237_s19 = sand.u32 7, %s1361_s20  }
 0x167   :  { %s586_s13 = sshll.u32 %s226_s16, 4  ;;  %s587_s4 = sshll.u32 %s236_s22, 5 }
 0x168   :  { %s228_s18 = scalar_lea.hbm %s1483_s2, %s586_s13 }
 0x169   :  { %s968_s6 = scalar_lea.hbm %s228_s18, 64  ;;  %p971_p6 = scmp.lt.u32.totalorder %s228_s18, %s1483_s2 }
 0x16a   :  { %p969_p5 = scmp.ne.s32.totalorder %s228_s18, %s968_s6  ;;  %p972_p7 = scmp.lt.u32.totalorder %s1109_s23, %s968_s6 }
 0x16b   :  { %p974_p9 = scmp.lt.u32.totalorder %s968_s6, %s228_s18 }
 0x16c   :  { %p973_p8 = por %p972_p7, %p971_p6 }
 0x16e   :  { %p975_p10 = por %p974_p9, %p973_p8 }
 0x170   :  { %p976_p11 = pnand %p975_p10, %p969_p5 }
 0x172   :  { %979 = shalt.err (!%p976_p11)  }
 0x173   :  { %s980_s26 = scalar_lea.vmem %s233_s5, 64  ;;  %p985_p13 = scmp.lt.s32.totalorder %s233_s5, %s1083_s21 }
 0x174   :  { %p981_p12 = scmp.ne.s32.totalorder %s233_s5, %s980_s26  ;;  %p986_p0 = scmp.lt.s32.totalorder %s1118_s25, %s980_s26 }
 0x176   :  { %p987_p1 = por %p986_p0, %p985_p13 }
 0x178   :  { %p988_p2 = pnand %p987_p1, %p981_p12 }
 0x17a   :  { %991 = shalt.err (!%p988_p2)  }
 0x17b   :  { %235 = dma.hbm_to_vmem [thread:$0]  %s228_s18, 64, %s233_s5, [#allocation2 + $0xe], %s1051_s17, %s1051_s17, %s1053_s28 }
 0x17c   :  { %s239_s20 = sadd.s32 %s587_s4, %s237_s19  ;;  %s242_s7 = scalar_lea.vmem %s1484_s3, 39 }
 0x17d   :  { %s588_s11 = sshll.u32 %s239_s20, 4  ;;  %s245_s29 = sshll.u32 %s242_s7, 4  ;;  %s246_s29 = int_to_ptr.vmem [resolvable:$true] %s245_s29 }
 0x17e   :  { %s241_s9 = scalar_lea.hbm %s1483_s2, %s588_s11 }
 0x17f   :  { %s992_s12 = scalar_lea.hbm %s241_s9, 64  ;;  %p995_p4 = scmp.lt.u32.totalorder %s241_s9, %s1483_s2 }
 0x180   :  { %p993_p3 = scmp.ne.s32.totalorder %s241_s9, %s992_s12  ;;  %p996_p5 = scmp.lt.u32.totalorder %s1109_s23, %s992_s12 }
 0x181   :  { %p998_p7 = scmp.lt.u32.totalorder %s992_s12, %s241_s9 }
 0x182   :  { %p997_p6 = por %p996_p5, %p995_p4 }
 0x184   :  { %p999_p8 = por %p998_p7, %p997_p6 }
 0x186   :  { %p1000_p9 = pnand %p999_p8, %p993_p3 }
 0x188   :  { %1003 = shalt.err (!%p1000_p9)  }
 0x189   :  { %s1004_s5 = scalar_lea.vmem %s246_s29, 64  ;;  %p1009_p11 = scmp.lt.s32.totalorder %s246_s29, %s1083_s21 }
 0x18a   :  { %p1005_p10 = scmp.ne.s32.totalorder %s246_s29, %s1004_s5  ;;  %p1010_p12 = scmp.lt.s32.totalorder %s1118_s25, %s1004_s5 }
 0x18c   :  { %p1011_p13 = por %p1010_p12, %p1009_p11 }
 0x18e   :  { %p1012_p0 = pnand %p1011_p13, %p1005_p10 }
 0x190   :  { %1015 = shalt.err (!%p1012_p0)  }
 0x191   :  { %248 = dma.hbm_to_vmem [thread:$0]  %s241_s9, 64, %s246_s29, [#allocation2 + $0xf], %s1051_s17, %s1051_s17, %s1053_s28 }
 0x192   :  { %1018 = dma.done.wait [#allocation2], 64 }
 0x193   :  { %1019 = vsyncadd [#allocation2], 4294967232 }
 0x194   :  { %1020 = dma.done.wait [#allocation2 + $0x1], 64 }
 0x195   :  { %1021 = vsyncadd [#allocation2 + $0x1], 4294967232 }
 0x196   :  { %1022 = dma.done.wait [#allocation2 + $0x2], 64 }
 0x197   :  { %1023 = vsyncadd [#allocation2 + $0x2], 4294967232 }
 0x198   :  { %1024 = dma.done.wait [#allocation2 + $0x3], 64 }
 0x199   :  { %1025 = vsyncadd [#allocation2 + $0x3], 4294967232 }
 0x19a   :  { %1026 = dma.done.wait [#allocation2 + $0x4], 64 }
 0x19b   :  { %1027 = vsyncadd [#allocation2 + $0x4], 4294967232 }
 0x19c   :  { %1028 = dma.done.wait [#allocation2 + $0x5], 64 }
 0x19d   :  { %1029 = vsyncadd [#allocation2 + $0x5], 4294967232 }
 0x19e   :  { %1030 = dma.done.wait [#allocation2 + $0x6], 64 }
 0x19f   :  { %1031 = vsyncadd [#allocation2 + $0x6], 4294967232 }
 0x1a0   :  { %1032 = dma.done.wait [#allocation2 + $0x7], 64 }
 0x1a1   :  { %1033 = vsyncadd [#allocation2 + $0x7], 4294967232 }
 0x1a2   :  { %1034 = dma.done.wait [#allocation2 + $0x8], 64 }
 0x1a3   :  { %1035 = vsyncadd [#allocation2 + $0x8], 4294967232 }
 0x1a4   :  { %1036 = dma.done.wait [#allocation2 + $0x9], 64 }
 0x1a5   :  { %1037 = vsyncadd [#allocation2 + $0x9], 4294967232 }
 0x1a6   :  { %1038 = dma.done.wait [#allocation2 + $0xa], 64 }
 0x1a7   :  { %1039 = vsyncadd [#allocation2 + $0xa], 4294967232 }
 0x1a8   :  { %1040 = dma.done.wait [#allocation2 + $0xb], 64 }
 0x1a9   :  { %1041 = vsyncadd [#allocation2 + $0xb], 4294967232 }
 0x1aa   :  { %1042 = dma.done.wait [#allocation2 + $0xc], 64 }
 0x1ab   :  { %1043 = vsyncadd [#allocation2 + $0xc], 4294967232 }
 0x1ac   :  { %1044 = dma.done.wait [#allocation2 + $0xd], 64 }
 0x1ad   :  { %1045 = vsyncadd [#allocation2 + $0xd], 4294967232 }
 0x1ae   :  { %1046 = dma.done.wait [#allocation2 + $0xe], 64 }
 0x1af   :  { %1047 = vsyncadd [#allocation2 + $0xe], 4294967232 }
 0x1b0   :  { %1048 = dma.done.wait [#allocation2 + $0xf], 64 }
 0x1b1   :  { %1049 = vsyncadd [#allocation2 + $0xf], 4294967232  ;;  %v1054_v0 = vmov 0   ;;  %v282_v1 = vld [vmem:[%s1484_s3] sm:$0xff]  ;;  %v283_v2 = vld [vmem:[%s1484_s3 + $0x8] sm:$0xff] }
 0x1b2   :  { %610 = vset.pattern.permute.xlu1 %v1054_v0  ;;  %611 = vset.pattern.permute.xlu0 %v1054_v0  ;;  %v284_v3 = vld [vmem:[%s1484_s3 + $0x10] sm:$0xff]  ;;  %v285_v4 = vld [vmem:[%s1484_s3 + $0x18] sm:$0xff]  ;;  %v290_v5 = vmul.f32 %v282_v1, %v282_v1  ;;  %v291_v6 = vmul.f32 %v283_v2, %v283_v2  ;;  %v286_v8 = vld [vmem:[%s1484_s3 + $0x20] sm:$0xff] }
 0x1b3   :  { %v292_v7 = vmul.f32 %v284_v3, %v284_v3  ;;  %v287_v9 = vld [vmem:[%s1484_s3 + $0x28] sm:$0xff]  ;;  %v288_v10 = vld [vmem:[%s1484_s3 + $0x30] sm:$0xff]  ;;  %v289_v11 = vld [vmem:[%s1484_s3 + $0x38] sm:$0xff]  ;;  %v294_v12 = vmul.f32 %v286_v8, %v286_v8  ;;  %v293_v15 = vmul.f32 %v285_v4, %v285_v4 }
 0x1b4   :  { %v295_v13 = vmul.f32 %v287_v9, %v287_v9  ;;  %v334_v14 = vld [vmem:[%s1482_s1] sm:$0xff]  ;;  %v298_v16 = vadd.f32 %v291_v6, %v290_v5  ;;  %v296_v17 = vmul.f32 %v288_v10, %v288_v10  ;;  %v335_v19 = vld [vmem:[%s1482_s1 + $0x8] sm:$0xff]  ;;  %v297_v21 = vmul.f32 %v289_v11, %v289_v11 }
 0x1b5   :  { %338 = vperm.xlu1 %610, %v334_v14  }
 0x1b6   :  { %v303_v18 = vadd.f32 %v295_v13, %v294_v12  ;;  %v299_v20 = vadd.f32 %v298_v16, %v292_v7 }
 0x1b8   :  { %v304_v22 = vadd.f32 %v303_v18, %v296_v17  ;;  %v300_v23 = vadd.f32 %v299_v20, %v293_v15 }
 0x1b9   :  { %343 = vperm.xlu1 %610, %v335_v19  }
 0x1ba   :  { %301 = vadd.xlane.f32.xlu0 %v300_v23  ;;  %v305_v24 = vadd.f32 %v304_v22, %v297_v21 }
 0x1be   :  { %306 = vadd.xlane.f32.xlu0 %v305_v24 }
 0x234   :  { %v339_v40 = vpop.permute.xlu1 %338 }
 0x238   :  { %v344_v54 = vpop.permute.xlu1 %343 }
 0x247   :  { %v302_v25 = vpop.xlane.xlu0 %301 }
 0x248   :  { %612 = vrsqrt.f32 %v302_v25  ;;  %vm310_vm0 = vcmp.eq.f32.partialorder %v302_v25, inf  ;;  %v313_v29 = vand.u32 2147483648, %v302_v25  ;;  %vm312_vm1 = vcmp.eq.f32.partialorder %v302_v25, 0.0 }
 0x24b   :  { %v307_v26 = vpop.xlane.xlu0 %306 }
 0x24c   :  { %614 = vrsqrt.f32 %v307_v26  ;;  %vm317_vm2 = vcmp.eq.f32.partialorder %v307_v26, inf  ;;  %v320_v35 = vand.u32 2147483648, %v307_v26  ;;  %vm319_vm3 = vcmp.eq.f32.partialorder %v307_v26, 0.0 }
 0x252   :  { %v613_v27 = vpop.eup %612 }
 0x253   :  { %v309_v28 = vmul.f32 %v613_v27, %v302_v25 }
 0x255   :  { %v311_v30 = vsel %vm310_vm0, %v302_v25, %v309_v28 }
 0x256   :  { %v615_v31 = vpop.eup %614  ;;  %v314_v32 = vsel %vm312_vm1, %v313_v29, %v311_v30 }
 0x257   :  { %v322_v33 = vadd.f32 1e-08, %v314_v32  ;;  %v316_v34 = vmul.f32 %v615_v31, %v307_v26 }
 0x259   :  { %616 = vrcp.f32 %v322_v33  ;;  %v318_v36 = vsel %vm317_vm2, %v307_v26, %v316_v34 }
 0x25a   :  { %v321_v37 = vsel %vm319_vm3, %v320_v35, %v318_v36 }
 0x25b   :  { %v323_v38 = vadd.f32 1e-08, %v321_v37 }
 0x25d   :  { %618 = vrcp.f32 %v323_v38 }
 0x263   :  { %v617_v39 = vpop.eup %616 }
 0x264   :  { %v325_v41 = vmul.f32 %v617_v39, %v282_v1  ;;  %v326_v42 = vmul.f32 %v617_v39, %v283_v2  ;;  %v327_v43 = vmul.f32 %v617_v39, %v284_v3  ;;  %v328_v44 = vmul.f32 %v617_v39, %v285_v4 }
 0x266   :  { %v346_v45 = vmul.f32 %v339_v40, %v325_v41  ;;  %v347_v46 = vmul.f32 %v339_v40, %v326_v42  ;;  %v348_v47 = vmul.f32 %v339_v40, %v327_v43  ;;  %v349_v48 = vmul.f32 %v339_v40, %v328_v44 }
 0x267   :  { %v619_v49 = vpop.eup %618 }
 0x268   :  { %354 = vst [vmem:[%s1484_s3] sm:$0xff] %v346_v45  ;;  %355 = vst [vmem:[%s1484_s3 + $0x8] sm:$0xff] %v347_v46  ;;  %v330_v50 = vmul.f32 %v619_v49, %v286_v8  ;;  %v331_v51 = vmul.f32 %v619_v49, %v287_v9  ;;  %v332_v52 = vmul.f32 %v619_v49, %v288_v10 }
 0x269   :  { %356 = vst [vmem:[%s1484_s3 + $0x10] sm:$0xff] %v348_v47  ;;  %357 = vst [vmem:[%s1484_s3 + $0x18] sm:$0xff] %v349_v48  ;;  %v333_v53 = vmul.f32 %v619_v49, %v289_v11 }
 0x26a   :  { %v350_v55 = vmul.f32 %v344_v54, %v330_v50  ;;  %v351_v56 = vmul.f32 %v344_v54, %v331_v51  ;;  %v352_v57 = vmul.f32 %v344_v54, %v332_v52 }
 0x26b   :  { %v353_v58 = vmul.f32 %v344_v54, %v333_v53 }
 0x26c   :  { %358 = vst [vmem:[%s1484_s3 + $0x20] sm:$0xff] %v350_v55  ;;  %359 = vst [vmem:[%s1484_s3 + $0x28] sm:$0xff] %v351_v56 }
 0x26d   :  { %360 = vst [vmem:[%s1484_s3 + $0x30] sm:$0xff] %v352_v57  ;;  %361 = vst [vmem:[%s1484_s3 + $0x38] sm:$0xff] %v353_v58 }
 0x26e   :  { %366 = vsyncpa [#allocation4], 1 }
 0x26f   :  { %367 = vsyncmov [#allocation2] }
 0x272   :  { %s368_s13 = vpop.sfrf %367 }
 0x273   :  { %p589_p1 = scmp.ne.s32.totalorder %s368_s13, 0 }
 0x275   :  { %372 = shalt.err (%p589_p1)  }
 0x276   :  { %374 = vsyncmov [#allocation2 + $0x1] }
 0x279   :  { %s375_s19 = vpop.sfrf %374 }
 0x27a   :  { %p590_p2 = scmp.ne.s32.totalorder %s375_s19, 0 }
 0x27c   :  { %379 = shalt.err (%p590_p2)  }
 0x27d   :  { %381 = vsyncmov [#allocation2 + $0x2] }
 0x280   :  { %s382_s8 = vpop.sfrf %381 }
 0x281   :  { %p591_p3 = scmp.ne.s32.totalorder %s382_s8, 0 }
 0x283   :  { %386 = shalt.err (%p591_p3)  }
 0x284   :  { %388 = vsyncmov [#allocation2 + $0x3] }
 0x287   :  { %s389_s15 = vpop.sfrf %388 }
 0x288   :  { %p592_p4 = scmp.ne.s32.totalorder %s389_s15, 0 }
 0x28a   :  { %393 = shalt.err (%p592_p4)  }
 0x28b   :  { %395 = vsyncmov [#allocation2 + $0x4] }
 0x28e   :  { %s396_s18 = vpop.sfrf %395 }
 0x28f   :  { %p593_p5 = scmp.ne.s32.totalorder %s396_s18, 0 }
 0x291   :  { %400 = shalt.err (%p593_p5)  }
 0x292   :  { %402 = vsyncmov [#allocation2 + $0x5] }
 0x295   :  { %s403_s3 = vpop.sfrf %402 }
 0x296   :  { %p594_p6 = scmp.ne.s32.totalorder %s403_s3, 0 }
 0x298   :  { %407 = shalt.err (%p594_p6)  }
 0x299   :  { %409 = vsyncmov [#allocation2 + $0x6] }
 0x29c   :  { %s410_s4 = vpop.sfrf %409 }
 0x29d   :  { %p595_p7 = scmp.ne.s32.totalorder %s410_s4, 0 }
 0x29f   :  { %414 = shalt.err (%p595_p7)  }
 0x2a0   :  { %416 = vsyncmov [#allocation2 + $0x7] }
 0x2a3   :  { %s417_s6 = vpop.sfrf %416 }
 0x2a4   :  { %p596_p8 = scmp.ne.s32.totalorder %s417_s6, 0 }
 0x2a6   :  { %421 = shalt.err (%p596_p8)  }
 0x2a7   :  { %423 = vsyncmov [#allocation2 + $0x8] }
 0x2aa   :  { %s424_s14 = vpop.sfrf %423 }
 0x2ab   :  { %p597_p9 = scmp.ne.s32.totalorder %s424_s14, 0 }
 0x2ad   :  { %428 = shalt.err (%p597_p9)  }
 0x2ae   :  { %430 = vsyncmov [#allocation2 + $0x9] }
 0x2b1   :  { %s431_s0 = vpop.sfrf %430 }
 0x2b2   :  { %p598_p10 = scmp.ne.s32.totalorder %s431_s0, 0 }
 0x2b4   :  { %435 = shalt.err (%p598_p10)  }
 0x2b5   :  { %437 = vsyncmov [#allocation2 + $0xa] }
 0x2b8   :  { %s438_s26 = vpop.sfrf %437 }
 0x2b9   :  { %p599_p11 = scmp.ne.s32.totalorder %s438_s26, 0 }
 0x2bb   :  { %442 = shalt.err (%p599_p11)  }
 0x2bc   :  { %444 = vsyncmov [#allocation2 + $0xb] }
 0x2bf   :  { %s445_s20 = vpop.sfrf %444 }
 0x2c0   :  { %p600_p12 = scmp.ne.s32.totalorder %s445_s20, 0 }
 0x2c2   :  { %449 = shalt.err (%p600_p12)  }
 0x2c3   :  { %451 = vsyncmov [#allocation2 + $0xc] }
 0x2c6   :  { %s452_s24 = vpop.sfrf %451 }
 0x2c7   :  { %p601_p13 = scmp.ne.s32.totalorder %s452_s24, 0 }
 0x2c9   :  { %456 = shalt.err (%p601_p13)  }
 0x2ca   :  { %458 = vsyncmov [#allocation2 + $0xd] }
 0x2cd   :  { %s459_s10 = vpop.sfrf %458 }
 0x2ce   :  { %p602_p0 = scmp.ne.s32.totalorder %s459_s10, 0 }
 0x2d0   :  { %463 = shalt.err (%p602_p0)  }
 0x2d1   :  { %465 = vsyncmov [#allocation2 + $0xe] }
 0x2d4   :  { %s466_s7 = vpop.sfrf %465 }
 0x2d5   :  { %p603_p1 = scmp.ne.s32.totalorder %s466_s7, 0 }
 0x2d7   :  { %470 = shalt.err (%p603_p1)  }
 0x2d8   :  { %472 = vsyncmov [#allocation2 + $0xf] }
 0x2db   :  { %s473_s1 = vpop.sfrf %472 }
 0x2dc   :  { %p604_p2 = scmp.ne.s32.totalorder %s473_s1, 0 }
 0x2de   :  { %477 = shalt.err (%p604_p2)  }

// kernel: leaf_forward.2
= control target key start
LH: loop header
LB: loop body
LE: loop exit
PB: predicated region body
PF: predicated region fallthrough
CT: control target
= control target key end

     0   :  { %s4611_s0 = inlined_call_operand.vmem [shape: f32[16,1], index: 0, kind: input, shape index: {}]   ;;  %s4612_s1 = inlined_call_operand.hbm [shape: f32[16,128], index: 1, kind: input, shape index: {}]   ;;  %s4613_s2 = inlined_call_operand.vmem [shape: f32[16,2048], index: 2, kind: input, shape index: {}]   ;;  %s4614_s3 = inlined_call_operand.vmem [shape: f32[128,256], index: 3, kind: input, shape index: {}]   ;;  %s4615_s4 = inlined_call_operand.vmem [shape: f32[1,256], index: 4, kind: input, shape index: {}]   ;;  %s4616_s5 = inlined_call_operand.vmem [shape: f32[256,256], index: 5, kind: input, shape index: {}]   ;;  %s4617_s6 = inlined_call_operand.vmem [shape: f32[1,256], index: 6, kind: input, shape index: {}]   ;;  %s4618_s7 = inlined_call_operand.vmem [shape: f32[256,128], index: 7, kind: input, shape index: {}]   ;;  %s4619_s8 = inlined_call_operand.vmem [shape: f32[1,128], index: 8, kind: input, shape index: {}]   ;;  %s4620_s9 = inlined_call_operand.hbm [shape: f32[128,128], index: 9, kind: input, shape index: {}]   ;;  %s4621_s10 = inlined_call_operand.hbm [shape: f32[1,128], index: 10, kind: input, shape index: {}]   ;;  %s4622_s11 = inlined_call_operand.hbm [shape: f32[128,128], index: 11, kind: input, shape index: {}]   ;;  %s4623_s12 = inlined_call_operand.hbm [shape: f32[1,128], index: 12, kind: input, shape index: {}]   ;;  %s4624_s13 = inlined_call_operand.hbm [shape: f32[128,2048], index: 13, kind: input, shape index: {}]   ;;  %s4625_s14 = inlined_call_operand.hbm [shape: f32[1,2048], index: 14, kind: input, shape index: {}]   ;;  %s4626_s15 = inlined_call_operand.hbm [shape: f32[16,1], index: 15, kind: output, shape index: {0}]   ;;  %s4627_s16 = inlined_call_operand.vmem [shape: f32[16,1], index: 16, kind: output, shape index: {1}]   ;;  %s4628_s17 = inlined_call_operand.vmem [shape: s32[16,1], index: 17, kind: output, shape index: {2}]  }
   0x1   :  { %4631 = sst [smem:[#allocation21_spill]] %s4611_s0 }
   0x2   :  { %4632 = sst [smem:[#allocation22_spill]] %s4612_s1 }
   0x3   :  { %23 = vsyncpa [#allocation4], 0 }
   0x4   :  { %24 = vsyncpa [#allocation7], 0 }
   0x5   :  { %25 = vsyncpa [#allocation10], 0 }
   0x6   :  { %26 = vsyncpa [#allocation13], 0 }
   0x7   :  { %27 = vsyncpa [#allocation5], 0  ;;  %s3285_s24 = smov [#allocation6]   ;;  %s3286_s26 = smov [#allocation9]  }
   0x8   :  { %s61_s25 = sshll.u32 %s3285_s24, 4  ;;  %s83_s27 = sshll.u32 %s3286_s26, 4  ;;  %s62_s25 = int_to_ptr.vmem [resolvable:$true] %s61_s25  ;;  %s3388_s27 = int_to_ptr.vmem [resolvable:$true] %s83_s27 }
   0x9   :  { %s3075_s0 = scalar_lea.hbm %s4620_s9, 2048 }
   0xa   :  { %p3076_p0 = scmp.ne.s32.totalorder %s4620_s9, %s3075_s0  ;;  %p3079_p1 = scmp.lt.u32.totalorder %s3075_s0, %s4620_s9 }
   0xc   :  { %p3081_p2 = pnand %p3079_p1, %p3076_p0 }
   0xe   :  { %3084 = shalt.err (!%p3081_p2)
}
   0xf   :  { %s3085_s20 = scalar_lea.vmem %s62_s25, 2048  ;;  %p3090_p4 = scmp.lt.s32.totalorder %s62_s25, %s62_s25 }
  0x10   :  { %p3086_p3 = scmp.ne.s32.totalorder %s62_s25, %s3085_s20  ;;  %p3091_p5 = scmp.lt.s32.totalorder %s3085_s20, %s3085_s20 }
  0x12   :  { %p3092_p6 = por %p3091_p5, %p3090_p4 }
  0x14   :  { %p3093_p7 = pnand %p3092_p6, %p3086_p3 }
  0x16   :  { %3096 = shalt.err (!%p3093_p7)
}
  0x17   :  { %s3287_s21 = smov 128   ;;  %s3288_s22 = smov 8  }
  0x18   :  { %67 = dma.hbm_to_vmem [thread:$0]  %s4620_s9, 2048, %s62_s25, [#allocation7], %s3287_s21, %s3287_s21, %s3288_s22  }
  0x19   :  { %s3097_s29 = scalar_lea.hbm %s4622_s11, 2048 }
  0x1a   :  { %p3098_p8 = scmp.ne.s32.totalorder %s4622_s11, %s3097_s29  ;;  %p3101_p9 = scmp.lt.u32.totalorder %s3097_s29, %s4622_s11 }
  0x1c   :  { %p3103_p10 = pnand %p3101_p9, %p3098_p8 }
  0x1e   :  { %3106 = shalt.err (!%p3103_p10)
}
  0x1f   :  { %s3107_s1 = scalar_lea.vmem %s3388_s27, 2048  ;;  %p3112_p12 = scmp.lt.s32.totalorder %s3388_s27, %s3388_s27 }
  0x20   :  { %p3108_p11 = scmp.ne.s32.totalorder %s3388_s27, %s3107_s1  ;;  %p3113_p13 = scmp.lt.s32.totalorder %s3107_s1, %s3107_s1 }
  0x22   :  { %p3114_p0 = por %p3113_p13, %p3112_p12 }
  0x24   :  { %p3115_p1 = pnand %p3114_p0, %p3108_p11 }
  0x26   :  { %3118 = shalt.err (!%p3115_p1)
}
  0x27   :  { %89 = dma.hbm_to_vmem [thread:$0]  %s4622_s11, 2048, %s3388_s27, [#allocation10], %s3287_s21, %s3287_s21, %s3288_s22  }
  0x28   :  { %s3289_s20 = smov [#allocation12]   ;;  %s3290_s24 = smov [#allocation3]  }
  0x29   :  { %s105_s23 = sshll.u32 %s3289_s20, 4  ;;  %s35_s26 = sshll.u32 %s3290_s24, 4  ;;  %s106_s23 = int_to_ptr.vmem [resolvable:$true] %s105_s23  ;;  %s36_s26 = int_to_ptr.vmem [resolvable:$true] %s35_s26 }
  0x2a   :  { %s3119_s0 = scalar_lea.hbm %s4624_s13, 32768 }
  0x2b   :  { %p3120_p2 = scmp.ne.s32.totalorder %s4624_s13, %s3119_s0  ;;  %p3123_p3 = scmp.lt.u32.totalorder %s3119_s0, %s4624_s13 }
  0x2d   :  { %p3125_p4 = pnand %p3123_p3, %p3120_p2 }
  0x2f   :  { %3128 = shalt.err (!%p3125_p4)
}
  0x30   :  { %s3129_s11 = scalar_lea.vmem %s106_s23, 32768  ;;  %p3134_p6 = scmp.lt.s32.totalorder %s106_s23, %s106_s23 }
  0x31   :  { %p3130_p5 = scmp.ne.s32.totalorder %s106_s23, %s3129_s11  ;;  %p3135_p7 = scmp.lt.s32.totalorder %s3129_s11, %s3129_s11 }
  0x33   :  { %p3136_p8 = por %p3135_p7, %p3134_p6 }
  0x35   :  { %p3137_p9 = pnand %p3136_p8, %p3130_p5 }
  0x37   :  { %3140 = shalt.err (!%p3137_p9)
}
  0x38   :  { %s3291_s27 = smov 2048   ;;  %s4633_s28 = sld [smem:[#allocation22_spill]] }
  0x39   :  { %111 = dma.hbm_to_vmem [thread:$0]  %s4624_s13, 32768, %s106_s23, [#allocation13], %s3291_s27, %s3291_s27, %s3287_s21  }
  0x3e   :  { %s3141_s29 = scalar_lea.hbm %s4633_s28, 256 }
  0x3f   :  { %p3142_p10 = scmp.ne.s32.totalorder %s4633_s28, %s3141_s29  ;;  %p3145_p11 = scmp.lt.u32.totalorder %s3141_s29, %s4633_s28 }
  0x41   :  { %p3147_p12 = pnand %p3145_p11, %p3142_p10 }
  0x43   :  { %3150 = shalt.err (!%p3147_p12)
}
  0x44   :  { %s3151_s1 = scalar_lea.vmem %s36_s26, 256  ;;  %p3156_p0 = scmp.lt.s32.totalorder %s36_s26, %s36_s26 }
  0x45   :  { %p3152_p13 = scmp.ne.s32.totalorder %s36_s26, %s3151_s1  ;;  %p3157_p1 = scmp.lt.s32.totalorder %s3151_s1, %s3151_s1 }
  0x47   :  { %p3158_p2 = por %p3157_p1, %p3156_p0 }
  0x49   :  { %p3159_p3 = pnand %p3158_p2, %p3152_p13 }
  0x4b   :  { %3162 = shalt.err (!%p3159_p3)
}
  0x4c   :  { %41 = dma.hbm_to_vmem [thread:$0]  %s4633_s28, 256, %s36_s26, [#allocation4], %s3287_s21, %s3287_s21, %s3288_s22  }
  0x4d   :  { %s3292_s11 = smov [#allocation8]   ;;  %s3293_s9 = smov [#allocation11]  }
  0x4e   :  { %s74_s27 = sshll.u32 %s3292_s11, 4  ;;  %s96_s25 = sshll.u32 %s3293_s9, 4  ;;  %s75_s27 = int_to_ptr.vmem [resolvable:$true] %s74_s27  ;;  %s97_s25 = int_to_ptr.vmem [resolvable:$true] %s96_s25 }
  0x4f   :  { %s3163_s29 = scalar_lea.hbm %s4621_s10, 16 }
  0x50   :  { %p3164_p4 = scmp.ne.s32.totalorder %s4621_s10, %s3163_s29  ;;  %p3167_p5 = scmp.lt.u32.totalorder %s3163_s29, %s4621_s10 }
  0x52   :  { %p3169_p6 = pnand %p3167_p5, %p3164_p4 }
  0x54   :  { %3172 = shalt.err (!%p3169_p6)
}
  0x55   :  { %s3173_s26 = scalar_lea.vmem %s75_s27, 16  ;;  %s3177_s28 = scalar_lea.vmem %s75_s27, 32 }
  0x56   :  { %p3174_p7 = scmp.ne.s32.totalorder %s75_s27, %s3173_s26  ;;  %p3178_p8 = scmp.lt.s32.totalorder %s75_s27, %s75_s27 }
  0x57   :  { %p3179_p9 = scmp.lt.s32.totalorder %s3177_s28, %s3173_s26 }
  0x59   :  { %p3180_p10 = por %p3179_p9, %p3178_p8 }
  0x5b   :  { %p3181_p11 = pnand %p3180_p10, %p3174_p7 }
  0x5d   :  { %3184 = shalt.err (!%p3181_p11)
}
  0x5e   :  { %77 = dma.hbm_to_vmem [thread:$0]  %s4621_s10, 16, %s75_s27, [#allocation7]  }
  0x5f   :  { %s3185_s9 = scalar_lea.hbm %s4623_s12, 16 }
  0x60   :  { %p3186_p12 = scmp.ne.s32.totalorder %s4623_s12, %s3185_s9  ;;  %p3189_p13 = scmp.lt.u32.totalorder %s3185_s9, %s4623_s12 }
  0x62   :  { %p3191_p0 = pnand %p3189_p13, %p3186_p12 }
  0x64   :  { %3194 = shalt.err (!%p3191_p0)
}
  0x65   :  { %s3195_s30 = scalar_lea.vmem %s97_s25, 16  ;;  %s3199_s18 = scalar_lea.vmem %s97_s25, 32 }
  0x66   :  { %p3196_p1 = scmp.ne.s32.totalorder %s97_s25, %s3195_s30  ;;  %p3200_p2 = scmp.lt.s32.totalorder %s97_s25, %s97_s25 }
  0x67   :  { %p3201_p3 = scmp.lt.s32.totalorder %s3199_s18, %s3195_s30 }
  0x69   :  { %p3202_p4 = por %p3201_p3, %p3200_p2 }
  0x6b   :  { %p3203_p5 = pnand %p3202_p4, %p3196_p1 }
  0x6d   :  { %3206 = shalt.err (!%p3203_p5)
}
  0x6e   :  { %99 = dma.hbm_to_vmem [thread:$0]  %s4623_s12, 16, %s97_s25, [#allocation10]  }
  0x6f   :  { %s3294_s19 = smov [#allocation14]   ;;  %s3207_s13 = scalar_lea.hbm %s4625_s14, 256 }
  0x70   :  { %s118_s26 = sshll.u32 %s3294_s19, 4  ;;  %p3208_p6 = scmp.ne.s32.totalorder %s4625_s14, %s3207_s13  ;;  %s119_s26 = int_to_ptr.vmem [resolvable:$true] %s118_s26 }
  0x71   :  { %p3211_p7 = scmp.lt.u32.totalorder %s3207_s13, %s4625_s14 }
  0x73   :  { %p3213_p8 = pnand %p3211_p7, %p3208_p6 }
  0x75   :  { %3216 = shalt.err (!%p3213_p8)
}
  0x76   :  { %s3217_s24 = scalar_lea.vmem %s119_s26, 256  ;;  %p3222_p10 = scmp.lt.s32.totalorder %s119_s26, %s119_s26 }
  0x77   :  { %p3218_p9 = scmp.ne.s32.totalorder %s119_s26, %s3217_s24  ;;  %p3223_p11 = scmp.lt.s32.totalorder %s3217_s24, %s3217_s24 }
  0x79   :  { %p3224_p12 = por %p3223_p11, %p3222_p10 }
  0x7b   :  { %p3225_p13 = pnand %p3224_p12, %p3218_p9 }
  0x7d   :  { %3228 = shalt.err (!%p3225_p13)
}
  0x7e   :  { %121 = dma.hbm_to_vmem [thread:$0]  %s4625_s14, 256, %s119_s26, [#allocation13]  }
  0x7f   :  { %3251 = dma.done.wait [#allocation4], 256  }
  0x80   :  { %3252 = vsyncadd [#allocation4], 4294967040 }
  0x81   :  { %3253 = dma.done.wait [#allocation7], 2064  }
  0x82   :  { %3254 = vsyncadd [#allocation7], 4294965232 }
  0x83   :  { %3255 = dma.done.wait [#allocation10], 2064  }
  0x84   :  { %3256 = vsyncadd [#allocation10], 4294965232 }
  0x85   :  { %3257 = dma.done.wait [#allocation13], 33024  }
  0x86   :  { %3258 = vsyncadd [#allocation13], 4294934272  ;;  %v3295_v0 = vmov 0.0   ;;  %v146_v1 = vld [vmem:[%s4614_s3 + $0x8] sm:$0xff]  ;;  %v148_v2 = vld [vmem:[%s4614_s3 + $0x18] sm:$0xff]  ;;  %s4634_s30 = sld [smem:[#allocation21_spill]] }
  0x87   :  { %253 = vmatprep.mubr.f32.mxu0 %v3295_v0  ;;  %v145_v3 = vld [vmem:[%s4614_s3] sm:$0xff]  ;;  %v2538_v4 = vpack.c.bf16 %v148_v2, %v146_v1  ;;  %v147_v5 = vld [vmem:[%s4614_s3 + $0x10] sm:$0xff]  ;;  %v150_v6 = vld [vmem:[%s4614_s3 + $0x28] sm:$0xff]  ;;  %vm573_vm8 = vcmask 7168   ;;  %s3297_s24 = smov [#allocation15]  }
  0x88   :  { %v152_v7 = vld [vmem:[%s4614_s3 + $0x38] sm:$0xff]  ;;  %v2540_v8 = vpack.c.bf16 %v147_v5, %v145_v3  ;;  %v149_v10 = vld [vmem:[%s4614_s3 + $0x20] sm:$0xff]  ;;  %v151_v11 = vld [vmem:[%s4614_s3 + $0x30] sm:$0xff]  ;;  %s2368_s12 = sshll.u32 %s3297_s24, 4  ;;  %s2369_s12 = int_to_ptr.vmem [resolvable:$true] %s2368_s12 }
  0x89   :  { %v2542_v9 = vpack.c.bf16 %v152_v7, %v150_v6  ;;  %v154_v12 = vld [vmem:[%s4614_s3 + $0x48] sm:$0xff]  ;;  %2539 = vmatprep.subr.bf16.mxu0 %v2538_v4  ;;  %v156_v13 = vld [vmem:[%s4614_s3 + $0x58] sm:$0xff]  ;;  %v2544_v14 = vpack.c.bf16 %v151_v11, %v149_v10  ;;  %v153_v16 = vld [vmem:[%s4614_s3 + $0x40] sm:$0xff]  ;;  %s3229_s25 = scalar_lea.vmem %s2369_s12, 256  ;;  %p3234_p1 = scmp.lt.s32.totalorder %s2369_s12, %s2369_s12 }
  0x8a   :  { %2541 = vmatpush1.bf16.msra.mxu0 %v2540_v8  ;;  %v2546_v15 = vpack.c.bf16 %v156_v13, %v154_v12  ;;  %v155_v17 = vld [vmem:[%s4614_s3 + $0x50] sm:$0xff]  ;;  %v158_v18 = vld [vmem:[%s4614_s3 + $0x68] sm:$0xff]  ;;  %v160_v19 = vld [vmem:[%s4614_s3 + $0x78] sm:$0xff]  ;;  %p3230_p0 = scmp.ne.s32.totalorder %s2369_s12, %s3229_s25  ;;  %p3235_p2 = scmp.lt.s32.totalorder %s3229_s25, %s3229_s25 }
  0x8b   :  { %2543 = vmatprep.subr.bf16.mxu0 %v2542_v9  ;;  %v2548_v20 = vpack.c.bf16 %v155_v17, %v153_v16  ;;  %v2550_v21 = vpack.c.bf16 %v160_v19, %v158_v18  ;;  %v157_v22 = vld [vmem:[%s4614_s3 + $0x60] sm:$0xff]  ;;  %v159_v23 = vld [vmem:[%s4614_s3 + $0x70] sm:$0xff]  ;;  %v162_v24 = vld [vmem:[%s4614_s3 + $0x88] sm:$0xff] }
  0x8c   :  { %v164_v25 = vld [vmem:[%s4614_s3 + $0x98] sm:$0xff]  ;;  %v161_v26 = vld [vmem:[%s4614_s3 + $0x80] sm:$0xff]  ;;  %v163_v27 = vld [vmem:[%s4614_s3 + $0x90] sm:$0xff]  ;;  %v2552_v30 = vpack.c.bf16 %v159_v23, %v157_v22  ;;  %p3236_p3 = por %p3235_p2, %p3234_p1 }
  0x8d   :  { %v279_v28 = vld [vmem:[%s4616_s5 + $0x8] sm:$0xff]  ;;  %v281_v29 = vld [vmem:[%s4616_s5 + $0x18] sm:$0xff]  ;;  %v278_v33 = vld [vmem:[%s4616_s5] sm:$0xff]  ;;  %v2554_v36 = vpack.c.bf16 %v164_v25, %v162_v24  ;;  %v2556_v46 = vpack.c.bf16 %v163_v27, %v161_v26 }
  0x8e   :  { %2545 = vmatpush1.bf16.msra.mxu0 %v2544_v14  ;;  %v166_v31 = vld [vmem:[%s4614_s3 + $0xa8] sm:$0xff]  ;;  %v2570_v32 = vpack.c.bf16 %v281_v29, %v279_v28  ;;  %v280_v34 = vld [vmem:[%s4616_s5 + $0x10] sm:$0xff]  ;;  %v285_v38 = vld [vmem:[%s4616_s5 + $0x38] sm:$0xff]  ;;  %p3237_p4 = pnand %p3236_p3, %p3230_p0 }
  0x8f   :  { %2547 = vmatprep.subr.bf16.mxu0 %v2546_v15  ;;  %v283_v35 = vld [vmem:[%s4616_s5 + $0x28] sm:$0xff]  ;;  %v2572_v37 = vpack.c.bf16 %v280_v34, %v278_v33  ;;  %v282_v39 = vld [vmem:[%s4616_s5 + $0x20] sm:$0xff]  ;;  %v284_v40 = vld [vmem:[%s4616_s5 + $0x30] sm:$0xff] }
  0x90   :  { %v168_v41 = vld [vmem:[%s4614_s3 + $0xb8] sm:$0xff]  ;;  %2571 = vmatprep.subr.bf16.mxu1 %v2570_v32  ;;  %v2574_v42 = vpack.c.bf16 %v285_v38, %v283_v35  ;;  %v287_v43 = vld [vmem:[%s4616_s5 + $0x48] sm:$0xff]  ;;  %v2576_v45 = vpack.c.bf16 %v284_v40, %v282_v39  ;;  %v165_v47 = vld [vmem:[%s4614_s3 + $0xa0] sm:$0xff] }
  0x91   :  { %v289_v44 = vld [vmem:[%s4616_s5 + $0x58] sm:$0xff]  ;;  %2573 = vmatpush1.bf16.msra.mxu1 %v2572_v37  ;;  %v286_v49 = vld [vmem:[%s4616_s5 + $0x40] sm:$0xff]  ;;  %v288_v50 = vld [vmem:[%s4616_s5 + $0x50] sm:$0xff]  ;;  %v2558_v51 = vpack.c.bf16 %v168_v41, %v166_v31 }
  0x92   :  { %2549 = vmatpush1.bf16.msra.mxu0 %v2548_v20  ;;  %2575 = vmatprep.subr.bf16.mxu1 %v2574_v42  ;;  %v2578_v48 = vpack.c.bf16 %v289_v44, %v287_v43  ;;  %v167_v52 = vld [vmem:[%s4614_s3 + $0xb0] sm:$0xff]  ;;  %v291_v53 = vld [vmem:[%s4616_s5 + $0x68] sm:$0xff]  ;;  %v293_v54 = vld [vmem:[%s4616_s5 + $0x78] sm:$0xff]  ;;  %v2580_v57 = vpack.c.bf16 %v288_v50, %v286_v49 }
  0x93   :  { %2551 = vmatprep.subr.bf16.mxu0 %v2550_v21  ;;  %v170_v55 = vld [vmem:[%s4614_s3 + $0xc8] sm:$0xff]  ;;  %v172_v56 = vld [vmem:[%s4614_s3 + $0xd8] sm:$0xff]  ;;  %v2560_v58 = vpack.c.bf16 %v167_v52, %v165_v47  ;;  %v169_v59 = vld [vmem:[%s4614_s3 + $0xc0] sm:$0xff]  ;;  %v2582_v60 = vpack.c.bf16 %v293_v54, %v291_v53 }
  0x94   :  { %v290_v61 = vld [vmem:[%s4616_s5 + $0x60] sm:$0xff]  ;;  %v292_v62 = vld [vmem:[%s4616_s5 + $0x70] sm:$0xff]  ;;  %v2562_v63 = vpack.c.bf16 %v172_v56, %v170_v55  ;;  %v295_v2 = vld [vmem:[%s4616_s5 + $0x88] sm:$0xff] }
  0x95   :  { %2577 = vmatpush1.bf16.msra.mxu1 %v2576_v45  ;;  %v171_v1 = vld [vmem:[%s4614_s3 + $0xd0] sm:$0xff]  ;;  %v297_v3 = vld [vmem:[%s4616_s5 + $0x98] sm:$0xff]  ;;  %v174_v4 = vld [vmem:[%s4614_s3 + $0xe8] sm:$0xff]  ;;  %v2584_v6 = vpack.c.bf16 %v292_v62, %v290_v61 }
  0x96   :  { %2553 = vmatpush1.bf16.msra.mxu0 %v2552_v30  ;;  %2579 = vmatprep.subr.bf16.mxu1 %v2578_v48  ;;  %v176_v5 = vld [vmem:[%s4614_s3 + $0xf8] sm:$0xff]  ;;  %v2564_v7 = vpack.c.bf16 %v171_v1, %v169_v59  ;;  %v173_v8 = vld [vmem:[%s4614_s3 + $0xe0] sm:$0xff]  ;;  %v2586_v9 = vpack.c.bf16 %v297_v3, %v295_v2  ;;  %v296_v11 = vld [vmem:[%s4616_s5 + $0x90] sm:$0xff] }
  0x97   :  { %2555 = vmatprep.subr.bf16.mxu0 %v2554_v36  ;;  %v294_v10 = vld [vmem:[%s4616_s5 + $0x80] sm:$0xff]  ;;  %v2566_v12 = vpack.c.bf16 %v176_v5, %v174_v4  ;;  %v175_v13 = vld [vmem:[%s4614_s3 + $0xf0] sm:$0xff]  ;;  %v299_v14 = vld [vmem:[%s4616_s5 + $0xa8] sm:$0xff] }
  0x98   :  { %v301_v15 = vld [vmem:[%s4616_s5 + $0xb8] sm:$0xff]  ;;  %v2588_v16 = vpack.c.bf16 %v296_v11, %v294_v10  ;;  %v2568_v17 = vpack.c.bf16 %v175_v13, %v173_v8  ;;  %v298_v19 = vld [vmem:[%s4616_s5 + $0xa0] sm:$0xff]  ;;  %v300_v20 = vld [vmem:[%s4616_s5 + $0xb0] sm:$0xff] }
  0x99   :  { %2581 = vmatpush1.bf16.msra.mxu1 %v2580_v57  ;;  %v2590_v18 = vpack.c.bf16 %v301_v15, %v299_v14  ;;  %v303_v21 = vld [vmem:[%s4616_s5 + $0xc8] sm:$0xff]  ;;  %v305_v22 = vld [vmem:[%s4616_s5 + $0xd8] sm:$0xff]  ;;  %v2592_v23 = vpack.c.bf16 %v300_v20, %v298_v19  ;;  %v3664_v24 = vld [vmem:[#allocation3] sm:$0xff] }
  0x9a   :  { %2557 = vmatpush1.bf16.msra.mxu0 %v2556_v46  ;;  %2583 = vmatprep.subr.bf16.mxu1 %v2582_v60  ;;  %v2594_v25 = vpack.c.bf16 %v305_v22, %v303_v21  ;;  %v302_v26 = vld [vmem:[%s4616_s5 + $0xc0] sm:$0xff]  ;;  %v304_v27 = vld [vmem:[%s4616_s5 + $0xd0] sm:$0xff]  ;;  %v307_v28 = vld [vmem:[%s4616_s5 + $0xe8] sm:$0xff] }
  0x9b   :  { %2559 = vmatprep.subr.bf16.mxu0 %v2558_v51  ;;  %v309_v29 = vld [vmem:[%s4616_s5 + $0xf8] sm:$0xff]  ;;  %v2596_v30 = vpack.c.bf16 %v304_v27, %v302_v26  ;;  %v3680_v31 = vld [vmem:[#allocation3 + $0x8] sm:$0xff]  ;;  %v306_v33 = vld [vmem:[%s4616_s5 + $0xe0] sm:$0xff] }
  0x9c   :  { %v2598_v32 = vpack.c.bf16 %v309_v29, %v307_v28  ;;  %v308_v34 = vld [vmem:[%s4616_s5 + $0xf0] sm:$0xff]  ;;  %v311_v35 = vld [vmem:[%s4616_s5 + $0x108] sm:$0xff]  ;;  %v313_v36 = vld [vmem:[%s4616_s5 + $0x118] sm:$0xff] }
  0x9d   :  { %2585 = vmatpush1.bf16.msra.mxu1 %v2584_v6  ;;  %v2600_v37 = vpack.c.bf16 %v308_v34, %v306_v33  ;;  %v2602_v38 = vpack.c.bf16 %v313_v36, %v311_v35  ;;  %v310_v39 = vld [vmem:[%s4616_s5 + $0x100] sm:$0xff]  ;;  %v312_v40 = vld [vmem:[%s4616_s5 + $0x110] sm:$0xff]  ;;  %v315_v41 = vld [vmem:[%s4616_s5 + $0x128] sm:$0xff] }
  0x9e   :  { %2561 = vmatpush1.bf16.msra.mxu0 %v2560_v58  ;;  %2587 = vmatprep.subr.bf16.mxu1 %v2586_v9  ;;  %v317_v42 = vld [vmem:[%s4616_s5 + $0x138] sm:$0xff]  ;;  %v2604_v43 = vpack.c.bf16 %v312_v40, %v310_v39  ;;  %v314_v45 = vld [vmem:[%s4616_s5 + $0x120] sm:$0xff]  ;;  %v316_v46 = vld [vmem:[%s4616_s5 + $0x130] sm:$0xff] }
  0x9f   :  { %2563 = vmatprep.subr.bf16.mxu0 %v2562_v63  ;;  %v2606_v44 = vpack.c.bf16 %v317_v42, %v315_v41  ;;  %v319_v47 = vld [vmem:[%s4616_s5 + $0x148] sm:$0xff]  ;;  %v321_v48 = vld [vmem:[%s4616_s5 + $0x158] sm:$0xff]  ;;  %v2608_v49 = vpack.c.bf16 %v316_v46, %v314_v45  ;;  %v318_v51 = vld [vmem:[%s4616_s5 + $0x140] sm:$0xff] }
  0xa0   :  { %v2610_v50 = vpack.c.bf16 %v321_v48, %v319_v47  ;;  %v320_v52 = vld [vmem:[%s4616_s5 + $0x150] sm:$0xff]  ;;  %v323_v53 = vld [vmem:[%s4616_s5 + $0x168] sm:$0xff]  ;;  %v325_v54 = vld [vmem:[%s4616_s5 + $0x178] sm:$0xff] }
  0xa1   :  { %2589 = vmatpush1.bf16.msra.mxu1 %v2588_v16  ;;  %v2612_v55 = vpack.c.bf16 %v320_v52, %v318_v51  ;;  %v2614_v56 = vpack.c.bf16 %v325_v54, %v323_v53  ;;  %v322_v57 = vld [vmem:[%s4616_s5 + $0x160] sm:$0xff]  ;;  %v324_v58 = vld [vmem:[%s4616_s5 + $0x170] sm:$0xff]  ;;  %v327_v59 = vld [vmem:[%s4616_s5 + $0x188] sm:$0xff] }
  0xa2   :  { %2565 = vmatpush1.bf16.msra.mxu0 %v2564_v7  ;;  %2591 = vmatprep.subr.bf16.mxu1 %v2590_v18  ;;  %v329_v60 = vld [vmem:[%s4616_s5 + $0x198] sm:$0xff]  ;;  %v2616_v61 = vpack.c.bf16 %v324_v58, %v322_v57  ;;  %v326_v63 = vld [vmem:[%s4616_s5 + $0x180] sm:$0xff]  ;;  %v328_v1 = vld [vmem:[%s4616_s5 + $0x190] sm:$0xff] }
  0xa3   :  { %2567 = vmatprep.subr.bf16.mxu0 %v2566_v12  ;;  %v2618_v62 = vpack.c.bf16 %v329_v60, %v327_v59  ;;  %v331_v2 = vld [vmem:[%s4616_s5 + $0x1a8] sm:$0xff]  ;;  %v333_v3 = vld [vmem:[%s4616_s5 + $0x1b8] sm:$0xff]  ;;  %v2620_v4 = vpack.c.bf16 %v328_v1, %v326_v63  ;;  %v330_v6 = vld [vmem:[%s4616_s5 + $0x1a0] sm:$0xff] }
  0xa4   :  { %v2622_v5 = vpack.c.bf16 %v333_v3, %v331_v2  ;;  %v332_v7 = vld [vmem:[%s4616_s5 + $0x1b0] sm:$0xff]  ;;  %v335_v9 = vld [vmem:[%s4616_s5 + $0x1c8] sm:$0xff]  ;;  %v337_v10 = vld [vmem:[%s4616_s5 + $0x1d8] sm:$0xff] }
  0xa5   :  { %2593 = vmatpush1.bf16.msra.mxu1 %v2592_v23  ;;  %v2624_v8 = vpack.c.bf16 %v332_v7, %v330_v6  ;;  %v2626_v11 = vpack.c.bf16 %v337_v10, %v335_v9  ;;  %v334_v12 = vld [vmem:[%s4616_s5 + $0x1c0] sm:$0xff]  ;;  %v336_v13 = vld [vmem:[%s4616_s5 + $0x1d0] sm:$0xff]  ;;  %v339_v15 = vld [vmem:[%s4616_s5 + $0x1e8] sm:$0xff] }
  0xa6   :  { %2569 = vmatpush1.bf16.msra.mxu0 %v2568_v17  ;;  %2595 = vmatprep.subr.bf16.mxu1 %v2594_v25  ;;  %v2628_v14 = vpack.c.bf16 %v336_v13, %v334_v12  ;;  %v341_v16 = vld [vmem:[%s4616_s5 + $0x1f8] sm:$0xff]  ;;  %v338_v18 = vld [vmem:[%s4616_s5 + $0x1e0] sm:$0xff]  ;;  %v340_v19 = vld [vmem:[%s4616_s5 + $0x1f0] sm:$0xff] }
  0xa7   :  { %v2630_v17 = vpack.c.bf16 %v341_v16, %v339_v15  ;;  %v2632_v20 = vpack.c.bf16 %v340_v19, %v338_v18  ;;  %v459_v21 = vld [vmem:[%s4618_s7 + $0x80] sm:$0xff]  ;;  %v460_v22 = vld [vmem:[%s4618_s7 + $0x88] sm:$0xff]  ;;  %v461_v27 = vld [vmem:[%s4618_s7 + $0x90] sm:$0xff] }
  0xa8   :  { %v443_v23 = vld [vmem:[%s4618_s7] sm:$0xff]  ;;  %v2634_v25 = vpack.c.bf16 %v460_v22, %v459_v21  ;;  %v444_v26 = vld [vmem:[%s4618_s7 + $0x8] sm:$0xff]  ;;  %v462_v28 = vld [vmem:[%s4618_s7 + $0x98] sm:$0xff] }
  0xa9   :  { %254 = vmatmul.mubr.f32.vlgmr.msra.gmra.mrb[0].mxu0 %v3664_v24  ;;  %2597 = vmatpush1.bf16.msra.mxu1 %v2596_v30  ;;  %v2636_v29 = vpack.c.bf16 %v444_v26, %v443_v23  ;;  %v2638_v30 = vpack.c.bf16 %v462_v28, %v461_v27  ;;  %v446_v33 = vld [vmem:[%s4618_s7 + $0x18] sm:$0xff]  ;;  %v463_v34 = vld [vmem:[%s4618_s7 + $0xa0] sm:$0xff]  ;;  %v464_v35 = vld [vmem:[%s4618_s7 + $0xa8] sm:$0xff] }
  0xaa   :  { %259 = vmatprep.mubr.f32.mxu0 %v3295_v0  ;;  %2599 = vmatprep.subr.bf16.mxu1 %v2598_v32  ;;  %v445_v32 = vld [vmem:[%s4618_s7 + $0x10] sm:$0xff]  ;;  %v448_v39 = vld [vmem:[%s4618_s7 + $0x28] sm:$0xff]  ;;  %v466_v41 = vld [vmem:[%s4618_s7 + $0xb8] sm:$0xff] }
  0xab   :  { %2635 = vmatprep.subr.bf16.mxu0 %v2634_v25  ;;  %v2640_v36 = vpack.c.bf16 %v446_v33, %v445_v32  ;;  %v465_v40 = vld [vmem:[%s4618_s7 + $0xb0] sm:$0xff]  ;;  %v450_v45 = vld [vmem:[%s4618_s7 + $0x38] sm:$0xff]  ;;  %v467_v46 = vld [vmem:[%s4618_s7 + $0xc0] sm:$0xff] }
  0xac   :  { %2637 = vmatpush3.bf16.msra.mxu0 %v2636_v29  ;;  %v468_v47 = vld [vmem:[%s4618_s7 + $0xc8] sm:$0xff]  ;;  %v469_v52 = vld [vmem:[%s4618_s7 + $0xd0] sm:$0xff]  ;;  %v470_v53 = vld [vmem:[%s4618_s7 + $0xd8] sm:$0xff] }
  0xad   :  { %260 = vmatmul.mubr.f32.gmra.mrb[2].mxu0 %v3680_v31  ;;  %2601 = vmatpush1.bf16.msra.mxu1 %v2600_v37  ;;  %v2642_v37 = vpack.c.bf16 %v464_v35, %v463_v34  ;;  %v452_v51 = vld [vmem:[%s4618_s7 + $0x48] sm:$0xff]  ;;  %v454_v57 = vld [vmem:[%s4618_s7 + $0x58] sm:$0xff]  ;;  %v471_v58 = vld [vmem:[%s4618_s7 + $0xe0] sm:$0xff] }
  0xae   :  { %2603 = vmatprep.subr.bf16.mxu1 %v2602_v38  ;;  %2639 = vmatprep.subr.bf16.mxu0 %v2638_v30  ;;  %v447_v38 = vld [vmem:[%s4618_s7 + $0x20] sm:$0xff]  ;;  %v472_v59 = vld [vmem:[%s4618_s7 + $0xe8] sm:$0xff]  ;;  %v473_v26 = vld [vmem:[%s4618_s7 + $0xf0] sm:$0xff] }
  0xaf   :  { %v2644_v42 = vpack.c.bf16 %v448_v39, %v447_v38  ;;  %v177_v2 = vld [vmem:[%s4615_s4] sm:$0x3]  ;;  %v456_v23 = vld [vmem:[%s4618_s7 + $0x68] sm:$0xff]  ;;  %v474_v27 = vld [vmem:[%s4618_s7 + $0xf8] sm:$0xff] }
  0xb0   :  { %2641 = vmatpush3.bf16.msra.mxu0 %v2640_v36  ;;  %v455_v22 = vld [vmem:[%s4618_s7 + $0x60] sm:$0xff]  ;;  %v2662_v28 = vpack.c.bf16 %v474_v27, %v473_v26  ;;  %v457_v29 = vld [vmem:[%s4618_s7 + $0x70] sm:$0xff]  ;;  %v458_v30 = vld [vmem:[%s4618_s7 + $0x78] sm:$0xff] }
  0xb1   :  { %2605 = vmatpush1.bf16.msra.mxu1 %v2604_v43  ;;  %2643 = vmatprep.subr.bf16.mxu0 %v2642_v37  ;;  %v2646_v43 = vpack.c.bf16 %v466_v41, %v465_v40  ;;  %v2660_v25 = vpack.c.bf16 %v456_v23, %v455_v22  ;;  %v2664_v32 = vpack.c.bf16 %v458_v30, %v457_v29  ;;  %v588_v33 = vld [vmem:[#allocation6] sm:$0xff]  ;;  %v589_v34 = vld [vmem:[#allocation6 + $0x8] sm:$0xff]  ;;  %v342_v36 = vld [vmem:[%s4617_s6] sm:$0x3] }
  0xb2   :  { %2607 = vmatprep.subr.bf16.mxu1 %v2606_v44  ;;  %v449_v44 = vld [vmem:[%s4618_s7 + $0x30] sm:$0xff]  ;;  %v2666_v35 = vpack.c.bf16 %v589_v34, %v588_v33  ;;  %v697_v23 = vld [vmem:[#allocation9 + $0x28] sm:$0xff]  ;;  %v698_v26 = vld [vmem:[#allocation9 + $0x30] sm:$0xff] }
  0xb3   :  { %v2648_v48 = vpack.c.bf16 %v450_v45, %v449_v44  ;;  %v590_v44 = vld [vmem:[#allocation6 + $0x10] sm:$0xff]  ;;  %v591_v45 = vld [vmem:[#allocation6 + $0x18] sm:$0xff]  ;;  %v696_v22 = vld [vmem:[#allocation9 + $0x20] sm:$0xff] }
  0xb4   :  { %2645 = vmatpush3.bf16.msra.mxu0 %v2644_v42  ;;  %v699_v27 = vld [vmem:[#allocation9 + $0x38] sm:$0xff]  ;;  %v701_v29 = vld [vmem:[#allocation9 + $0x48] sm:$0xff] }
  0xb5   :  { %2609 = vmatpush1.bf16.msra.mxu1 %v2608_v49  ;;  %2647 = vmatprep.subr.bf16.mxu0 %v2646_v43  ;;  %v2650_v49 = vpack.c.bf16 %v468_v47, %v467_v46  ;;  %v703_v33 = vld [vmem:[#allocation9 + $0x58] sm:$0xff] }
  0xb6   :  { %2611 = vmatprep.subr.bf16.mxu1 %v2610_v50  ;;  %v451_v50 = vld [vmem:[%s4618_s7 + $0x40] sm:$0xff] }
  0xb7   :  { %v2652_v54 = vpack.c.bf16 %v452_v51, %v451_v50  ;;  %v2670_v51 = vpack.c.bf16 %v591_v45, %v590_v44  ;;  %v803_v45 = vld [vmem:[#allocation12 + $0x98] sm:$0xff] }
  0xb8   :  { %2649 = vmatpush3.bf16.msra.mxu0 %v2648_v48 }
  0xb9   :  { %2613 = vmatpush1.bf16.msra.mxu1 %v2612_v55  ;;  %2651 = vmatprep.subr.bf16.mxu0 %v2650_v49  ;;  %v2654_v55 = vpack.c.bf16 %v470_v53, %v469_v52 }
  0xba   :  { %2615 = vmatprep.subr.bf16.mxu1 %v2614_v56  ;;  %v453_v56 = vld [vmem:[%s4618_s7 + $0x50] sm:$0xff] }
  0xbb   :  { %v2656_v60 = vpack.c.bf16 %v454_v57, %v453_v56 }
  0xbc   :  { %2653 = vmatpush3.bf16.msra.mxu0 %v2652_v54  ;;  %v592_v54 = vld [vmem:[#allocation6 + $0x20] sm:$0xff] }
  0xbd   :  { %2617 = vmatpush1.bf16.msra.mxu1 %v2616_v61  ;;  %2655 = vmatprep.subr.bf16.mxu0 %v2654_v55  ;;  %v2658_v61 = vpack.c.bf16 %v472_v59, %v471_v58  ;;  %v593_v55 = vld [vmem:[#allocation6 + $0x28] sm:$0xff] }
  0xbe   :  { %2619 = vmatprep.subr.bf16.mxu1 %v2618_v62  ;;  %v179_v62 = vlaneseq  ;;  %v2674_v59 = vpack.c.bf16 %v593_v55, %v592_v54  ;;  %v808_v54 = vld [vmem:[#allocation12 + $0x180] sm:$0xff] }
  0xc0   :  { %2657 = vmatpush3.bf16.msra.mxu0 %v2656_v60  ;;  %v3864_v63 = vshrl.u32 %v179_v62, 7 }
  0xc1   :  { %2621 = vmatpush1.bf16.msra.mxu1 %v2620_v4  ;;  %2659 = vmatprep.subr.bf16.mxu0 %v2658_v61  ;;  %v594_v61 = vld [vmem:[#allocation6 + $0x30] sm:$0xff] }
  0xc2   :  { %2623 = vmatprep.subr.bf16.mxu1 %v2622_v5  ;;  %v3867_v1 = vsub.s32 0, %v3864_v63  ;;  %v3873_v3 = vsub.s32 1, %v3864_v63 }
  0xc4   :  { %v182_v4 = vrot.slane %v177_v2, %v3867_v1  ;;  %v186_v5 = vrot.slane %v177_v2, %v3873_v3  ;;  %2661 = vmatpush3.bf16.msra.mxu0 %v2660_v25  ;;  %v347_v37 = vrot.slane %v342_v36, %v3867_v1  ;;  %v351_v38 = vrot.slane %v342_v36, %v3873_v3  ;;  %v595_v2 = vld [vmem:[#allocation6 + $0x38] sm:$0xff]  ;;  %v705_v36 = vld [vmem:[#allocation9 + $0x68] sm:$0xff] }
  0xc5   :  { %2625 = vmatpush1.bf16.msra.mxu1 %v2624_v8  ;;  %2663 = vmatprep.subr.bf16.mxu0 %v2662_v28  ;;  %v2706_v25 = vpack.c.bf16 %v697_v23, %v696_v22  ;;  %v700_v28 = vld [vmem:[#allocation9 + $0x40] sm:$0xff] }
  0xc6   :  { %2627 = vmatprep.subr.bf16.mxu1 %v2626_v11  ;;  %v2714_v30 = vpack.c.bf16 %v701_v29, %v700_v28  ;;  %v844_v23 = vld [vmem:[#allocation12 + $0x600] sm:$0xff] }
  0xc8   :  { %2665 = vmatpush3.bf16.msra.mxu0 %v2664_v32  ;;  %v702_v32 = vld [vmem:[#allocation9 + $0x50] sm:$0xff] }
  0xc9   :  { %2629 = vmatpush1.bf16.msra.mxu1 %v2628_v14  ;;  %2667 = vmatprep.subr.bf16.mxu0 %v2666_v35  ;;  %v2718_v34 = vpack.c.bf16 %v703_v33, %v702_v32 }
  0xca   :  { %2631 = vmatprep.subr.bf16.mxu1 %v2630_v17 }
  0xcd   :  { %2633 = vmatpush1.bf16.msra.mxu1 %v2632_v20 }
 0x17c   :  { %v255_v6 = vpop.f32.mrb[0].mxu0 }
 0x17d   :  { %v256_v7 = vadd.f32 %v255_v6, %v182_v4  ;;  %v257_v8 = vpop.f32.mrb[1].mxu0  ;;  %v597_v6 = vld [vmem:[#allocation6 + $0x48] sm:$0xff] }
 0x17e   :  { %v258_v9 = vadd.f32 %v257_v8, %v186_v5  ;;  %v598_v8 = vld [vmem:[#allocation6 + $0x50] sm:$0xff] }
 0x17f   :  { %v270_v10 = vmul.f32 0.2, %v256_v7  ;;  %vm266_vm1 = vcmp.gt.f32.partialorder %v256_v7, 0.0 }
 0x180   :  { %vm267_vm0 = vcmp.gt.f32.partialorder %v258_v9, 0.0  ;;  %v271_v11 = vmul.f32 0.2, %v258_v9  ;;  %v261_v12 = vpop.f32.mrb[2].mxu0 }
 0x181   :  { %v262_v13 = vadd.f32 %v261_v12, %v182_v4  ;;  %v263_v14 = vpop.f32.mrb[3].mxu0  ;;  %v274_v17 = vsel %vm266_vm1, %v256_v7, %v270_v10  ;;  %v2678_v4 = vpack.c.bf16 %v595_v2, %v594_v61  ;;  %v601_v12 = vld [vmem:[#allocation6 + $0x68] sm:$0xff] }
 0x182   :  { %v275_v15 = vsel %vm267_vm0, %v258_v9, %v271_v11  ;;  %v264_v16 = vadd.f32 %v263_v14, %v186_v5  ;;  %v596_v5 = vld [vmem:[#allocation6 + $0x40] sm:$0xff]  ;;  %v599_v9 = vld [vmem:[#allocation6 + $0x58] sm:$0xff]  ;;  %v602_v14 = vld [vmem:[#allocation6 + $0x70] sm:$0xff] }
 0x183   :  { %418 = vmatprep.mubr.f32.mxu1 %v275_v15  ;;  %v272_v18 = vmul.f32 0.2, %v262_v13  ;;  %vm268_vm2 = vcmp.gt.f32.partialorder %v262_v13, 0.0  ;;  %v2682_v7 = vpack.c.bf16 %v597_v6, %v596_v5  ;;  %v2686_v10 = vpack.c.bf16 %v599_v9, %v598_v8  ;;  %v600_v11 = vld [vmem:[#allocation6 + $0x60] sm:$0xff]  ;;  %v603_v15 = vld [vmem:[#allocation6 + $0x78] sm:$0xff]  ;;  %v821_v2 = vld [vmem:[#allocation12 + $0x308] sm:$0xff] }
 0x184   :  { %419 = vmatmul.mubr.f32.vlgmr.msra.gmra.mrb[0].mxu1 %v274_v17  ;;  %v273_v19 = vmul.f32 0.2, %v264_v16  ;;  %vm269_vm3 = vcmp.gt.f32.partialorder %v264_v16, 0.0  ;;  %v693_v17 = vld [vmem:[#allocation9 + $0x8] sm:$0xff] }
 0x185   :  { %v276_v20 = vsel %vm268_vm2, %v262_v13, %v272_v18  ;;  %v2690_v13 = vpack.c.bf16 %v601_v12, %v600_v11  ;;  %v820_v6 = vld [vmem:[#allocation12 + $0x300] sm:$0xff]  ;;  %v829_v9 = vld [vmem:[#allocation12 + $0x408] sm:$0xff] }
 0x186   :  { %v277_v21 = vsel %vm269_vm3, %v264_v16, %v273_v19  ;;  %v692_v16 = vld [vmem:[#allocation9] sm:$0xff]  ;;  %v694_v19 = vld [vmem:[#allocation9 + $0x10] sm:$0xff] }
 0x187   :  { %424 = vmatprep.mubr.f32.mxu1 %v277_v21  ;;  %v2698_v18 = vpack.c.bf16 %v693_v17, %v692_v16  ;;  %v828_v12 = vld [vmem:[#allocation12 + $0x400] sm:$0xff] }
 0x188   :  { %425 = vmatmul.mubr.f32.gmra.mrb[2].mxu1 %v276_v20  ;;  %v695_v20 = vld [vmem:[#allocation9 + $0x18] sm:$0xff]  ;;  %v836_v17 = vld [vmem:[#allocation12 + $0x500] sm:$0xff] }
 0x189   :  { %2699 = vmatprep.subr.bf16.mxu1 %v2698_v18  ;;  %v2702_v21 = vpack.c.bf16 %v695_v20, %v694_v19  ;;  %v845_v20 = vld [vmem:[#allocation12 + $0x608] sm:$0xff] }
 0x18a   :  { %2701 = vmatpush3.bf16.msra.mxu1 %v2698_v18  ;;  %v840_v18 = vld [vmem:[#allocation12 + $0x580] sm:$0xff] }
 0x18b   :  { %2703 = vmatprep.subr.bf16.mxu1 %v2702_v21  ;;  %v2752_v19 = vpack.c.bf16 %v840_v18, %v836_v17  ;;  %v822_v17 = vld [vmem:[#allocation12 + $0x310] sm:$0xff] }
 0x18c   :  { %v826_v18 = vld [vmem:[#allocation12 + $0x390] sm:$0xff] }
 0x18e   :  { %2705 = vmatpush3.bf16.msra.mxu1 %v2702_v21  ;;  %v849_v21 = vld [vmem:[#allocation12 + $0x688] sm:$0xff] }
 0x18f   :  { %2707 = vmatprep.subr.bf16.mxu1 %v2706_v25  ;;  %v2754_v22 = vpack.c.bf16 %v849_v21, %v845_v20  ;;  %v835_v20 = vld [vmem:[#allocation12 + $0x498] sm:$0xff]  ;;  %v2776_v21 = vpack.c.bf16 %v826_v18, %v822_v17  ;;  %v1074_v17 = vld [vmem:[#allocation12 + $0x130] sm:$0xff] }
 0x190   :  { %v1078_v18 = vld [vmem:[#allocation12 + $0x1b0] sm:$0xff] }
 0x192   :  { %2709 = vmatpush3.bf16.msra.mxu1 %v2706_v25  ;;  %v848_v25 = vld [vmem:[#allocation12 + $0x680] sm:$0xff] }
 0x257   :  { %v420_v39 = vpop.f32.mrb[0].mxu1 }
 0x258   :  { %v421_v40 = vadd.f32 %v420_v39, %v347_v37  ;;  %v422_v41 = vpop.f32.mrb[1].mxu1  ;;  %v707_v39 = vld [vmem:[#allocation9 + $0x78] sm:$0xff] }
 0x259   :  { %v423_v42 = vadd.f32 %v422_v41, %v351_v38  ;;  %v797_v41 = vld [vmem:[#allocation12 + $0x8] sm:$0xff] }
 0x25a   :  { %v435_v43 = vmul.f32 0.2, %v421_v40  ;;  %vm431_vm4 = vcmp.gt.f32.partialorder %v421_v40, 0.0 }
 0x25b   :  { %v436_v46 = vmul.f32 0.2, %v423_v42  ;;  %vm432_vm5 = vcmp.gt.f32.partialorder %v423_v42, 0.0  ;;  %v426_v47 = vpop.f32.mrb[2].mxu1 }
 0x25c   :  { %v427_v48 = vadd.f32 %v426_v47, %v347_v37  ;;  %v428_v49 = vpop.f32.mrb[3].mxu1  ;;  %v439_v53 = vsel %vm431_vm4, %v421_v40, %v435_v43  ;;  %v799_v43 = vld [vmem:[#allocation12 + $0x18] sm:$0xff]  ;;  %v800_v47 = vld [vmem:[#allocation12 + $0x80] sm:$0xff] }
 0x25d   :  { %v440_v50 = vsel %vm432_vm5, %v423_v42, %v436_v46  ;;  %v429_v52 = vadd.f32 %v428_v49, %v351_v38  ;;  %v706_v38 = vld [vmem:[#allocation9 + $0x70] sm:$0xff]  ;;  %v796_v46 = vld [vmem:[#allocation12] sm:$0xff] }
 0x25e   :  { %546 = vmatprep.mubr.f32.mxu0 %v440_v50  ;;  %v437_v56 = vmul.f32 0.2, %v427_v48  ;;  %vm433_vm6 = vcmp.gt.f32.partialorder %v427_v48, 0.0  ;;  %v2726_v40 = vpack.c.bf16 %v707_v39, %v706_v38  ;;  %v801_v42 = vld [vmem:[#allocation12 + $0x88] sm:$0xff]  ;;  %v2732_v49 = vpack.c.bf16 %v800_v47, %v796_v46 }
 0x25f   :  { %547 = vmatmul.mubr.f32.vlgmr.msra.gmra.mrb[4].mxu0 %v439_v53  ;;  %v438_v57 = vmul.f32 0.2, %v429_v52  ;;  %vm434_vm7 = vcmp.gt.f32.partialorder %v429_v52, 0.0  ;;  %v2730_v44 = vpack.c.bf16 %v801_v42, %v797_v41  ;;  %v805_v50 = vld [vmem:[#allocation12 + $0x108] sm:$0xff]  ;;  %v804_v53 = vld [vmem:[#allocation12 + $0x100] sm:$0xff] }
 0x260   :  { %2669 = vmatpush3.bf16.msra.mxu0 %v2666_v35  ;;  %v441_v58 = vsel %vm433_vm6, %v427_v48, %v437_v56  ;;  %v704_v35 = vld [vmem:[#allocation9 + $0x60] sm:$0xff]  ;;  %v2762_v48 = vpack.c.bf16 %v803_v45, %v799_v43  ;;  %v2736_v55 = vpack.c.bf16 %v808_v54, %v804_v53  ;;  %v813_v56 = vld [vmem:[#allocation12 + $0x208] sm:$0xff] }
 0x261   :  { %2671 = vmatprep.subr.bf16.mxu0 %v2670_v51  ;;  %v442_v60 = vsel %vm434_vm7, %v429_v52, %v438_v57  ;;  %v2722_v37 = vpack.c.bf16 %v705_v36, %v704_v35  ;;  %v817_v57 = vld [vmem:[#allocation12 + $0x288] sm:$0xff] }
 0x262   :  { %551 = vmatprep.mubr.f32.mxu0 %v442_v60  ;;  %v816_v60 = vld [vmem:[#allocation12 + $0x280] sm:$0xff]  ;;  %v569_v45 = vld [vmem:[%s4634_s30] sm:$0xff] }
 0x263   :  { %552 = vmatmul.mubr.f32.gmra.mrb[6].mxu0 %v441_v58  ;;  %v2738_v58 = vpack.c.bf16 %v817_v57, %v813_v56  ;;  %v811_v56 = vld [vmem:[#allocation12 + $0x198] sm:$0xff] }
 0x264   :  { %2673 = vmatpush3.bf16.msra.mxu0 %v2670_v51  ;;  %2500 = vmatprep.mubr.f32.mxu0 %v3664_v24  ;;  %v2694_v24 = vpack.c.bf16 %v603_v15, %v602_v14  ;;  %v809_v51 = vld [vmem:[#allocation12 + $0x188] sm:$0xff]  ;;  %v570_v57 = vld [vmem:[%s4634_s30 + $0x8] sm:$0xff] }
 0x265   :  { %2675 = vmatprep.subr.bf16.mxu0 %v2674_v59  ;;  %v2734_v52 = vpack.c.bf16 %v809_v51, %v805_v50  ;;  %v837_v15 = vld [vmem:[#allocation12 + $0x508] sm:$0xff]  ;;  %v798_v51 = vld [vmem:[#allocation12 + $0x10] sm:$0xff] }
 0x268   :  { %2677 = vmatpush3.bf16.msra.mxu0 %v2674_v59  ;;  %v812_v59 = vld [vmem:[#allocation12 + $0x200] sm:$0xff] }
 0x269   :  { %2679 = vmatprep.subr.bf16.mxu0 %v2678_v4  ;;  %v2740_v61 = vpack.c.bf16 %v816_v60, %v812_v59 }
 0x26c   :  { %2681 = vmatpush3.bf16.msra.mxu0 %v2678_v4  ;;  %v825_v4 = vld [vmem:[#allocation12 + $0x388] sm:$0xff] }
 0x26d   :  { %2683 = vmatprep.subr.bf16.mxu0 %v2682_v7  ;;  %v2742_v5 = vpack.c.bf16 %v825_v4, %v821_v2  ;;  %v806_v4 = vld [vmem:[#allocation12 + $0x110] sm:$0xff] }
 0x270   :  { %2685 = vmatpush3.bf16.msra.mxu0 %v2682_v7  ;;  %v824_v7 = vld [vmem:[#allocation12 + $0x380] sm:$0xff] }
 0x271   :  { %2687 = vmatprep.subr.bf16.mxu0 %v2686_v10  ;;  %v2744_v8 = vpack.c.bf16 %v824_v7, %v820_v6 }
 0x274   :  { %2689 = vmatpush3.bf16.msra.mxu0 %v2686_v10  ;;  %v833_v10 = vld [vmem:[#allocation12 + $0x488] sm:$0xff] }
 0x275   :  { %2691 = vmatprep.subr.bf16.mxu0 %v2690_v13  ;;  %v2746_v11 = vpack.c.bf16 %v833_v10, %v829_v9  ;;  %v819_v9 = vld [vmem:[#allocation12 + $0x298] sm:$0xff] }
 0x278   :  { %2693 = vmatpush3.bf16.msra.mxu0 %v2690_v13  ;;  %v832_v13 = vld [vmem:[#allocation12 + $0x480] sm:$0xff] }
 0x279   :  { %2695 = vmatprep.subr.bf16.mxu0 %v2694_v24  ;;  %v2748_v14 = vpack.c.bf16 %v832_v13, %v828_v12  ;;  %v814_v12 = vld [vmem:[#allocation12 + $0x210] sm:$0xff] }
 0x27a   :  { %v818_v13 = vld [vmem:[#allocation12 + $0x290] sm:$0xff] }
 0x27c   :  { %2697 = vmatpush3.bf16.msra.mxu0 %v2694_v24  ;;  %v841_v24 = vld [vmem:[#allocation12 + $0x588] sm:$0xff] }
 0x27d   :  { %2731 = vmatprep.subr.bf16.mxu0 %v2730_v44  ;;  %v2750_v16 = vpack.c.bf16 %v841_v24, %v837_v15  ;;  %v2392_v44 = vld [vmem:[#allocation8] ss:$0 sm:$0xff]  ;;  %v2772_v24 = vpack.c.bf16 %v818_v13, %v814_v12 }
 0x27e   :  { %v827_v15 = vld [vmem:[#allocation12 + $0x398] sm:$0xff] }
 0x27f   :  { %2501 = vmatmul.mubr.f32.vlgmr.msra.gmra.mrb[8].mxu0 %v3680_v31  ;;  %v2710_v31 = vpack.c.bf16 %v699_v27, %v698_v26  ;;  %v2756_v26 = vpack.c.bf16 %v848_v25, %v844_v23  ;;  %v830_v23 = vld [vmem:[#allocation12 + $0x410] sm:$0xff]  ;;  %v1079_v12 = vld [vmem:[#allocation12 + $0x1b8] sm:$0xff] }
 0x280   :  { %946 = vmatprep.mubr.f32.mxu0 %v3295_v0  ;;  %2733 = vmatpush1.bf16.msra.mxu0 %v2732_v49  ;;  %v834_v25 = vld [vmem:[#allocation12 + $0x490] sm:$0xff] }
 0x281   :  { %2711 = vmatprep.subr.bf16.mxu1 %v2710_v31  ;;  %2735 = vmatprep.subr.bf16.mxu0 %v2734_v52  ;;  %v802_v52 = vld [vmem:[#allocation12 + $0x90] sm:$0xff] }
 0x282   :  { %2713 = vmatpush3.bf16.msra.mxu1 %v2710_v31  ;;  %v2391_v31 = vld [vmem:[%s4619_s8] ss:$0 sm:$0xff]  ;;  %v2764_v60 = vpack.c.bf16 %v802_v52, %v798_v51 }
 0x283   :  { %2715 = vmatprep.subr.bf16.mxu1 %v2714_v30 }
 0x284   :  { %2737 = vmatpush1.bf16.msra.mxu0 %v2736_v55  ;;  %v807_v55 = vld [vmem:[#allocation12 + $0x118] sm:$0xff] }
 0x285   :  { %2739 = vmatprep.subr.bf16.mxu0 %v2738_v58  ;;  %v2766_v2 = vpack.c.bf16 %v811_v56, %v807_v55  ;;  %v1067_v55 = vld [vmem:[#allocation12 + $0x38] sm:$0xff] }
 0x286   :  { %2717 = vmatpush3.bf16.msra.mxu1 %v2714_v30 }
 0x287   :  { %2719 = vmatprep.subr.bf16.mxu1 %v2718_v34 }
 0x288   :  { %2741 = vmatpush1.bf16.msra.mxu0 %v2740_v61 }
 0x289   :  { %2743 = vmatprep.subr.bf16.mxu0 %v2742_v5  ;;  %v810_v5 = vld [vmem:[#allocation12 + $0x190] sm:$0xff] }
 0x28a   :  { %2721 = vmatpush3.bf16.msra.mxu1 %v2718_v34  ;;  %v2768_v10 = vpack.c.bf16 %v810_v5, %v806_v4  ;;  %v1068_v4 = vld [vmem:[#allocation12 + $0xa0] sm:$0xff]  ;;  %v1066_v5 = vld [vmem:[#allocation12 + $0x30] sm:$0xff] }
 0x28b   :  { %2723 = vmatprep.subr.bf16.mxu1 %v2722_v37 }
 0x28c   :  { %2745 = vmatpush1.bf16.msra.mxu0 %v2744_v8  ;;  %v815_v8 = vld [vmem:[#allocation12 + $0x218] sm:$0xff] }
 0x28d   :  { %2747 = vmatprep.subr.bf16.mxu0 %v2746_v11  ;;  %v2770_v11 = vpack.c.bf16 %v819_v9, %v815_v8  ;;  %v1073_v9 = vld [vmem:[#allocation12 + $0x128] sm:$0xff] }
 0x28e   :  { %2725 = vmatpush3.bf16.msra.mxu1 %v2722_v37 }
 0x28f   :  { %2727 = vmatprep.subr.bf16.mxu1 %v2726_v40 }
 0x290   :  { %2749 = vmatpush1.bf16.msra.mxu0 %v2748_v14  ;;  %v823_v14 = vld [vmem:[#allocation12 + $0x318] sm:$0xff] }
 0x291   :  { %2751 = vmatprep.subr.bf16.mxu0 %v2750_v16  ;;  %v2774_v16 = vpack.c.bf16 %v827_v15, %v823_v14 }
 0x292   :  { %2729 = vmatpush3.bf16.msra.mxu1 %v2726_v40 }
 0x293   :  { %2763 = vmatprep.subr.bf16.mxu1 %v2762_v48 }
 0x294   :  { %2753 = vmatpush1.bf16.msra.mxu0 %v2752_v19  ;;  %v831_v19 = vld [vmem:[#allocation12 + $0x418] sm:$0xff] }
 0x295   :  { %2755 = vmatprep.subr.bf16.mxu0 %v2754_v22  ;;  %v2778_v22 = vpack.c.bf16 %v835_v20, %v831_v19  ;;  %v1081_v19 = vld [vmem:[#allocation12 + $0x228] sm:$0xff] }
 0x298   :  { %2757 = vmatpush1.bf16.msra.mxu0 %v2756_v26  ;;  %v839_v26 = vld [vmem:[#allocation12 + $0x518] sm:$0xff] }
 0x332   :  { %v2426_v27 = vpop.f32.mrb[4].mxu0 }
 0x333   :  { %v2427_v28 = vpop.f32.mrb[5].mxu0 }
 0x334   :  { %v2428_v29 = vadd.f32 %v2427_v28, %v2426_v27  ;;  %v843_v27 = vld [vmem:[#allocation12 + $0x598] sm:$0xff] }
 0x335   :  { %v2782_v28 = vpack.c.bf16 %v843_v27, %v839_v26  ;;  %v1083_v26 = vld [vmem:[#allocation12 + $0x238] sm:$0xff] }
 0x336   :  { %v3906_v30 = vadd.f32 %v2428_v29, %v2391_v31  ;;  %v2429_v32 = vpop.f32.mrb[6].mxu0  ;;  %v838_v29 = vld [vmem:[#allocation12 + $0x510] sm:$0xff]  ;;  %v1087_v27 = vld [vmem:[#allocation12 + $0x2b8] sm:$0xff] }
 0x337   :  { %v2430_v33 = vpop.f32.mrb[7].mxu0 }
 0x338   :  { %v557_v34 = vsub.f32 0.0, %v3906_v30  ;;  %v2431_v35 = vadd.f32 %v2430_v33, %v2429_v32  ;;  %v842_v32 = vld [vmem:[#allocation12 + $0x590] sm:$0xff]  ;;  %v847_v33 = vld [vmem:[#allocation12 + $0x618] sm:$0xff] }
 0x33a   :  { %v559_v36 = vmul.f32 1.442695, %v557_v34  ;;  %v3909_v37 = vadd.f32 %v2431_v35, %v2391_v31  ;;  %v2780_v31 = vpack.c.bf16 %v834_v25, %v830_v23  ;;  %v851_v34 = vld [vmem:[#allocation12 + $0x698] sm:$0xff]  ;;  %v2784_v35 = vpack.c.bf16 %v842_v32, %v838_v29  ;;  %v1085_v25 = vld [vmem:[#allocation12 + $0x2a8] sm:$0xff]  ;;  %v1080_v29 = vld [vmem:[#allocation12 + $0x220] sm:$0xff] }
 0x33b   :  { %v1084_v32 = vld [vmem:[#allocation12 + $0x2a0] sm:$0xff] }
 0x33c   :  { %2999 = vpow2.f32 %v559_v36  ;;  %v558_v38 = vsub.f32 0.0, %v3909_v37  ;;  %v2786_v36 = vpack.c.bf16 %v851_v34, %v847_v33  ;;  %v2802_v33 = vpack.c.bf16 %v1085_v25, %v1081_v19 }
 0x33d   :  { %v2834_v34 = vpack.c.bf16 %v1087_v27, %v1083_v26  ;;  %v1114_v27 = vld [vmem:[#allocation12 + $0x630] sm:$0xff] }
 0x33e   :  { %v561_v39 = vmul.f32 1.442695, %v558_v38  ;;  %v846_v38 = vld [vmem:[#allocation12 + $0x610] sm:$0xff] }
 0x340   :  { %3001 = vpow2.f32 %v561_v39  ;;  %v850_v39 = vld [vmem:[#allocation12 + $0x690] sm:$0xff] }
 0x346   :  { %v3000_v40 = vpop.eup %2999 }
 0x347   :  { %v563_v41 = vadd.f32 1.0, %v3000_v40  ;;  %v2788_v40 = vpack.c.bf16 %v850_v39, %v846_v38  ;;  %v1089_v38 = vld [vmem:[#allocation12 + $0x328] sm:$0xff] }
 0x349   :  { %3003 = vrcp.f32 %v563_v41  ;;  %v853_v41 = vld [vmem:[#allocation12 + $0x708] sm:$0xff] }
 0x34a   :  { %v3002_v42 = vpop.eup %3001 }
 0x34b   :  { %v564_v43 = vadd.f32 1.0, %v3002_v42  ;;  %v857_v42 = vld [vmem:[#allocation12 + $0x788] sm:$0xff] }
 0x34d   :  { %3005 = vrcp.f32 %v564_v43  ;;  %v855_v43 = vld [vmem:[#allocation12 + $0x718] sm:$0xff] }
 0x352   :  { %v2502_v46 = vpop.f32.mrb[8].mxu0 }
 0x353   :  { %v3004_v47 = vpop.eup %3003  ;;  %v683_v48 = vadd.f32 %v2502_v46, %v2392_v44  ;;  %v677_v49 = vpop.f32.mrb[9].mxu0  ;;  %v852_v46 = vld [vmem:[#allocation12 + $0x700] sm:$0xff] }
 0x354   :  { %v678_v50 = vadd.f32 %v2392_v44, %v677_v49  ;;  %v571_v53 = vadd.f32 %v3004_v47, %v569_v45  ;;  %v2758_v44 = vpack.c.bf16 %v857_v42, %v853_v41  ;;  %v859_v45 = vld [vmem:[#allocation12 + $0x798] sm:$0xff]  ;;  %v854_v49 = vld [vmem:[#allocation12 + $0x710] sm:$0xff] }
 0x355   :  { %v689_v54 = vmul.f32 0.2, %v683_v48  ;;  %vm687_vm9 = vcmp.gt.f32.partialorder %v683_v48, 0.0  ;;  %v2790_v47 = vpack.c.bf16 %v859_v45, %v855_v43  ;;  %v1091_v41 = vld [vmem:[#allocation12 + $0x338] sm:$0xff]  ;;  %v2804_v43 = vpack.c.bf16 %v1084_v32, %v1080_v29  ;;  %v1088_v45 = vld [vmem:[#allocation12 + $0x320] sm:$0xff]  ;;  %v1125_v29 = vld [vmem:[#allocation12 + $0x7a8] sm:$0xff] }
 0x356   :  { %v688_v58 = vmul.f32 0.2, %v678_v50  ;;  %vm686_vm10 = vcmp.gt.f32.partialorder %v678_v50, 0.0  ;;  %574 = vst.msk [vmem:[#allocation15] sm:$0xff] %vm573_vm8, %v571_v53  ;;  %2759 = vmatprep.subr.bf16.mxu0 %v2758_v44  ;;  %v1065_v53 = vld [vmem:[#allocation12 + $0x28] sm:$0xff]  ;;  %v1095_v42 = vld [vmem:[#allocation12 + $0x3b8] sm:$0xff] }
 0x357   :  { %v3006_v59 = vpop.eup %3005  ;;  %v691_v7 = vsel %vm687_vm9, %v683_v48, %v689_v54  ;;  %v856_v48 = vld [vmem:[#allocation12 + $0x780] sm:$0xff]  ;;  %v1069_v54 = vld [vmem:[#allocation12 + $0xa8] sm:$0xff]  ;;  %v1123_v32 = vld [vmem:[#allocation12 + $0x738] sm:$0xff] }
 0x358   :  { %v690_v61 = vsel %vm686_vm10, %v678_v50, %v688_v58  ;;  %v572_v6 = vadd.f32 %v3006_v59, %v570_v57  ;;  %v858_v50 = vld [vmem:[#allocation12 + $0x790] sm:$0xff]  ;;  %v2760_v51 = vpack.c.bf16 %v856_v48, %v852_v46  ;;  %v2794_v56 = vpack.c.bf16 %v1069_v54, %v1065_v53  ;;  %v1071_v57 = vld [vmem:[#allocation12 + $0xb8] sm:$0xff]  ;;  %v1092_v46 = vld [vmem:[#allocation12 + $0x3a0] sm:$0xff] }
 0x359   :  { %2535 = vmatprep.mubr.f32.mxu1 %v690_v61  ;;  %v2792_v52 = vpack.c.bf16 %v858_v50, %v854_v49  ;;  %v2826_v58 = vpack.c.bf16 %v1071_v57, %v1067_v55  ;;  %v2393_v59 = vld [vmem:[#allocation11] ss:$0 sm:$0xff]  ;;  %v1064_v61 = vld [vmem:[#allocation12 + $0x20] sm:$0xff]  ;;  %v2838_v48 = vpack.c.bf16 %v1095_v42, %v1091_v41  ;;  %v1090_v49 = vld [vmem:[#allocation12 + $0x330] sm:$0xff]  ;;  %v2808_v55 = vpack.c.bf16 %v1092_v46, %v1088_v45 }
 0x35a   :  { %2536 = vmatmul.mubr.f32.vlgmr.msra.gmra.mrb[4].mxu1 %v691_v7  ;;  %575 = vst.msk [vmem:[#allocation15 + $0x8] sm:$0xff] %vm573_vm8, %v572_v6  ;;  %2761 = vmatpush1.bf16.msra.mxu0 %v2760_v51  ;;  %v1070_v6 = vld [vmem:[#allocation12 + $0xb0] sm:$0xff]  ;;  %v2796_v14 = vpack.c.bf16 %v1068_v4, %v1064_v61  ;;  %v1097_v51 = vld [vmem:[#allocation12 + $0x428] sm:$0xff]  ;;  %v1099_v53 = vld [vmem:[#allocation12 + $0x438] sm:$0xff] }
 0x35b   :  { %2765 = vmatpush1.bf16.msra.mxu1 %v2764_v60  ;;  %1023 = vmatprep.mubr.f32.mxu1 %v3295_v0  ;;  %v2828_v15 = vpack.c.bf16 %v1070_v6, %v1066_v5  ;;  %v1094_v50 = vld [vmem:[#allocation12 + $0x3b0] sm:$0xff]  ;;  %v1103_v54 = vld [vmem:[#allocation12 + $0x4b8] sm:$0xff]  ;;  %v1096_v57 = vld [vmem:[#allocation12 + $0x420] sm:$0xff] }
 0x35c   :  { %2767 = vmatprep.subr.bf16.mxu1 %v2766_v2  ;;  %2795 = vmatprep.subr.bf16.mxu0 %v2794_v56  ;;  %v2840_v56 = vpack.c.bf16 %v1094_v50, %v1090_v49  ;;  %v1098_v61 = vld [vmem:[#allocation12 + $0x430] sm:$0xff]  ;;  %v1105_v4 = vld [vmem:[#allocation12 + $0x528] sm:$0xff]  ;;  %v1107_v6 = vld [vmem:[#allocation12 + $0x538] sm:$0xff] }
 0x35d   :  { %v1109_v5 = vld [vmem:[#allocation12 + $0x5a8] sm:$0xff]  ;;  %v1122_v42 = vld [vmem:[#allocation12 + $0x730] sm:$0xff]  ;;  %v1335_v46 = vld [vmem:[#allocation12 + $0x58] sm:$0xff] }
 0x35e   :  { %v1337_v45 = vld [vmem:[#allocation12 + $0xc8] sm:$0xff]  ;;  %v1332_v50 = vld [vmem:[#allocation12 + $0x40] sm:$0xff] }
 0x35f   :  { %2769 = vmatpush1.bf16.msra.mxu1 %v2768_v10  ;;  %v1077_v10 = vld [vmem:[#allocation12 + $0x1a8] sm:$0xff] }
 0x360   :  { %2771 = vmatprep.subr.bf16.mxu1 %v2770_v11  ;;  %v1075_v11 = vld [vmem:[#allocation12 + $0x138] sm:$0xff] }
 0x361   :  { %v2830_v23 = vpack.c.bf16 %v1079_v12, %v1075_v11  ;;  %v1108_v11 = vld [vmem:[#allocation12 + $0x5a0] sm:$0xff]  ;;  %v2814_v12 = vpack.c.bf16 %v1109_v5, %v1105_v4  ;;  %v1342_v5 = vld [vmem:[#allocation12 + $0x150] sm:$0xff] }
 0x362   :  { %v1344_v4 = vld [vmem:[#allocation12 + $0x1c0] sm:$0xff] }
 0x363   :  { %2773 = vmatpush1.bf16.msra.mxu1 %v2772_v24  ;;  %v1072_v24 = vld [vmem:[#allocation12 + $0x120] sm:$0xff] }
 0x364   :  { %2775 = vmatprep.subr.bf16.mxu1 %v2774_v16  ;;  %v1076_v16 = vld [vmem:[#allocation12 + $0x1a0] sm:$0xff] }
 0x367   :  { %2777 = vmatpush1.bf16.msra.mxu1 %v2776_v21 }
 0x368   :  { %2779 = vmatprep.subr.bf16.mxu1 %v2778_v22  ;;  %v2798_v22 = vpack.c.bf16 %v1077_v10, %v1073_v9  ;;  %v1104_v10 = vld [vmem:[#allocation12 + $0x520] sm:$0xff] }
 0x369   :  { %v2816_v19 = vpack.c.bf16 %v1108_v11, %v1104_v10  ;;  %v1353_v10 = vld [vmem:[#allocation12 + $0x2c8] sm:$0xff]  ;;  %v1351_v11 = vld [vmem:[#allocation12 + $0x258] sm:$0xff] }
 0x36b   :  { %2781 = vmatpush1.bf16.msra.mxu1 %v2780_v31  ;;  %v2800_v31 = vpack.c.bf16 %v1076_v16, %v1072_v24  ;;  %v1113_v24 = vld [vmem:[#allocation12 + $0x628] sm:$0xff] }
 0x36c   :  { %2783 = vmatprep.subr.bf16.mxu1 %v2782_v28  ;;  %v2832_v28 = vpack.c.bf16 %v1078_v18, %v1074_v17  ;;  %v1117_v16 = vld [vmem:[#allocation12 + $0x6a8] sm:$0xff]  ;;  %v1115_v17 = vld [vmem:[#allocation12 + $0x638] sm:$0xff] }
 0x36d   :  { %v1119_v18 = vld [vmem:[#allocation12 + $0x6b8] sm:$0xff]  ;;  %v2818_v25 = vpack.c.bf16 %v1117_v16, %v1113_v24  ;;  %v1352_v24 = vld [vmem:[#allocation12 + $0x2c0] sm:$0xff] }
 0x36e   :  { %v2850_v26 = vpack.c.bf16 %v1119_v18, %v1115_v17  ;;  %v1350_v18 = vld [vmem:[#allocation12 + $0x250] sm:$0xff] }
 0x36f   :  { %2785 = vmatpush1.bf16.msra.mxu1 %v2784_v35  ;;  %v1082_v35 = vld [vmem:[#allocation12 + $0x230] sm:$0xff] }
 0x370   :  { %2787 = vmatprep.subr.bf16.mxu1 %v2786_v36  ;;  %v1086_v36 = vld [vmem:[#allocation12 + $0x2b0] sm:$0xff] }
 0x371   :  { %v2836_v44 = vpack.c.bf16 %v1086_v36, %v1082_v35  ;;  %v1120_v36 = vld [vmem:[#allocation12 + $0x720] sm:$0xff] }
 0x373   :  { %2789 = vmatpush1.bf16.msra.mxu1 %v2788_v40  ;;  %v1093_v40 = vld [vmem:[#allocation12 + $0x3a8] sm:$0xff] }
 0x374   :  { %2791 = vmatprep.subr.bf16.mxu1 %v2790_v47  ;;  %v2806_v47 = vpack.c.bf16 %v1093_v40, %v1089_v38  ;;  %v1124_v38 = vld [vmem:[#allocation12 + $0x7a0] sm:$0xff] }
 0x377   :  { %2793 = vmatpush1.bf16.msra.mxu1 %v2792_v52  ;;  %v1101_v52 = vld [vmem:[#allocation12 + $0x4a8] sm:$0xff] }
 0x378   :  { %2827 = vmatprep.subr.bf16.mxu1 %v2826_v58  ;;  %v1100_v58 = vld [vmem:[#allocation12 + $0x4a0] sm:$0xff] }
 0x42d   :  { %v2537_v60 = vpop.f32.mrb[4].mxu1 }
 0x42e   :  { %v781_v2 = vpop.f32.mrb[5].mxu1  ;;  %v787_v7 = vadd.f32 %v2537_v60, %v2393_v59  ;;  %v2842_v60 = vpack.c.bf16 %v1103_v54, %v1099_v53  ;;  %v1336_v53 = vld [vmem:[#allocation12 + $0xc0] sm:$0xff]  ;;  %v1334_v54 = vld [vmem:[#allocation12 + $0x50] sm:$0xff] }
 0x42f   :  { %v782_v8 = vadd.f32 %v2393_v59, %v781_v2  ;;  %v2810_v59 = vpack.c.bf16 %v1101_v52, %v1097_v51  ;;  %v1102_v2 = vld [vmem:[#allocation12 + $0x4b0] sm:$0xff] }
 0x430   :  { %v793_v20 = vmul.f32 0.2, %v787_v7  ;;  %vm791_vm12 = vcmp.gt.f32.partialorder %v787_v7, 0.0  ;;  %v2844_v9 = vpack.c.bf16 %v1102_v2, %v1098_v61  ;;  %v1340_v2 = vld [vmem:[#allocation12 + $0x140] sm:$0xff] }
 0x431   :  { %vm790_vm11 = vcmp.gt.f32.partialorder %v782_v8, 0.0  ;;  %v792_v13 = vmul.f32 0.2, %v782_v8 }
 0x432   :  { %v3928_v39 = vsel %vm791_vm12, %v787_v7, %v793_v20  ;;  %v1111_v7 = vld [vmem:[#allocation12 + $0x5b8] sm:$0xff] }
 0x433   :  { %v3921_v21 = vsel %vm790_vm11, %v782_v8, %v792_v13  ;;  %v2812_v8 = vpack.c.bf16 %v1100_v58, %v1096_v57  ;;  %v2846_v13 = vpack.c.bf16 %v1111_v7, %v1107_v6  ;;  %v1345_v57 = vld [vmem:[#allocation12 + $0x1c8] sm:$0xff]  ;;  %v1343_v58 = vld [vmem:[#allocation12 + $0x158] sm:$0xff]  ;;  %v1346_v6 = vld [vmem:[#allocation12 + $0x1d0] sm:$0xff] }
 0x434   :  { %947 = vmatmul.mubr.f32.vlgmr.msra.gmra.mrb[10].mxu0 %v3921_v21  ;;  %1024 = vmatmul.mubr.f32.vlgmr.msra.gmra.mrb[6].mxu1 %v3921_v21  ;;  %v1349_v7 = vld [vmem:[#allocation12 + $0x248] sm:$0xff] }
 0x435   :  { %2797 = vmatpush1.bf16.msra.mxu0 %v2796_v14  ;;  %2829 = vmatpush1.bf16.msra.mxu1 %v2828_v15  ;;  %v1106_v14 = vld [vmem:[#allocation12 + $0x530] sm:$0xff]  ;;  %v2866_v16 = vpack.c.bf16 %v1353_v10, %v1349_v7 }
 0x436   :  { %952 = vmatprep.mubr.f32.mxu0 %v3295_v0  ;;  %1029 = vmatprep.mubr.f32.mxu1 %v3295_v0  ;;  %v1110_v15 = vld [vmem:[#allocation12 + $0x5b0] sm:$0xff] }
 0x437   :  { %2799 = vmatprep.subr.bf16.mxu0 %v2798_v22  ;;  %2831 = vmatprep.subr.bf16.mxu1 %v2830_v23  ;;  %v2848_v20 = vpack.c.bf16 %v1110_v15, %v1106_v14  ;;  %v1112_v22 = vld [vmem:[#allocation12 + $0x620] sm:$0xff]  ;;  %v2896_v14 = vpack.c.bf16 %v1346_v6, %v1342_v5  ;;  %v1387_v5 = vld [vmem:[#allocation12 + $0x6d8] sm:$0xff] }
 0x438   :  { %953 = vmatmul.mubr.f32.gmra.mrb[12].mxu0 %v3928_v39  ;;  %1030 = vmatmul.mubr.f32.gmra.mrb[8].mxu1 %v3928_v39  ;;  %v1116_v23 = vld [vmem:[#allocation12 + $0x6a0] sm:$0xff] }
 0x439   :  { %2801 = vmatpush1.bf16.msra.mxu0 %v2800_v31  ;;  %2833 = vmatpush1.bf16.msra.mxu1 %v2832_v28  ;;  %v1118_v31 = vld [vmem:[#allocation12 + $0x6b0] sm:$0xff]  ;;  %v1121_v28 = vld [vmem:[#allocation12 + $0x728] sm:$0xff]  ;;  %v1348_v15 = vld [vmem:[#allocation12 + $0x240] sm:$0xff] }
 0x43a   :  { %2803 = vmatprep.subr.bf16.mxu0 %v2802_v33  ;;  %2835 = vmatprep.subr.bf16.mxu1 %v2834_v34  ;;  %v1127_v33 = vld [vmem:[#allocation12 + $0x7b8] sm:$0xff]  ;;  %v2820_v34 = vpack.c.bf16 %v1116_v23, %v1112_v22  ;;  %v2852_v35 = vpack.c.bf16 %v1118_v31, %v1114_v27  ;;  %v2822_v40 = vpack.c.bf16 %v1125_v29, %v1121_v28  ;;  %v1361_v22 = vld [vmem:[#allocation12 + $0x3c8] sm:$0xff]  ;;  %v1356_v31 = vld [vmem:[#allocation12 + $0x340] sm:$0xff] }
 0x43b   :  { %1214 = vmatprep.mubr.f32.mxu0 %v3295_v0  ;;  %1291 = vmatprep.mubr.f32.mxu1 %v3295_v0  ;;  %v2854_v41 = vpack.c.bf16 %v1127_v33, %v1123_v32  ;;  %v1359_v23 = vld [vmem:[#allocation12 + $0x358] sm:$0xff]  ;;  %v1360_v28 = vld [vmem:[#allocation12 + $0x3c0] sm:$0xff]  ;;  %v1358_v33 = vld [vmem:[#allocation12 + $0x350] sm:$0xff] }
 0x43d   :  { %2805 = vmatpush1.bf16.msra.mxu0 %v2804_v43  ;;  %2837 = vmatpush1.bf16.msra.mxu1 %v2836_v44  ;;  %v1126_v43 = vld [vmem:[#allocation12 + $0x7b0] sm:$0xff]  ;;  %v1333_v44 = vld [vmem:[#allocation12 + $0x48] sm:$0xff] }
 0x43e   :  { %2807 = vmatprep.subr.bf16.mxu0 %v2806_v47  ;;  %2839 = vmatprep.subr.bf16.mxu1 %v2838_v48  ;;  %v1339_v47 = vld [vmem:[#allocation12 + $0xd8] sm:$0xff]  ;;  %v2824_v48 = vpack.c.bf16 %v1124_v38, %v1120_v36  ;;  %v2856_v49 = vpack.c.bf16 %v1126_v43, %v1122_v42  ;;  %v2858_v51 = vpack.c.bf16 %v1337_v45, %v1333_v44  ;;  %v1369_v36 = vld [vmem:[#allocation12 + $0x4c8] sm:$0xff]  ;;  %v1364_v43 = vld [vmem:[#allocation12 + $0x440] sm:$0xff] }
 0x43f   :  { %v2890_v52 = vpack.c.bf16 %v1339_v47, %v1335_v46  ;;  %v1367_v38 = vld [vmem:[#allocation12 + $0x458] sm:$0xff]  ;;  %v1368_v44 = vld [vmem:[#allocation12 + $0x4c0] sm:$0xff]  ;;  %v1366_v47 = vld [vmem:[#allocation12 + $0x450] sm:$0xff] }
 0x441   :  { %2809 = vmatpush1.bf16.msra.mxu0 %v2808_v55  ;;  %2841 = vmatpush1.bf16.msra.mxu1 %v2840_v56  ;;  %v1338_v55 = vld [vmem:[#allocation12 + $0xd0] sm:$0xff]  ;;  %v1341_v56 = vld [vmem:[#allocation12 + $0x148] sm:$0xff] }
 0x442   :  { %2811 = vmatprep.subr.bf16.mxu0 %v2810_v59  ;;  %2843 = vmatprep.subr.bf16.mxu1 %v2842_v60  ;;  %v1347_v59 = vld [vmem:[#allocation12 + $0x1d8] sm:$0xff]  ;;  %v2860_v60 = vpack.c.bf16 %v1336_v53, %v1332_v50  ;;  %v2892_v61 = vpack.c.bf16 %v1338_v55, %v1334_v54  ;;  %v1377_v50 = vld [vmem:[#allocation12 + $0x5c8] sm:$0xff]  ;;  %v2876_v53 = vpack.c.bf16 %v1368_v44, %v1364_v43  ;;  %v1372_v55 = vld [vmem:[#allocation12 + $0x540] sm:$0xff] }
 0x443   :  { %v1613_v43 = vld [vmem:[#allocation12 + $0x1e8] sm:$0xff]  ;;  %v1611_v44 = vld [vmem:[#allocation12 + $0x178] sm:$0xff] }
 0x445   :  { %2813 = vmatpush1.bf16.msra.mxu0 %v2812_v8  ;;  %2845 = vmatpush1.bf16.msra.mxu1 %v2844_v9  ;;  %v2862_v8 = vpack.c.bf16 %v1345_v57, %v1341_v56  ;;  %v2894_v9 = vpack.c.bf16 %v1347_v59, %v1343_v58  ;;  %v1376_v56 = vld [vmem:[#allocation12 + $0x5c0] sm:$0xff]  ;;  %v1374_v59 = vld [vmem:[#allocation12 + $0x550] sm:$0xff] }
 0x446   :  { %2815 = vmatprep.subr.bf16.mxu0 %v2814_v12  ;;  %2847 = vmatprep.subr.bf16.mxu1 %v2846_v13  ;;  %v1355_v12 = vld [vmem:[#allocation12 + $0x2d8] sm:$0xff]  ;;  %v2864_v13 = vpack.c.bf16 %v1344_v4, %v1340_v2  ;;  %v1385_v2 = vld [vmem:[#allocation12 + $0x6c8] sm:$0xff]  ;;  %v2880_v6 = vpack.c.bf16 %v1376_v56, %v1372_v55 }
 0x447   :  { %v2898_v17 = vpack.c.bf16 %v1355_v12, %v1351_v11  ;;  %v1383_v4 = vld [vmem:[#allocation12 + $0x658] sm:$0xff]  ;;  %v1382_v12 = vld [vmem:[#allocation12 + $0x650] sm:$0xff]  ;;  %v1621_v55 = vld [vmem:[#allocation12 + $0x2e8] sm:$0xff] }
 0x448   :  { %v2914_v11 = vpack.c.bf16 %v1387_v5, %v1383_v4  ;;  %v1619_v56 = vld [vmem:[#allocation12 + $0x278] sm:$0xff]  ;;  %v1618_v5 = vld [vmem:[#allocation12 + $0x270] sm:$0xff] }
 0x449   :  { %2817 = vmatpush1.bf16.msra.mxu0 %v2816_v19  ;;  %2849 = vmatpush1.bf16.msra.mxu1 %v2848_v20  ;;  %v1354_v19 = vld [vmem:[#allocation12 + $0x2d0] sm:$0xff]  ;;  %v1357_v20 = vld [vmem:[#allocation12 + $0x348] sm:$0xff] }
 0x44a   :  { %2819 = vmatprep.subr.bf16.mxu0 %v2818_v25  ;;  %2851 = vmatprep.subr.bf16.mxu1 %v2850_v26  ;;  %v1363_v25 = vld [vmem:[#allocation12 + $0x3d8] sm:$0xff]  ;;  %v2868_v26 = vpack.c.bf16 %v1352_v24, %v1348_v15  ;;  %v2900_v27 = vpack.c.bf16 %v1354_v19, %v1350_v18  ;;  %v2870_v29 = vpack.c.bf16 %v1361_v22, %v1357_v20  ;;  %v1393_v15 = vld [vmem:[#allocation12 + $0x7c8] sm:$0xff]  ;;  %v1388_v19 = vld [vmem:[#allocation12 + $0x740] sm:$0xff] }
 0x44b   :  { %v2902_v32 = vpack.c.bf16 %v1363_v25, %v1359_v23  ;;  %v1391_v24 = vld [vmem:[#allocation12 + $0x758] sm:$0xff]  ;;  %v1392_v20 = vld [vmem:[#allocation12 + $0x7c0] sm:$0xff]  ;;  %v1390_v25 = vld [vmem:[#allocation12 + $0x750] sm:$0xff] }
 0x44d   :  { %2821 = vmatpush1.bf16.msra.mxu0 %v2820_v34  ;;  %2853 = vmatpush1.bf16.msra.mxu1 %v2852_v35  ;;  %v1362_v34 = vld [vmem:[#allocation12 + $0x3d0] sm:$0xff]  ;;  %v1365_v35 = vld [vmem:[#allocation12 + $0x448] sm:$0xff] }
 0x44e   :  { %2823 = vmatprep.subr.bf16.mxu0 %v2822_v40  ;;  %2855 = vmatprep.subr.bf16.mxu1 %v2854_v41  ;;  %v1371_v40 = vld [vmem:[#allocation12 + $0x4d8] sm:$0xff]  ;;  %v2872_v41 = vpack.c.bf16 %v1360_v28, %v1356_v31  ;;  %v2904_v42 = vpack.c.bf16 %v1362_v34, %v1358_v33  ;;  %v2874_v45 = vpack.c.bf16 %v1369_v36, %v1365_v35  ;;  %v1605_v31 = vld [vmem:[#allocation12 + $0xe8] sm:$0xff]  ;;  %v1600_v34 = vld [vmem:[#allocation12 + $0x60] sm:$0xff] }
 0x44f   :  { %v2906_v46 = vpack.c.bf16 %v1371_v40, %v1367_v38  ;;  %v1603_v28 = vld [vmem:[#allocation12 + $0x78] sm:$0xff]  ;;  %v1604_v38 = vld [vmem:[#allocation12 + $0xe0] sm:$0xff]  ;;  %v1602_v40 = vld [vmem:[#allocation12 + $0x70] sm:$0xff] }
 0x451   :  { %2825 = vmatpush1.bf16.msra.mxu0 %v2824_v48  ;;  %2857 = vmatpush1.bf16.msra.mxu1 %v2856_v49  ;;  %v1370_v48 = vld [vmem:[#allocation12 + $0x4d0] sm:$0xff]  ;;  %v1373_v49 = vld [vmem:[#allocation12 + $0x548] sm:$0xff] }
 0x452   :  { %2859 = vmatprep.subr.bf16.mxu0 %v2858_v51  ;;  %2891 = vmatprep.subr.bf16.mxu1 %v2890_v52  ;;  %v1375_v51 = vld [vmem:[#allocation12 + $0x558] sm:$0xff]  ;;  %v2908_v54 = vpack.c.bf16 %v1370_v48, %v1366_v47  ;;  %v2878_v57 = vpack.c.bf16 %v1377_v50, %v1373_v49  ;;  %v1608_v48 = vld [vmem:[#allocation12 + $0x160] sm:$0xff]  ;;  %v1610_v50 = vld [vmem:[#allocation12 + $0x170] sm:$0xff] }
 0x453   :  { %v1379_v52 = vld [vmem:[#allocation12 + $0x5d8] sm:$0xff]  ;;  %v1612_v49 = vld [vmem:[#allocation12 + $0x1e0] sm:$0xff] }
 0x454   :  { %1215 = vmatmul.mubr.f32.vlgmr.msra.gmra.mrb[14].mxu0 %v3921_v21  ;;  %1292 = vmatmul.mubr.f32.vlgmr.msra.gmra.mrb[10].mxu1 %v3921_v21  ;;  %v2910_v58 = vpack.c.bf16 %v1379_v52, %v1375_v51  ;;  %v1614_v51 = vld [vmem:[#allocation12 + $0x1f0] sm:$0xff]  ;;  %v1617_v52 = vld [vmem:[#allocation12 + $0x268] sm:$0xff] }
 0x455   :  { %2861 = vmatpush1.bf16.msra.mxu0 %v2860_v60  ;;  %2893 = vmatpush1.bf16.msra.mxu1 %v2892_v61  ;;  %v1378_v60 = vld [vmem:[#allocation12 + $0x5d0] sm:$0xff]  ;;  %v1381_v61 = vld [vmem:[#allocation12 + $0x648] sm:$0xff] }
 0x456   :  { %1220 = vmatprep.mubr.f32.mxu0 %v3295_v0  ;;  %1297 = vmatprep.mubr.f32.mxu1 %v3295_v0  ;;  %v2912_v7 = vpack.c.bf16 %v1378_v60, %v1374_v59  ;;  %v2882_v10 = vpack.c.bf16 %v1385_v2, %v1381_v61  ;;  %v2960_v59 = vpack.c.bf16 %v1614_v51, %v1610_v50  ;;  %v1616_v60 = vld [vmem:[#allocation12 + $0x260] sm:$0xff]  ;;  %v1655_v50 = vld [vmem:[#allocation12 + $0x6f8] sm:$0xff] }
 0x457   :  { %2863 = vmatprep.subr.bf16.mxu0 %v2862_v8  ;;  %2895 = vmatprep.subr.bf16.mxu1 %v2894_v9  ;;  %v1380_v8 = vld [vmem:[#allocation12 + $0x640] sm:$0xff]  ;;  %v2930_v2 = vpack.c.bf16 %v1621_v55, %v1617_v52 }
 0x458   :  { %1221 = vmatmul.mubr.f32.gmra.mrb[16].mxu0 %v3928_v39  ;;  %1298 = vmatmul.mubr.f32.gmra.mrb[12].mxu1 %v3928_v39  ;;  %v1384_v9 = vld [vmem:[#allocation12 + $0x6c0] sm:$0xff] }
 0x459   :  { %2865 = vmatpush1.bf16.msra.mxu0 %v2864_v13  ;;  %2897 = vmatpush1.bf16.msra.mxu1 %v2896_v14  ;;  %v1386_v13 = vld [vmem:[#allocation12 + $0x6d0] sm:$0xff]  ;;  %v1389_v14 = vld [vmem:[#allocation12 + $0x748] sm:$0xff]  ;;  %v1620_v61 = vld [vmem:[#allocation12 + $0x2e0] sm:$0xff] }
 0x45a   :  { %2867 = vmatprep.subr.bf16.mxu0 %v2866_v16  ;;  %2899 = vmatprep.subr.bf16.mxu1 %v2898_v17  ;;  %v1395_v16 = vld [vmem:[#allocation12 + $0x7d8] sm:$0xff]  ;;  %v2884_v17 = vpack.c.bf16 %v1384_v9, %v1380_v8  ;;  %v2916_v18 = vpack.c.bf16 %v1386_v13, %v1382_v12  ;;  %v2886_v22 = vpack.c.bf16 %v1393_v15, %v1389_v14  ;;  %v1629_v8 = vld [vmem:[#allocation12 + $0x3e8] sm:$0xff]  ;;  %v1624_v13 = vld [vmem:[#allocation12 + $0x360] sm:$0xff] }
 0x45b   :  { %1482 = vmatprep.mubr.f32.mxu0 %v3295_v0  ;;  %1559 = vmatprep.mubr.f32.mxu1 %v3295_v0  ;;  %v2918_v23 = vpack.c.bf16 %v1395_v16, %v1391_v24  ;;  %v1627_v9 = vld [vmem:[#allocation12 + $0x378] sm:$0xff]  ;;  %v1628_v14 = vld [vmem:[#allocation12 + $0x3e0] sm:$0xff]  ;;  %v1626_v16 = vld [vmem:[#allocation12 + $0x370] sm:$0xff] }
 0x45d   :  { %2869 = vmatpush1.bf16.msra.mxu0 %v2868_v26  ;;  %2901 = vmatpush1.bf16.msra.mxu1 %v2900_v27  ;;  %v1394_v26 = vld [vmem:[#allocation12 + $0x7d0] sm:$0xff]  ;;  %v1601_v27 = vld [vmem:[#allocation12 + $0x68] sm:$0xff] }
 0x45e   :  { %2871 = vmatprep.subr.bf16.mxu0 %v2870_v29  ;;  %2903 = vmatprep.subr.bf16.mxu1 %v2902_v32  ;;  %v1607_v29 = vld [vmem:[#allocation12 + $0xf8] sm:$0xff]  ;;  %v2888_v32 = vpack.c.bf16 %v1392_v20, %v1388_v19  ;;  %v2920_v33 = vpack.c.bf16 %v1394_v26, %v1390_v25  ;;  %v2922_v35 = vpack.c.bf16 %v1605_v31, %v1601_v27  ;;  %v1637_v19 = vld [vmem:[#allocation12 + $0x4e8] sm:$0xff]  ;;  %v1632_v26 = vld [vmem:[#allocation12 + $0x460] sm:$0xff] }
 0x45f   :  { %v2954_v36 = vpack.c.bf16 %v1607_v29, %v1603_v28  ;;  %v1635_v20 = vld [vmem:[#allocation12 + $0x478] sm:$0xff]  ;;  %v1636_v27 = vld [vmem:[#allocation12 + $0x4e0] sm:$0xff]  ;;  %v1634_v29 = vld [vmem:[#allocation12 + $0x470] sm:$0xff] }
 0x461   :  { %2873 = vmatpush1.bf16.msra.mxu0 %v2872_v41  ;;  %2905 = vmatpush1.bf16.msra.mxu1 %v2904_v42  ;;  %v1606_v41 = vld [vmem:[#allocation12 + $0xf0] sm:$0xff]  ;;  %v1609_v42 = vld [vmem:[#allocation12 + $0x168] sm:$0xff] }
 0x462   :  { %2875 = vmatprep.subr.bf16.mxu0 %v2874_v45  ;;  %2907 = vmatprep.subr.bf16.mxu1 %v2906_v46  ;;  %v1615_v45 = vld [vmem:[#allocation12 + $0x1f8] sm:$0xff]  ;;  %v2924_v46 = vpack.c.bf16 %v1604_v38, %v1600_v34  ;;  %v2956_v47 = vpack.c.bf16 %v1606_v41, %v1602_v40  ;;  %v1645_v34 = vld [vmem:[#allocation12 + $0x5e8] sm:$0xff]  ;;  %v2940_v38 = vpack.c.bf16 %v1636_v27, %v1632_v26  ;;  %v1640_v41 = vld [vmem:[#allocation12 + $0x560] sm:$0xff] }
 0x465   :  { %2877 = vmatpush1.bf16.msra.mxu0 %v2876_v53  ;;  %2909 = vmatpush1.bf16.msra.mxu1 %v2908_v54  ;;  %v2926_v53 = vpack.c.bf16 %v1613_v43, %v1609_v42  ;;  %v2958_v54 = vpack.c.bf16 %v1615_v45, %v1611_v44  ;;  %v1644_v42 = vld [vmem:[#allocation12 + $0x5e0] sm:$0xff]  ;;  %v1642_v45 = vld [vmem:[#allocation12 + $0x570] sm:$0xff] }
 0x466   :  { %2879 = vmatprep.subr.bf16.mxu0 %v2878_v57  ;;  %2911 = vmatprep.subr.bf16.mxu1 %v2910_v58  ;;  %v1623_v57 = vld [vmem:[#allocation12 + $0x2f8] sm:$0xff]  ;;  %v2928_v58 = vpack.c.bf16 %v1612_v49, %v1608_v48  ;;  %v1653_v48 = vld [vmem:[#allocation12 + $0x6e8] sm:$0xff]  ;;  %v2944_v51 = vpack.c.bf16 %v1644_v42, %v1640_v41 }
 0x467   :  { %v2962_v4 = vpack.c.bf16 %v1623_v57, %v1619_v56  ;;  %v1651_v49 = vld [vmem:[#allocation12 + $0x678] sm:$0xff]  ;;  %v1650_v57 = vld [vmem:[#allocation12 + $0x670] sm:$0xff] }
 0x468   :  { %v2978_v56 = vpack.c.bf16 %v1655_v50, %v1651_v49 }
 0x469   :  { %2881 = vmatpush1.bf16.msra.mxu0 %v2880_v6  ;;  %2913 = vmatpush1.bf16.msra.mxu1 %v2912_v7  ;;  %v1622_v6 = vld [vmem:[#allocation12 + $0x2f0] sm:$0xff]  ;;  %v1625_v7 = vld [vmem:[#allocation12 + $0x368] sm:$0xff] }
 0x46a   :  { %2883 = vmatprep.subr.bf16.mxu0 %v2882_v10  ;;  %2915 = vmatprep.subr.bf16.mxu1 %v2914_v11  ;;  %v1631_v10 = vld [vmem:[#allocation12 + $0x3f8] sm:$0xff]  ;;  %v2932_v11 = vpack.c.bf16 %v1620_v61, %v1616_v60  ;;  %v2964_v12 = vpack.c.bf16 %v1622_v6, %v1618_v5  ;;  %v2934_v15 = vpack.c.bf16 %v1629_v8, %v1625_v7  ;;  %v1661_v60 = vld [vmem:[#allocation12 + $0x7e8] sm:$0xff]  ;;  %v1656_v6 = vld [vmem:[#allocation12 + $0x760] sm:$0xff] }
 0x46b   :  { %v2966_v24 = vpack.c.bf16 %v1631_v10, %v1627_v9  ;;  %v1659_v61 = vld [vmem:[#allocation12 + $0x778] sm:$0xff]  ;;  %v1660_v9 = vld [vmem:[#allocation12 + $0x7e0] sm:$0xff]  ;;  %v1658_v10 = vld [vmem:[#allocation12 + $0x770] sm:$0xff] }
 0x46d   :  { %2885 = vmatpush1.bf16.msra.mxu0 %v2884_v17  ;;  %2917 = vmatpush1.bf16.msra.mxu1 %v2916_v18  ;;  %v1630_v17 = vld [vmem:[#allocation12 + $0x3f0] sm:$0xff]  ;;  %v1633_v18 = vld [vmem:[#allocation12 + $0x468] sm:$0xff] }
 0x46e   :  { %2887 = vmatprep.subr.bf16.mxu0 %v2886_v22  ;;  %2919 = vmatprep.subr.bf16.mxu1 %v2918_v23  ;;  %v1639_v22 = vld [vmem:[#allocation12 + $0x4f8] sm:$0xff]  ;;  %v2936_v23 = vpack.c.bf16 %v1628_v14, %v1624_v13  ;;  %v2968_v25 = vpack.c.bf16 %v1630_v17, %v1626_v16  ;;  %v2938_v31 = vpack.c.bf16 %v1637_v19, %v1633_v18  ;;  %v3957_v14 = vsub.s32 2, %v3864_v63 }
 0x46f   :  { %v2970_v28 = vpack.c.bf16 %v1639_v22, %v1635_v20 }
 0x471   :  { %2889 = vmatpush1.bf16.msra.mxu0 %v2888_v32  ;;  %2921 = vmatpush1.bf16.msra.mxu1 %v2920_v33  ;;  %v1638_v32 = vld [vmem:[#allocation12 + $0x4f0] sm:$0xff]  ;;  %v1641_v33 = vld [vmem:[#allocation12 + $0x568] sm:$0xff] }
 0x472   :  { %2923 = vmatprep.subr.bf16.mxu0 %v2922_v35  ;;  %2955 = vmatprep.subr.bf16.mxu1 %v2954_v36  ;;  %v1643_v35 = vld [vmem:[#allocation12 + $0x578] sm:$0xff]  ;;  %v2972_v40 = vpack.c.bf16 %v1638_v32, %v1634_v29  ;;  %v2942_v43 = vpack.c.bf16 %v1645_v34, %v1641_v33 }
 0x473   :  { %v1647_v36 = vld [vmem:[#allocation12 + $0x5f8] sm:$0xff] }
 0x474   :  { %1483 = vmatmul.mubr.f32.vlgmr.msra.gmra.mrb[18].mxu0 %v3921_v21  ;;  %1560 = vmatmul.mubr.f32.vlgmr.msra.gmra.mrb[14].mxu1 %v3921_v21  ;;  %v2974_v44 = vpack.c.bf16 %v1647_v36, %v1643_v35 }
 0x475   :  { %2925 = vmatpush1.bf16.msra.mxu0 %v2924_v46  ;;  %2957 = vmatpush1.bf16.msra.mxu1 %v2956_v47  ;;  %v1646_v46 = vld [vmem:[#allocation12 + $0x5f0] sm:$0xff]  ;;  %v1649_v47 = vld [vmem:[#allocation12 + $0x668] sm:$0xff] }
 0x476   :  { %1488 = vmatprep.mubr.f32.mxu0 %v3295_v0  ;;  %1565 = vmatprep.mubr.f32.mxu1 %v3295_v0  ;;  %v2976_v52 = vpack.c.bf16 %v1646_v46, %v1642_v45  ;;  %v2946_v55 = vpack.c.bf16 %v1653_v48, %v1649_v47 }
 0x477   :  { %2927 = vmatprep.subr.bf16.mxu0 %v2926_v53  ;;  %2959 = vmatprep.subr.bf16.mxu1 %v2958_v54  ;;  %v1648_v53 = vld [vmem:[#allocation12 + $0x660] sm:$0xff] }
 0x478   :  { %1489 = vmatmul.mubr.f32.gmra.mrb[20].mxu0 %v3928_v39  ;;  %1566 = vmatmul.mubr.f32.gmra.mrb[16].mxu1 %v3928_v39  ;;  %v1652_v54 = vld [vmem:[#allocation12 + $0x6e0] sm:$0xff] }
 0x479   :  { %2929 = vmatpush1.bf16.msra.mxu0 %v2928_v58  ;;  %2961 = vmatpush1.bf16.msra.mxu1 %v2960_v59  ;;  %v1654_v58 = vld [vmem:[#allocation12 + $0x6f0] sm:$0xff]  ;;  %v1657_v59 = vld [vmem:[#allocation12 + $0x768] sm:$0xff] }
 0x47a   :  { %2931 = vmatprep.subr.bf16.mxu0 %v2930_v2  ;;  %2963 = vmatprep.subr.bf16.mxu1 %v2962_v4  ;;  %v1663_v2 = vld [vmem:[#allocation12 + $0x7f8] sm:$0xff]  ;;  %v2948_v4 = vpack.c.bf16 %v1652_v54, %v1648_v53  ;;  %v2980_v5 = vpack.c.bf16 %v1654_v58, %v1650_v57  ;;  %v2950_v7 = vpack.c.bf16 %v1661_v60, %v1657_v59 }
 0x47b   :  { %1750 = vmatprep.mubr.f32.mxu0 %v3295_v0  ;;  %1827 = vmatprep.mubr.f32.mxu1 %v3295_v0  ;;  %v2982_v8 = vpack.c.bf16 %v1663_v2, %v1659_v61  ;;  %v1396_v2 = vld [vmem:[#allocation14 + $0x8] sm:$0xf] }
 0x47d   :  { %2933 = vmatpush1.bf16.msra.mxu0 %v2932_v11  ;;  %2965 = vmatpush1.bf16.msra.mxu1 %v2964_v12  ;;  %v1662_v11 = vld [vmem:[#allocation12 + $0x7f0] sm:$0xff]  ;;  %v2952_v12 = vpack.c.bf16 %v1660_v9, %v1656_v6  ;;  %v1405_v6 = vrot.slane %v1396_v2, %v3873_v3 }
 0x47e   :  { %2935 = vmatprep.subr.bf16.mxu0 %v2934_v15  ;;  %2967 = vmatprep.subr.bf16.mxu1 %v2966_v24  ;;  %v2984_v13 = vpack.c.bf16 %v1662_v11, %v1658_v10  ;;  %v860_v15 = vld [vmem:[#allocation14] sm:$0xf]  ;;  %v3960_v24 = vsub.s32 3, %v3864_v63 }
 0x47f   :  { %v865_v16 = vrot.slane %v860_v15, %v3867_v1  ;;  %v873_v17 = vrot.slane %v860_v15, %v3957_v14 }
 0x480   :  { %v877_v18 = vrot.slane %v860_v15, %v3960_v24 }
 0x481   :  { %2937 = vmatpush1.bf16.msra.mxu0 %v2936_v23  ;;  %2969 = vmatpush1.bf16.msra.mxu1 %v2968_v25 }
 0x482   :  { %2939 = vmatprep.subr.bf16.mxu0 %v2938_v31  ;;  %2971 = vmatprep.subr.bf16.mxu1 %v2970_v28 }
 0x485   :  { %2941 = vmatpush1.bf16.msra.mxu0 %v2940_v38  ;;  %2973 = vmatpush1.bf16.msra.mxu1 %v2972_v40  ;;  %v1128_v38 = vld [vmem:[#allocation14 + $0x4] sm:$0xf] }
 0x486   :  { %2943 = vmatprep.subr.bf16.mxu0 %v2942_v43  ;;  %2975 = vmatprep.subr.bf16.mxu1 %v2974_v44  ;;  %v1133_v40 = vrot.slane %v1128_v38, %v3867_v1  ;;  %v1141_v41 = vrot.slane %v1128_v38, %v3957_v14  ;;  %v1137_v42 = vrot.slane %v1128_v38, %v3873_v3 }
 0x487   :  { %v1145_v43 = vrot.slane %v1128_v38, %v3960_v24 }
 0x489   :  { %2945 = vmatpush1.bf16.msra.mxu0 %v2944_v51  ;;  %2977 = vmatpush1.bf16.msra.mxu1 %v2976_v52 }
 0x48a   :  { %2947 = vmatprep.subr.bf16.mxu0 %v2946_v55  ;;  %2979 = vmatprep.subr.bf16.mxu1 %v2978_v56 }
 0x48d   :  { %2949 = vmatpush1.bf16.msra.mxu0 %v2948_v4  ;;  %2981 = vmatpush1.bf16.msra.mxu1 %v2980_v5  ;;  %v1401_v4 = vrot.slane %v1396_v2, %v3867_v1  ;;  %v1409_v5 = vrot.slane %v1396_v2, %v3957_v14 }
 0x48e   :  { %2951 = vmatprep.subr.bf16.mxu0 %v2950_v7  ;;  %2983 = vmatprep.subr.bf16.mxu1 %v2982_v8  ;;  %v1413_v7 = vrot.slane %v1396_v2, %v3960_v24 }
 0x491   :  { %2953 = vmatpush1.bf16.msra.mxu0 %v2952_v12  ;;  %2985 = vmatpush1.bf16.msra.mxu1 %v2984_v13 }
 0x494   :  { %1751 = vmatmul.mubr.f32.vlgmr.msra.gmra.mrb[22].mxu0 %v3921_v21  ;;  %1828 = vmatmul.mubr.f32.vlgmr.msra.gmra.mrb[18].mxu1 %v3921_v21  ;;  %v869_v21 = vrot.slane %v860_v15, %v3873_v3 }
 0x495   :  { %1756 = vmatprep.mubr.f32.mxu0 %v3295_v0  ;;  %1833 = vmatprep.mubr.f32.mxu1 %v3295_v0 }
 0x498   :  { %1757 = vmatmul.mubr.f32.gmra.mrb[24].mxu0 %v3928_v39  ;;  %1834 = vmatmul.mubr.f32.gmra.mrb[20].mxu1 %v3928_v39 }
 0x507   :  { %v948_v0 = vpop.f32.mrb[10].mxu0  ;;  %v1025_v19 = vpop.f32.mrb[6].mxu1 }
 0x508   :  { %v3966_v20 = vadd.f32 %v948_v0, %v865_v16  ;;  %v3968_v39 = vadd.f32 %v1025_v19, %v873_v17  ;;  %v950_v22 = vpop.f32.mrb[11].mxu0  ;;  %v1027_v23 = vpop.f32.mrb[7].mxu1 }
 0x509   :  { %v3970_v25 = vadd.f32 %v950_v22, %v869_v21  ;;  %v3972_v63 = vadd.f32 %v1027_v23, %v877_v18 }
 0x50a   :  { %3282 = vmaxabs.init.f32.vacc1 %v3966_v20, %v3968_v39 }
 0x50b   :  { %v954_v26 = vpop.f32.mrb[12].mxu0  ;;  %v1031_v27 = vpop.f32.mrb[8].mxu1 }
 0x50c   :  { %v3974_v31 = vadd.f32 %v954_v26, %v865_v16  ;;  %v3976_v28 = vadd.f32 %v1031_v27, %v873_v17  ;;  %v956_v29 = vpop.f32.mrb[13].mxu0  ;;  %v1033_v32 = vpop.f32.mrb[9].mxu1  ;;  %3283 = vmaxabs.f32.vacc1 %v3970_v25, %v3972_v63 }
 0x50d   :  { %v3980_v33 = vadd.f32 %v956_v29, %v869_v21  ;;  %v3982_v34 = vadd.f32 %v1033_v32, %v877_v18  ;;  %v1664_v32 = vld [vmem:[#allocation14 + $0xc] sm:$0xf] }
 0x50e   :  { %v3284_v35 = vmovacc.low.even.vacc1  ;;  %3279 = vmaxabs.init.f32.vacc0 %v3974_v31, %v3976_v28  ;;  %v1673_v38 = vrot.slane %v1664_v32, %v3873_v3 }
 0x510   :  { %1055 = vmax.xlane.f32.xlu0 %v3284_v35  ;;  %3280 = vmaxabs.f32.vacc0 %v3980_v33, %v3982_v34  ;;  %v1669_v35 = vrot.slane %v1664_v32, %v3867_v1 }
 0x512   :  { %v3281_v36 = vmovacc.low.even.vacc0 }
 0x514   :  { %1060 = vmax.xlane.f32.xlu0 %v3281_v36  ;;  %v1677_v36 = vrot.slane %v1664_v32, %v3957_v14 }
 0x527   :  { %v1216_v44 = vpop.f32.mrb[14].mxu0  ;;  %v1293_v45 = vpop.f32.mrb[10].mxu1 }
 0x528   :  { %v3994_v46 = vadd.f32 %v1216_v44, %v1133_v40  ;;  %v3996_v47 = vadd.f32 %v1293_v45, %v1141_v41  ;;  %v1218_v48 = vpop.f32.mrb[15].mxu0  ;;  %v1295_v49 = vpop.f32.mrb[11].mxu1 }
 0x529   :  { %v3998_v50 = vadd.f32 %v1218_v48, %v1137_v42  ;;  %v4000_v51 = vadd.f32 %v1295_v49, %v1145_v43 }
 0x52a   :  { %3276 = vmaxabs.init.f32.vacc2 %v3994_v46, %v3996_v47 }
 0x52b   :  { %v1222_v52 = vpop.f32.mrb[16].mxu0  ;;  %v1299_v53 = vpop.f32.mrb[12].mxu1 }
 0x52c   :  { %v4002_v54 = vadd.f32 %v1222_v52, %v1133_v40  ;;  %v4004_v55 = vadd.f32 %v1299_v53, %v1141_v41  ;;  %v1224_v56 = vpop.f32.mrb[17].mxu0  ;;  %v1301_v57 = vpop.f32.mrb[13].mxu1  ;;  %3277 = vmaxabs.f32.vacc2 %v3998_v50, %v4000_v51  ;;  %v1681_v40 = vrot.slane %v1664_v32, %v3960_v24 }
 0x52d   :  { %v4008_v58 = vadd.f32 %v1224_v56, %v1137_v42  ;;  %v4010_v59 = vadd.f32 %v1301_v57, %v1145_v43 }
 0x52e   :  { %v3278_v60 = vmovacc.low.even.vacc2  ;;  %3273 = vmaxabs.init.f32.vacc0 %v4002_v54, %v4004_v55 }
 0x530   :  { %1323 = vmax.xlane.f32.xlu1 %v3278_v60  ;;  %3274 = vmaxabs.f32.vacc0 %v4008_v58, %v4010_v59 }
 0x532   :  { %v3275_v61 = vmovacc.low.even.vacc0 }
 0x534   :  { %1328 = vmax.xlane.f32.xlu1 %v3275_v61 }
 0x547   :  { %v1484_v8 = vpop.f32.mrb[18].mxu0  ;;  %v1561_v9 = vpop.f32.mrb[14].mxu1 }
 0x548   :  { %v4022_v10 = vadd.f32 %v1484_v8, %v1401_v4  ;;  %v4024_v11 = vadd.f32 %v1561_v9, %v1409_v5  ;;  %v1486_v12 = vpop.f32.mrb[19].mxu0  ;;  %v1563_v13 = vpop.f32.mrb[15].mxu1 }
 0x549   :  { %v4026_v15 = vadd.f32 %v1486_v12, %v1405_v6  ;;  %v4028_v16 = vadd.f32 %v1563_v13, %v1413_v7 }
 0x54a   :  { %3270 = vmaxabs.init.f32.vacc3 %v4022_v10, %v4024_v11 }
 0x54b   :  { %v1490_v17 = vpop.f32.mrb[20].mxu0  ;;  %v1567_v21 = vpop.f32.mrb[16].mxu1 }
 0x54c   :  { %v4030_v18 = vadd.f32 %v1490_v17, %v1401_v4  ;;  %v4032_v0 = vadd.f32 %v1567_v21, %v1409_v5  ;;  %v1492_v19 = vpop.f32.mrb[21].mxu0  ;;  %v1569_v22 = vpop.f32.mrb[17].mxu1  ;;  %3271 = vmaxabs.f32.vacc3 %v4026_v15, %v4028_v16 }
 0x54d   :  { %v4036_v23 = vadd.f32 %v1492_v19, %v1405_v6  ;;  %v4038_v26 = vadd.f32 %v1569_v22, %v1413_v7 }
 0x54e   :  { %v3272_v27 = vmovacc.low.even.vacc3  ;;  %3267 = vmaxabs.init.f32.vacc2 %v4030_v18, %v4032_v0 }
 0x550   :  { %1591 = vmax.xlane.f32.xlu0 %v3272_v27  ;;  %3268 = vmaxabs.f32.vacc2 %v4036_v23, %v4038_v26 }
 0x552   :  { %v3269_v29 = vmovacc.low.even.vacc2 }
 0x554   :  { %1596 = vmax.xlane.f32.xlu1 %v3269_v29 }
 0x567   :  { %v1752_v41 = vpop.f32.mrb[22].mxu0  ;;  %v1829_v42 = vpop.f32.mrb[18].mxu1 }
 0x568   :  { %v4050_v43 = vadd.f32 %v1752_v41, %v1669_v35  ;;  %v4052_v44 = vadd.f32 %v1829_v42, %v1677_v36  ;;  %v1754_v45 = vpop.f32.mrb[23].mxu0  ;;  %v1831_v48 = vpop.f32.mrb[19].mxu1 }
 0x569   :  { %v4054_v49 = vadd.f32 %v1754_v45, %v1673_v38  ;;  %v4056_v52 = vadd.f32 %v1831_v48, %v1681_v40 }
 0x56a   :  { %3264 = vmaxabs.init.f32.vacc1 %v4050_v43, %v4052_v44 }
 0x56b   :  { %v1758_v53 = vpop.f32.mrb[24].mxu0  ;;  %v1835_v1 = vpop.f32.mrb[20].mxu1 }
 0x56c   :  { %v4058_v56 = vadd.f32 %v1758_v53, %v1669_v35  ;;  %v4060_v14 = vadd.f32 %v1835_v1, %v1677_v36  ;;  %v1760_v3 = vpop.f32.mrb[25].mxu0  ;;  %v1837_v24 = vpop.f32.mrb[21].mxu1  ;;  %3265 = vmaxabs.f32.vacc1 %v4054_v49, %v4056_v52 }
 0x56d   :  { %v4064_v57 = vadd.f32 %v1760_v3, %v1673_v38  ;;  %v4066_v60 = vadd.f32 %v1837_v24, %v1681_v40 }
 0x56e   :  { %v3266_v61 = vmovacc.low.even.vacc1  ;;  %3261 = vmaxabs.init.f32.vacc0 %v4058_v56, %v4060_v14 }
 0x570   :  { %1859 = vmax.xlane.f32.xlu0 %v3266_v61  ;;  %3262 = vmaxabs.f32.vacc0 %v4064_v57, %v4066_v60 }
 0x572   :  { %v3263_v2 = vmovacc.low.even.vacc0 }
 0x574   :  { %1864 = vmax.xlane.f32.xlu1 %v3263_v2 }
 0x59d   :  { %v1056_v4 = vpop.xlane.xlu0 %1055 }
 0x59e   :  { %v1062_v7 = vmax.f32 %v1056_v4, 0.0 }
 0x5a1   :  { %v1061_v6 = vpop.xlane.xlu0 %1060 }
 0x5a2   :  { %v1063_v13 = vmax.f32 %v1061_v6, 0.0 }
 0x5bd   :  { %v1324_v5 = vpop.xlane.xlu1 %1323 }
 0x5be   :  { %v1330_v12 = vmax.f32 %v1062_v7, %v1324_v5 }
 0x5c1   :  { %v1329_v8 = vpop.xlane.xlu1 %1328 }
 0x5c2   :  { %v1331_v22 = vmax.f32 %v1063_v13, %v1329_v8 }
 0x5dd   :  { %v1592_v9 = vpop.xlane.xlu0 %1591 }
 0x5de   :  { %v1598_v17 = vmax.f32 %v1330_v12, %v1592_v9 }
 0x5e1   :  { %v1597_v21 = vpop.xlane.xlu1 %1596 }
 0x5e2   :  { %v1599_v29 = vmax.f32 %v1331_v22, %v1597_v21 }
 0x5fd   :  { %v1860_v19 = vpop.xlane.xlu0 %1859 }
 0x5fe   :  { %v1866_v27 = vmax.f32 %v1598_v17, %v1860_v19 }
 0x600   :  { %v1868_v32 = vadd.f32 1e-08, %v1866_v27 }
 0x601   :  { %v1865_v35 = vpop.xlane.xlu1 %1864 }
 0x602   :  { %3007 = vrcp.f32 %v1868_v32  ;;  %v1867_v36 = vmax.f32 %v1599_v29, %v1865_v35 }
 0x604   :  { %v1869_v38 = vadd.f32 1e-08, %v1867_v36 }
 0x606   :  { %3009 = vrcp.f32 %v1869_v38  ;;  %v2032_v38 = vld [vmem:[%s4613_s2 + $0x38] sm:$0xff] }
 0x60c   :  { %v4074_v40 = vpop.eup %3007 }
 0x60d   :  { %v2005_v41 = vmul.f32 %v4074_v40, %v3994_v46  ;;  %v2006_v42 = vmul.f32 %v4074_v40, %v3998_v50  ;;  %v2007_v45 = vmul.f32 %v4074_v40, %v3996_v47  ;;  %v2008_v48 = vmul.f32 %v4074_v40, %v4000_v51 }
 0x60e   :  { %v1882_v2 = vmul.f32 %v4074_v40, %v3966_v20  ;;  %v1883_v4 = vmul.f32 %v4074_v40, %v3970_v25  ;;  %v1884_v20 = vmul.f32 %v4074_v40, %v3968_v39  ;;  %v2127_v12 = vmul.f32 %v4074_v40, %v4022_v10 }
 0x60f   :  { %v2013_v53 = vmul.f32 1.442695, %v2005_v41  ;;  %v2015_v1 = vmul.f32 1.442695, %v2006_v42  ;;  %v2017_v3 = vmul.f32 1.442695, %v2007_v45  ;;  %v2128_v13 = vmul.f32 %v4074_v40, %v4026_v15 }
 0x610   :  { %v4084_v24 = vpop.eup %3009  ;;  %v2019_v61 = vmul.f32 1.442695, %v2008_v48  ;;  %v1892_v8 = vmul.f32 1.442695, %v1883_v4  ;;  %v2030_v15 = vld [vmem:[%s4613_s2 + $0x28] sm:$0xff] }
 0x611   :  { %3011 = vpow2.f32 %v2013_v53  ;;  %v2009_v46 = vmul.f32 %v4084_v24, %v4002_v54  ;;  %v2010_v50 = vmul.f32 %v4084_v24, %v4008_v58  ;;  %v2011_v47 = vmul.f32 %v4084_v24, %v4004_v55 }
 0x612   :  { %3013 = vpow2.f32 %v2015_v1  ;;  %v2012_v51 = vmul.f32 %v4084_v24, %v4010_v59  ;;  %v1885_v58 = vmul.f32 %v4074_v40, %v3972_v63  ;;  %v1890_v55 = vmul.f32 1.442695, %v1882_v2 }
 0x613   :  { %3015 = vpow2.f32 %v2017_v3  ;;  %v2021_v5 = vmul.f32 1.442695, %v2009_v46  ;;  %v2023_v6 = vmul.f32 1.442695, %v2010_v50  ;;  %v2025_v54 = vmul.f32 1.442695, %v2011_v47 }
 0x614   :  { %3017 = vpow2.f32 %v2019_v61  ;;  %v2027_v7 = vmul.f32 1.442695, %v2012_v51  ;;  %v1886_v59 = vmul.f32 %v4084_v24, %v3974_v31  ;;  %v1887_v25 = vmul.f32 %v4084_v24, %v3980_v33  ;;  %v2029_v31 = vld [vmem:[%s4613_s2 + $0x20] sm:$0xff]  ;;  %v2034_v61 = vld [vmem:[%s4613_s2 + $0xa8] sm:$0xff] }
 0x615   :  { %3019 = vpow2.f32 %v2021_v5  ;;  %v1888_v39 = vmul.f32 %v4084_v24, %v3976_v28  ;;  %v1889_v9 = vmul.f32 %v4084_v24, %v3982_v34  ;;  %v1894_v63 = vmul.f32 1.442695, %v1884_v20  ;;  %v2036_v5 = vld [vmem:[%s4613_s2 + $0xb8] sm:$0xff] }
 0x616   :  { %3021 = vpow2.f32 %v2023_v6  ;;  %v1896_v33 = vmul.f32 1.442695, %v1885_v58  ;;  %v2129_v28 = vmul.f32 %v4074_v40, %v4024_v11  ;;  %v2130_v34 = vmul.f32 %v4074_v40, %v4028_v16  ;;  %v2031_v11 = vld [vmem:[%s4613_s2 + $0x30] sm:$0xff] }
 0x617   :  { %3023 = vpow2.f32 %v2025_v54  ;;  %v1898_v17 = vmul.f32 1.442695, %v1886_v59  ;;  %v1900_v10 = vmul.f32 1.442695, %v1887_v25  ;;  %v1902_v21 = vmul.f32 1.442695, %v1888_v39 }
 0x618   :  { %3025 = vpow2.f32 %v2027_v7  ;;  %v1904_v19 = vmul.f32 1.442695, %v1889_v9  ;;  %v2135_v22 = vmul.f32 1.442695, %v2127_v12  ;;  %v2131_v27 = vmul.f32 %v4084_v24, %v4030_v18 }
 0x619   :  { %3027 = vpow2.f32 %v1890_v55  ;;  %v2137_v16 = vmul.f32 1.442695, %v2128_v13  ;;  %v2132_v32 = vmul.f32 %v4084_v24, %v4036_v23  ;;  %v2133_v35 = vmul.f32 %v4084_v24, %v4032_v0  ;;  %v2033_v23 = vld [vmem:[%s4613_s2 + $0xa0] sm:$0xff] }
 0x61a   :  { %3029 = vpow2.f32 %v1892_v8  ;;  %v2139_v18 = vmul.f32 1.442695, %v2129_v28  ;;  %v2141_v42 = vmul.f32 1.442695, %v2130_v34  ;;  %v2134_v0 = vmul.f32 %v4084_v24, %v4038_v26  ;;  %v2035_v26 = vld [vmem:[%s4613_s2 + $0xb0] sm:$0xff]  ;;  %v1906_v55 = vld [vmem:[%s4613_s2] sm:$0xff] }
 0x61b   :  { %v3012_v29 = vpop.eup %3011  ;;  %3031 = vpow2.f32 %v1894_v63  ;;  %v2249_v53 = vmul.f32 %v4074_v40, %v4050_v43  ;;  %v2143_v2 = vmul.f32 1.442695, %v2131_v27  ;;  %v2250_v46 = vmul.f32 %v4074_v40, %v4054_v49  ;;  %v1907_v8 = vld [vmem:[%s4613_s2 + $0x8] sm:$0xff] }
 0x61c   :  { %v3014_v36 = vpop.eup %3013  ;;  %v4136_v41 = vadd.f32 %v3012_v29, %v2029_v31  ;;  %3033 = vpow2.f32 %v1896_v33  ;;  %v2145_v43 = vmul.f32 1.442695, %v2132_v32  ;;  %v2147_v51 = vmul.f32 1.442695, %v2133_v35  ;;  %v1908_v31 = vld [vmem:[%s4613_s2 + $0x10] sm:$0xff] }
 0x61d   :  { %v3016_v45 = vpop.eup %3015  ;;  %v4138_v48 = vadd.f32 %v3014_v36, %v2030_v15  ;;  %3035 = vpow2.f32 %v1898_v17  ;;  %v2251_v49 = vmul.f32 %v4074_v40, %v4052_v44  ;;  %v2149_v59 = vmul.f32 1.442695, %v2134_v0  ;;  %v1909_v17 = vld [vmem:[%s4613_s2 + $0x18] sm:$0xff] }
 0x61e   :  { %v3018_v1 = vpop.eup %3017  ;;  %v4147_v3 = vadd.f32 %v3016_v45, %v2031_v11  ;;  %3037 = vpow2.f32 %v1900_v10  ;;  %v2252_v44 = vmul.f32 %v4074_v40, %v4056_v52  ;;  %v2257_v9 = vmul.f32 1.442695, %v2249_v53  ;;  %v1911_v11 = vld [vmem:[%s4613_s2 + $0x88] sm:$0xff] }
 0x61f   :  { %v3020_v50 = vpop.eup %3019  ;;  %v4154_v47 = vadd.f32 %v3018_v1, %v2032_v38  ;;  %3039 = vpow2.f32 %v1902_v21  ;;  %v2259_v33 = vmul.f32 1.442695, %v2250_v46  ;;  %v2261_v40 = vmul.f32 1.442695, %v2251_v49 }
 0x620   :  { %v3022_v4 = vpop.eup %3021  ;;  %v2045_v20 = vmax.f32 %v4136_v41, %v4147_v3  ;;  %v4164_v6 = vadd.f32 %v3020_v50, %v2033_v23  ;;  %3041 = vpow2.f32 %v1904_v19  ;;  %v1910_v19 = vld [vmem:[%s4613_s2 + $0x80] sm:$0xff]  ;;  %v2254_v32 = vmul.f32 %v4084_v24, %v4064_v57  ;;  %v1913_v57 = vld [vmem:[%s4613_s2 + $0x98] sm:$0xff] }
 0x621   :  { %v3024_v54 = vpop.eup %3023  ;;  %v2046_v7 = vmax.f32 %v4138_v48, %v4154_v47  ;;  %v4170_v58 = vadd.f32 %v3022_v4, %v2034_v61  ;;  %3043 = vpow2.f32 %v2135_v22  ;;  %v2253_v22 = vmul.f32 %v4084_v24, %v4058_v56  ;;  %v1912_v56 = vld [vmem:[%s4613_s2 + $0x90] sm:$0xff]  ;;  %v2151_v61 = vld [vmem:[%s4613_s2 + $0x40] sm:$0xff] }
 0x622   :  { %v3026_v25 = vpop.eup %3025  ;;  %v4175_v39 = vadd.f32 %v3024_v54, %v2035_v26  ;;  %3045 = vpow2.f32 %v2137_v16  ;;  %v2263_v16 = vmul.f32 1.442695, %v2252_v44  ;;  %v2256_v0 = vmul.f32 %v4084_v24, %v4066_v60  ;;  %v2152_v60 = vld [vmem:[%s4613_s2 + $0x48] sm:$0xff]  ;;  %v2153_v4 = vld [vmem:[%s4613_s2 + $0x50] sm:$0xff]  ;;  %v2154_v54 = vld [vmem:[%s4613_s2 + $0x58] sm:$0xff] }
 0x623   :  { %v3028_v12 = vpop.eup %3027  ;;  %v2047_v63 = vmax.f32 %v2045_v20, %v2046_v7  ;;  %v4182_v13 = vadd.f32 %v3026_v25, %v2036_v5  ;;  %3047 = vpow2.f32 %v2139_v18  ;;  %v2255_v18 = vmul.f32 %v4084_v24, %v4060_v14  ;;  %v2155_v44 = vld [vmem:[%s4613_s2 + $0xc0] sm:$0xff] }
 0x624   :  { %v3030_v28 = vpop.eup %3029  ;;  %v2050_v34 = vmax.f32 %v4164_v6, %v4175_v39  ;;  %v4192_v52 = vadd.f32 %v3028_v12, %v1906_v55  ;;  %3049 = vpow2.f32 %v2141_v42  ;;  %v2267_v24 = vmul.f32 1.442695, %v2254_v32 }
 0x625   :  { %v3032_v10 = vpop.eup %3031  ;;  %2048 = vmax.xlane.f32.xlu0 %v2047_v63  ;;  %v2051_v21 = vmax.f32 %v4170_v58, %v4182_v13  ;;  %v4196_v15 = vadd.f32 %v3030_v28, %v1907_v8  ;;  %3051 = vpow2.f32 %v2143_v2  ;;  %v2265_v2 = vmul.f32 1.442695, %v2253_v22  ;;  %v2156_v63 = vld [vmem:[%s4613_s2 + $0xc8] sm:$0xff] }
 0x626   :  { %v3034_v27 = vpop.eup %3033  ;;  %v4203_v29 = vadd.f32 %v3032_v10, %v1908_v31  ;;  %3053 = vpow2.f32 %v2145_v43  ;;  %v2269_v20 = vmul.f32 1.442695, %v2255_v18  ;;  %v2271_v55 = vmul.f32 1.442695, %v2256_v0  ;;  %v2158_v10 = vld [vmem:[%s4613_s2 + $0xd8] sm:$0xff] }
 0x627   :  { %v3036_v35 = vpop.eup %3035  ;;  %v2052_v36 = vmax.f32 %v2050_v34, %v2051_v21  ;;  %v4210_v38 = vadd.f32 %v3034_v27, %v1909_v17  ;;  %3055 = vpow2.f32 %v2147_v51  ;;  %v2157_v34 = vld [vmem:[%s4613_s2 + $0xd0] sm:$0xff]  ;;  %v2276_v0 = vld [vmem:[%s4613_s2 + $0x78] sm:$0xff] }
 0x628   :  { %v3038_v42 = vpop.eup %3037  ;;  %v1922_v45 = vmax.f32 %v4192_v52, %v4203_v29  ;;  %v4222_v23 = vadd.f32 %v3036_v35, %v1910_v19  ;;  %3057 = vpow2.f32 %v2149_v59  ;;  %v2274_v35 = vld [vmem:[%s4613_s2 + $0x68] sm:$0xff] }
 0x629   :  { %v3040_v53 = vpop.eup %3039  ;;  %2053 = vmax.xlane.f32.xlu1 %v2052_v36  ;;  %v1923_v1 = vmax.f32 %v4196_v15, %v4210_v38  ;;  %v4228_v14 = vadd.f32 %v3038_v42, %v1911_v11  ;;  %3059 = vpow2.f32 %v2257_v9  ;;  %v2273_v11 = vld [vmem:[%s4613_s2 + $0x60] sm:$0xff]  ;;  %v2275_v42 = vld [vmem:[%s4613_s2 + $0x70] sm:$0xff] }
 0x62a   :  { %v3042_v46 = vpop.eup %3041  ;;  %v4233_v50 = vadd.f32 %v3040_v53, %v1912_v56  ;;  %3061 = vpow2.f32 %v2259_v33 }
 0x62b   :  { %v3044_v26 = vpop.eup %3043  ;;  %v1924_v43 = vmax.f32 %v1922_v45, %v1923_v1  ;;  %v4238_v51 = vadd.f32 %v3042_v46, %v1913_v57  ;;  %3063 = vpow2.f32 %v2261_v40  ;;  %v2277_v46 = vld [vmem:[%s4613_s2 + $0xe0] sm:$0xff] }
 0x62c   :  { %v3046_v5 = vpop.eup %3045  ;;  %v1927_v49 = vmax.f32 %v4222_v23, %v4233_v50  ;;  %v4248_v7 = vadd.f32 %v3044_v26, %v2151_v61  ;;  %3065 = vpow2.f32 %v2263_v16  ;;  %v2278_v26 = vld [vmem:[%s4613_s2 + $0xe8] sm:$0xff] }
 0x62d   :  { %v3048_v59 = vpop.eup %3047  ;;  %1925 = vmax.xlane.f32.xlu0 %v1924_v43  ;;  %v1928_v25 = vmax.f32 %v4228_v14, %v4238_v51  ;;  %v4252_v8 = vadd.f32 %v3046_v5, %v2152_v60  ;;  %3067 = vpow2.f32 %v2265_v2  ;;  %v2279_v5 = vld [vmem:[%s4613_s2 + $0xf0] sm:$0xff] }
 0x62e   :  { %v3050_v9 = vpop.eup %3049  ;;  %v4257_v12 = vadd.f32 %v3048_v59, %v2153_v4  ;;  %3069 = vpow2.f32 %v2267_v24 }
 0x62f   :  { %v3052_v31 = vpop.eup %3051  ;;  %v1929_v33 = vmax.f32 %v1927_v49, %v1928_v25  ;;  %v4262_v28 = vadd.f32 %v3050_v9, %v2154_v54  ;;  %3071 = vpow2.f32 %v2269_v20 }
 0x630   :  { %v3054_v17 = vpop.eup %3053  ;;  %v2167_v40 = vmax.f32 %v4248_v7, %v4257_v12  ;;  %v4272_v21 = vadd.f32 %v3052_v31, %v2155_v44  ;;  %3073 = vpow2.f32 %v2271_v55  ;;  %v2280_v55 = vld [vmem:[%s4613_s2 + $0xf8] sm:$0xff]  ;;  %s3296_s2 = smov 127  }
 0x631   :  { %v3056_v19 = vpop.eup %3055  ;;  %1930 = vmax.xlane.f32.xlu1 %v1929_v33  ;;  %v2168_v22 = vmax.f32 %v4252_v8, %v4262_v28  ;;  %v4276_v27 = vadd.f32 %v3054_v17, %v2156_v63 }
 0x632   :  { %v3058_v16 = vpop.eup %3057  ;;  %v4281_v32 = vadd.f32 %v3056_v19, %v2157_v34  ;;  %v4335_v19 = vand.u32 127, %v179_v62 }
 0x633   :  { %v3060_v36 = vpop.eup %3059  ;;  %v2169_v56 = vmax.f32 %v2167_v40, %v2168_v22  ;;  %v4286_v18 = vadd.f32 %v3058_v16, %v2158_v10 }
 0x634   :  { %v3062_v45 = vpop.eup %3061  ;;  %v2172_v57 = vmax.f32 %v4272_v21, %v4281_v32  ;;  %v4296_v53 = vadd.f32 %v3060_v36, %v2273_v11  ;;  %v4338_v22 = vadd.s32 128, %v4335_v19  ;;  %v4341_v11 = vadd.s32 256, %v4335_v19 }
 0x635   :  { %v3064_v1 = vpop.eup %3063  ;;  %2170 = vmax.xlane.f32.xlu0 %v2169_v56  ;;  %v2173_v61 = vmax.f32 %v4276_v27, %v4286_v18  ;;  %v4300_v2 = vadd.f32 %v3062_v45, %v2274_v35  ;;  %v4344_v16 = vadd.s32 384, %v4335_v19 }
 0x636   :  { %v3066_v60 = vpop.eup %3065  ;;  %v4305_v24 = vadd.f32 %v3064_v1, %v2275_v42 }
 0x637   :  { %v3068_v43 = vpop.eup %3067  ;;  %v2174_v4 = vmax.f32 %v2172_v57, %v2173_v61  ;;  %v4310_v20 = vadd.f32 %v3066_v60, %v2276_v0 }
 0x638   :  { %v3070_v49 = vpop.eup %3069  ;;  %v2289_v54 = vmax.f32 %v4296_v53, %v4305_v24  ;;  %v4320_v59 = vadd.f32 %v3068_v43, %v2277_v46 }
 0x639   :  { %v3072_v25 = vpop.eup %3071  ;;  %2175 = vmax.xlane.f32.xlu1 %v2174_v4  ;;  %v2290_v44 = vmax.f32 %v4300_v2, %v4310_v20  ;;  %v4324_v9 = vadd.f32 %v3070_v49, %v2278_v26 }
 0x63a   :  { %v3074_v63 = vpop.eup %3073  ;;  %v4326_v31 = vadd.f32 %v3072_v25, %v2279_v5 }
 0x63b   :  { %v2291_v33 = vmax.f32 %v2289_v54, %v2290_v44  ;;  %v4328_v34 = vadd.f32 %v3074_v63, %v2280_v55 }
 0x63c   :  { %v2294_v17 = vmax.f32 %v4320_v59, %v4326_v31 }
 0x63d   :  { %2292 = vmax.xlane.f32.xlu0 %v2291_v33  ;;  %v2295_v40 = vmax.f32 %v4324_v9, %v4328_v34 }
 0x63f   :  { %v2296_v10 = vmax.f32 %v2294_v17, %v2295_v40 }
 0x641   :  { %2297 = vmax.xlane.f32.xlu1 %v2296_v10 }
 0x6b2   :  { %v4346_v35 = vpop.xlane.xlu0 %2048 }
 0x6b3   :  { %vm2055_vm13 = vcmp.ge.f32.partialorder %v4136_v41, %v4346_v35  ;;  %vm2056_vm14 = vcmp.ge.f32.partialorder %v4138_v48, %v4346_v35  ;;  %vm2057_vm15 = vcmp.ge.f32.partialorder %v4147_v3, %v4346_v35  ;;  %vm2058_vm0 = vcmp.ge.f32.partialorder %v4154_v47, %v4346_v35 }
 0x6b4   :  { %v2063_v62 = vsel %vm2055_vm13, %v4335_v19, 2048  ;;  %v2064_v36 = vsel %vm2056_vm14, %v4338_v22, 2048  ;;  %v2065_v56 = vsel %vm2057_vm15, %v4341_v11, 2048  ;;  %v2066_v42 = vsel %vm2058_vm0, %v4344_v16, 2048 }
 0x6b5   :  { %vm2071_vm1 = vcmp.lt.s32.totalorder %v2063_v62, %v2065_v56  ;;  %vm2073_vm2 = vcmp.lt.s32.totalorder %v2064_v36, %v2066_v42 }
 0x6b6   :  { %v4360_v41 = vpop.xlane.xlu1 %2053  ;;  %v2072_v45 = vsel %vm2071_vm1, %v2063_v62, %v2065_v56  ;;  %v2074_v48 = vsel %vm2073_vm2, %v2064_v36, %v2066_v42 }
 0x6b7   :  { %vm2075_vm3 = vcmp.lt.s32.totalorder %v2072_v45, %v2074_v48  ;;  %vm2059_vm4 = vcmp.ge.f32.partialorder %v4164_v6, %v4360_v41  ;;  %vm2060_vm5 = vcmp.ge.f32.partialorder %v4170_v58, %v4360_v41  ;;  %vm2061_vm6 = vcmp.ge.f32.partialorder %v4175_v39, %v4360_v41 }
 0x6b8   :  { %v4368_v3 = vsel %vm2075_vm3, %v2072_v45, %v2074_v48  ;;  %vm2062_vm7 = vcmp.ge.f32.partialorder %v4182_v13, %v4360_v41  ;;  %v2067_v47 = vsel %vm2059_vm4, %v4335_v19, 2048  ;;  %v2068_v57 = vsel %vm2060_vm5, %v4338_v22, 2048 }
 0x6b9   :  { %v2078_v0 = vshra.s32 %v4368_v3, 16  ;;  %v2069_v1 = vsel %vm2061_vm6, %v4341_v11, 2048  ;;  %v2070_v6 = vsel %vm2062_vm7, %v4344_v16, 2048 }
 0x6ba   :  { %v4377_v61 = vpop.xlane.xlu0 %1925  ;;  %vm2091_vm9 = vcmp.lt.s32.totalorder %v2067_v47, %v2069_v1  ;;  %vm2093_vm10 = vcmp.lt.s32.totalorder %v2068_v57, %v2070_v6 }
 0x6bb   :  { %v4379_v58 = vcvt.s32.f32 %v2078_v0  ;;  %v4383_v39 = vmax.f32 %v4377_v61, %v4346_v35  ;;  %v2092_v13 = vsel %vm2091_vm9, %v2067_v47, %v2069_v1  ;;  %v2094_v46 = vsel %vm2093_vm10, %v2068_v57, %v2070_v6 }
 0x6bc   :  { %vm2095_vm11 = vcmp.lt.s32.totalorder %v2092_v13, %v2094_v46  ;;  %vm1937_vm12 = vcmp.ge.f32.partialorder %v4192_v52, %v4377_v61  ;;  %vm1938_vm13 = vcmp.ge.f32.partialorder %v4196_v15, %v4377_v61  ;;  %vm1939_vm14 = vcmp.ge.f32.partialorder %v4203_v29, %v4377_v61 }
 0x6bd   :  { %2081 = vmin.xlane.f32.xlu0 %v4379_v58  ;;  %v4392_v60 = vsel %vm2095_vm11, %v2092_v13, %v2094_v46  ;;  %vm1940_vm15 = vcmp.ge.f32.partialorder %v4210_v38, %v4377_v61  ;;  %v1945_v26 = vsel %vm1937_vm12, %v4335_v19, 2048  ;;  %v1946_v43 = vsel %vm1938_vm13, %v4338_v22, 2048 }
 0x6be   :  { %v4398_v4 = vpop.xlane.xlu1 %1930  ;;  %v2098_v52 = vshra.s32 %v4392_v60, 16  ;;  %v1947_v15 = vsel %vm1939_vm14, %v4341_v11, 2048  ;;  %v1948_v5 = vsel %vm1940_vm15, %v4344_v16, 2048 }
 0x6bf   :  { %vm1953_vm0 = vcmp.lt.s32.totalorder %v1945_v26, %v1947_v15  ;;  %vm1955_vm1 = vcmp.lt.s32.totalorder %v1946_v43, %v1948_v5  ;;  %v4405_v29 = vmax.f32 %v4398_v4, %v4360_v41  ;;  %vm1941_vm2 = vcmp.ge.f32.partialorder %v4222_v23, %v4398_v4 }
 0x6c0   :  { %v4409_v38 = vcvt.s32.f32 %v2098_v52  ;;  %v1954_v49 = vsel %vm1953_vm0, %v1945_v26, %v1947_v15  ;;  %v1956_v54 = vsel %vm1955_vm1, %v1946_v43, %v1948_v5  ;;  %vm1942_vm3 = vcmp.ge.f32.partialorder %v4228_v14, %v4398_v4 }
 0x6c1   :  { %vm1957_vm4 = vcmp.lt.s32.totalorder %v1954_v49, %v1956_v54  ;;  %vm1943_vm5 = vcmp.ge.f32.partialorder %v4233_v50, %v4398_v4  ;;  %vm1944_vm6 = vcmp.ge.f32.partialorder %v4238_v51, %v4398_v4  ;;  %v1949_v55 = vsel %vm1941_vm2, %v4335_v19, 2048 }
 0x6c2   :  { %v4418_v25 = vpop.xlane.xlu0 %2170  ;;  %2101 = vmin.xlane.f32.xlu1 %v4409_v38  ;;  %v4421_v23 = vsel %vm1957_vm4, %v1954_v49, %v1956_v54  ;;  %v1950_v44 = vsel %vm1942_vm3, %v4338_v22, 2048  ;;  %v1951_v63 = vsel %vm1943_vm5, %v4341_v11, 2048  ;;  %v1952_v14 = vsel %vm1944_vm6, %v4344_v16, 2048 }
 0x6c3   :  { %v2239_v50 = vmax.f32 %v4383_v39, %v4418_v25  ;;  %v1960_v33 = vshra.s32 %v4421_v23, 16  ;;  %vm1973_vm7 = vcmp.lt.s32.totalorder %v1949_v55, %v1951_v63  ;;  %vm1975_vm9 = vcmp.lt.s32.totalorder %v1950_v44, %v1952_v14 }
 0x6c4   :  { %v1974_v51 = vsel %vm1973_vm7, %v1949_v55, %v1951_v63  ;;  %v1976_v17 = vsel %vm1975_vm9, %v1950_v44, %v1952_v14  ;;  %vm2177_vm10 = vcmp.ge.f32.partialorder %v4248_v7, %v4418_v25  ;;  %vm2178_vm11 = vcmp.ge.f32.partialorder %v4252_v8, %v4418_v25 }
 0x6c5   :  { %v4433_v40 = vcvt.s32.f32 %v1960_v33  ;;  %vm1977_vm12 = vcmp.lt.s32.totalorder %v1974_v51, %v1976_v17  ;;  %vm2179_vm13 = vcmp.ge.f32.partialorder %v4257_v12, %v4418_v25  ;;  %vm2180_vm14 = vcmp.ge.f32.partialorder %v4262_v28, %v4418_v25 }
 0x6c6   :  { %v4439_v10 = vpop.xlane.xlu1 %2175  ;;  %v4441_v62 = vsel %vm1977_vm12, %v1974_v51, %v1976_v17  ;;  %v2185_v36 = vsel %vm2177_vm10, %v4335_v19, 2048  ;;  %v2186_v7 = vsel %vm2178_vm11, %v4338_v22, 2048  ;;  %v2187_v56 = vsel %vm2179_vm13, %v4341_v11, 2048 }
 0x6c7   :  { %1963 = vmin.xlane.f32.xlu0 %v4433_v40  ;;  %v2240_v8 = vmax.f32 %v4405_v29, %v4439_v10  ;;  %v1980_v12 = vshra.s32 %v4441_v62, 16  ;;  %v2188_v42 = vsel %vm2180_vm14, %v4344_v16, 2048  ;;  %vm2193_vm15 = vcmp.lt.s32.totalorder %v2185_v36, %v2187_v56 }
 0x6c8   :  { %v2194_v28 = vsel %vm2193_vm15, %v2185_v36, %v2187_v56  ;;  %vm2195_vm0 = vcmp.lt.s32.totalorder %v2186_v7, %v2188_v42  ;;  %vm2181_vm1 = vcmp.ge.f32.partialorder %v4272_v21, %v4439_v10  ;;  %vm2182_vm2 = vcmp.ge.f32.partialorder %v4276_v27, %v4439_v10 }
 0x6c9   :  { %v4455_v45 = vcvt.s32.f32 %v1980_v12  ;;  %v2196_v48 = vsel %vm2195_vm0, %v2186_v7, %v2188_v42  ;;  %vm2183_vm3 = vcmp.ge.f32.partialorder %v4281_v32, %v4439_v10  ;;  %vm2184_vm4 = vcmp.ge.f32.partialorder %v4286_v18, %v4439_v10 }
 0x6ca   :  { %v4461_v47 = vpop.xlane.xlu0 %2292  ;;  %vm2197_vm5 = vcmp.lt.s32.totalorder %v2194_v28, %v2196_v48  ;;  %v2189_v57 = vsel %vm2181_vm1, %v4335_v19, 2048  ;;  %v2190_v0 = vsel %vm2182_vm2, %v4338_v22, 2048  ;;  %v2191_v21 = vsel %vm2183_vm3, %v4341_v11, 2048 }
 0x6cb   :  { %1983 = vmin.xlane.f32.xlu1 %v4455_v45  ;;  %v4467_v27 = vsel %vm2197_vm5, %v2194_v28, %v2196_v48  ;;  %v2192_v1 = vsel %vm2184_vm4, %v4344_v16, 2048  ;;  %vm2213_vm6 = vcmp.lt.s32.totalorder %v2189_v57, %v2191_v21  ;;  %vm2299_vm9 = vcmp.ge.f32.partialorder %v4296_v53, %v4461_v47 }
 0x6cc   :  { %v2200_v32 = vshra.s32 %v4467_v27, 16  ;;  %v2214_v6 = vsel %vm2213_vm6, %v2189_v57, %v2191_v21  ;;  %vm2215_vm7 = vcmp.lt.s32.totalorder %v2190_v0, %v2192_v1  ;;  %vm2300_vm10 = vcmp.ge.f32.partialorder %v4300_v2, %v4461_v47 }
 0x6cd   :  { %v2216_v18 = vsel %vm2215_vm7, %v2190_v0, %v2192_v1  ;;  %vm2301_vm11 = vcmp.ge.f32.partialorder %v4305_v24, %v4461_v47  ;;  %vm2302_vm12 = vcmp.ge.f32.partialorder %v4310_v20, %v4461_v47  ;;  %v2307_v26 = vsel %vm2299_vm9, %v4335_v19, 2048 }
 0x6ce   :  { %v4479_v13 = vpop.xlane.xlu1 %2297  ;;  %v4481_v46 = vcvt.s32.f32 %v2200_v32  ;;  %vm2217_vm13 = vcmp.lt.s32.totalorder %v2214_v6, %v2216_v18  ;;  %v2308_v43 = vsel %vm2300_vm10, %v4338_v22, 2048  ;;  %v2309_v52 = vsel %vm2301_vm11, %v4341_v11, 2048 }
 0x6cf   :  { %v4485_v53 = vsel %vm2217_vm13, %v2214_v6, %v2216_v18  ;;  %v2310_v2 = vsel %vm2302_vm12, %v4344_v16, 2048  ;;  %vm2315_vm14 = vcmp.lt.s32.totalorder %v2307_v26, %v2309_v52  ;;  %vm2303_vm0 = vcmp.ge.f32.partialorder %v4320_v59, %v4479_v13 }
 0x6d0   :  { %2203 = vmin.xlane.f32.xlu0 %v4481_v46  ;;  %v2220_v24 = vshra.s32 %v4485_v53, 16  ;;  %vm2317_vm15 = vcmp.lt.s32.totalorder %v2308_v43, %v2310_v2  ;;  %v2316_v20 = vsel %vm2315_vm14, %v2307_v26, %v2309_v52  ;;  %vm2304_vm1 = vcmp.ge.f32.partialorder %v4324_v9, %v4479_v13 }
 0x6d1   :  { %v2318_v15 = vsel %vm2317_vm15, %v2308_v43, %v2310_v2  ;;  %vm2305_vm2 = vcmp.ge.f32.partialorder %v4326_v31, %v4479_v13  ;;  %vm2306_vm4 = vcmp.ge.f32.partialorder %v4328_v34, %v4479_v13  ;;  %v2311_v49 = vsel %vm2303_vm0, %v4335_v19, 2048 }
 0x6d2   :  { %v2222_v5 = vcvt.s32.f32 %v2220_v24  ;;  %vm2319_vm3 = vcmp.lt.s32.totalorder %v2316_v20, %v2318_v15  ;;  %v2312_v55 = vsel %vm2304_vm1, %v4338_v22, 2048  ;;  %v2313_v59 = vsel %vm2305_vm2, %v4341_v11, 2048 }
 0x6d3   :  { %v2320_v54 = vsel %vm2319_vm3, %v2316_v20, %v2318_v15  ;;  %v2314_v44 = vsel %vm2306_vm4, %v4344_v16, 2048  ;;  %vm2335_vm5 = vcmp.lt.s32.totalorder %v2311_v49, %v2313_v59  ;;  %vm2113_vm9 = vcmp.gt.f32.partialorder %v4346_v35, %v4377_v61 }
 0x6d4   :  { %2223 = vmin.xlane.f32.xlu1 %v2222_v5  ;;  %v2322_v63 = vshra.s32 %v2320_v54, 16  ;;  %vm2337_vm6 = vcmp.lt.s32.totalorder %v2312_v55, %v2314_v44  ;;  %v2336_v9 = vsel %vm2335_vm5, %v2311_v49, %v2313_v59  ;;  %vm2114_vm10 = vcmp.gt.f32.partialorder %v4360_v41, %v4398_v4 }
 0x6d5   :  { %v2338_v31 = vsel %vm2337_vm6, %v2312_v55, %v2314_v44  ;;  %vm2235_vm11 = vcmp.gt.f32.partialorder %v4418_v25, %v4383_v39  ;;  %vm2236_vm12 = vcmp.gt.f32.partialorder %v4439_v10, %v4405_v29  ;;  %v2077_v22 = vand.u32 65535, %v4368_v3 }
 0x6d6   :  { %v2324_v14 = vcvt.s32.f32 %v2322_v63  ;;  %vm2339_vm7 = vcmp.lt.s32.totalorder %v2336_v9, %v2338_v31  ;;  %v2097_v51 = vand.u32 65535, %v4392_v60  ;;  %v1959_v56 = vand.u32 65535, %v4421_v23 }
 0x6d7   :  { %v2340_v33 = vsel %vm2339_vm7, %v2336_v9, %v2338_v31  ;;  %v2079_v16 = vcvt.s32.f32 %v2077_v22  ;;  %v1979_v28 = vand.u32 65535, %v4441_v62  ;;  %v2219_v62 = vand.u32 65535, %v4485_v53 }
 0x6d8   :  { %2325 = vmin.xlane.f32.xlu0 %v2324_v14  ;;  %v2342_v34 = vshra.s32 %v2340_v33, 16  ;;  %v2099_v7 = vcvt.s32.f32 %v2097_v51  ;;  %v1961_v42 = vcvt.s32.f32 %v1959_v56  ;;  %v2321_v32 = vand.u32 65535, %v2320_v54 }
 0x6d9   :  { %v1981_v48 = vcvt.s32.f32 %v1979_v28  ;;  %v2221_v1 = vcvt.s32.f32 %v2219_v62  ;;  %v2341_v18 = vand.u32 65535, %v2340_v33  ;;  %v577_v52 = vmul.f32 %v3909_v37, %v3909_v37 }
 0x6da   :  { %v2344_v19 = vcvt.s32.f32 %v2342_v34  ;;  %v2323_v6 = vcvt.s32.f32 %v2321_v32  ;;  %v576_v2 = vmul.f32 %v3906_v30, %v3906_v30 }
 0x6dc   :  { %2345 = vmin.xlane.f32.xlu1 %v2344_v19 }
 0x74a   :  { %v4512_v11 = vpop.xlane.xlu0 %2081 }
 0x74b   :  { %vm2083_vm13 = vcmp.eq.f32.partialorder %v4379_v58, %v4512_v11 }
 0x74c   :  { %v2084_v17 = vsel %vm2083_vm13, %v2079_v16, inf }
 0x74d   :  { %2085 = vmin.xlane.f32.xlu0 %v2084_v17 }
 0x74f   :  { %v4517_v36 = vpop.xlane.xlu1 %2101 }
 0x750   :  { %vm2103_vm14 = vcmp.eq.f32.partialorder %v4409_v38, %v4517_v36  ;;  %v2199_v38 = vand.u32 65535, %v4467_v27 }
 0x751   :  { %v2104_v12 = vsel %vm2103_vm14, %v2099_v7, inf }
 0x752   :  { %2105 = vmin.xlane.f32.xlu1 %v2104_v12  ;;  %v2201_v0 = vcvt.s32.f32 %v2199_v38 }
 0x754   :  { %v4522_v3 = vpop.xlane.xlu0 %1963 }
 0x755   :  { %vm1965_vm15 = vcmp.eq.f32.partialorder %v4433_v40, %v4522_v3 }
 0x756   :  { %v1966_v58 = vsel %vm1965_vm15, %v1961_v42, inf }
 0x757   :  { %1967 = vmin.xlane.f32.xlu0 %v1966_v58 }
 0x758   :  { %v4527_v60 = vpop.xlane.xlu1 %1983 }
 0x759   :  { %vm1985_vm0 = vcmp.eq.f32.partialorder %v4455_v45, %v4527_v60 }
 0x75a   :  { %v1986_v23 = vsel %vm1985_vm0, %v1981_v48, inf }
 0x75b   :  { %1987 = vmin.xlane.f32.xlu1 %v1986_v23 }
 0x75d   :  { %v4532_v57 = vpop.xlane.xlu0 %2203 }
 0x75e   :  { %vm2205_vm1 = vcmp.eq.f32.partialorder %v4481_v46, %v4532_v57  ;;  %v2343_v46 = vcvt.s32.f32 %v2341_v18 }
 0x75f   :  { %v2206_v40 = vsel %vm2205_vm1, %v2201_v0, inf }
 0x760   :  { %2207 = vmin.xlane.f32.xlu0 %v2206_v40 }
 0x761   :  { %v4537_v21 = vpop.xlane.xlu1 %2223 }
 0x762   :  { %vm2225_vm2 = vcmp.eq.f32.partialorder %v2222_v5, %v4537_v21 }
 0x763   :  { %v2226_v45 = vsel %vm2225_vm2, %v2221_v1, inf }
 0x764   :  { %2227 = vmin.xlane.f32.xlu1 %v2226_v45 }
 0x765   :  { %v4540_v27 = vpop.xlane.xlu0 %2325 }
 0x766   :  { %vm2327_vm3 = vcmp.eq.f32.partialorder %v2324_v14, %v4540_v27 }
 0x767   :  { %v2328_v26 = vsel %vm2327_vm3, %v2323_v6, inf }
 0x768   :  { %2329 = vmin.xlane.f32.xlu0 %v2328_v26 }
 0x769   :  { %v4543_v43 = vpop.xlane.xlu1 %2345 }
 0x76a   :  { %vm2347_vm4 = vcmp.eq.f32.partialorder %v2344_v19, %v4543_v43 }
 0x76b   :  { %v2348_v53 = vsel %vm2347_vm4, %v2343_v46, inf }
 0x76c   :  { %2349 = vmin.xlane.f32.xlu1 %v2348_v53 }
 0x77d   :  { %582 = vrot.lane.b32.xlu1 %v577_v52, %s3296_s2 }
 0x77e   :  { %580 = vrot.lane.b32.xlu0 %v576_v2, %s3296_s2 }
 0x77f   :  { %3240 = shalt.err (!%p3237_p4)
}
 0x780   :  { %s3241_s7 = scalar_lea.hbm %s4626_s15, 256 }
 0x781   :  { %p3242_p5 = scmp.ne.s32.totalorder %s4626_s15, %s3241_s7  ;;  %p3245_p6 = scmp.lt.u32.totalorder %s3241_s7, %s4626_s15 }
 0x783   :  { %p3247_p7 = pnand %p3245_p6, %p3242_p5 }
 0x785   :  { %3250 = shalt.err (!%p3247_p7)
}
 0x786   :  { %2374 = dma.vmem_to_hbm [thread:$0]  %s2369_s12, 256, %s4626_s15, [#allocation5], %s3287_s21, %s3287_s21, %s3288_s22   ;;  %v2088_v37 = vcvt.f32.s32 %v4512_v11  ;;  %v1970_v20 = vcvt.f32.s32 %v4522_v3  ;;  %v2108_v49 = vcvt.f32.s32 %v4517_v36  ;;  %v1990_v63 = vcvt.f32.s32 %v4527_v60 }
 0x787   :  { %vm1993_vm5 = vcmp.gt.f32.partialorder %v4377_v61, -inf  ;;  %v2210_v51 = vcvt.f32.s32 %v4532_v57  ;;  %vm1994_vm6 = vcmp.gt.f32.partialorder %v4398_v4, -inf  ;;  %v2230_v42 = vcvt.f32.s32 %v4537_v21 }
 0x788   :  { %v2089_v5 = vshll.u32 %v2088_v37, 16  ;;  %v1971_v44 = vshll.u32 %v1970_v20, 16  ;;  %v2109_v31 = vshll.u32 %v2108_v49, 16  ;;  %v1991_v22 = vshll.u32 %v1990_v63, 16 }
 0x789   :  { %v2211_v3 = vshll.u32 %v2210_v51, 16  ;;  %v2231_v38 = vshll.u32 %v2230_v42, 16  ;;  %v2332_v35 = vcvt.f32.s32 %v4540_v27  ;;  %v2352_v21 = vcvt.f32.s32 %v4543_v43 }
 0x78a   :  { %vm2357_vm7 = vcmp.gt.f32.partialorder %v4461_v47, %v2239_v50 }
 0x78b   :  { %v2333_v40 = vshll.u32 %v2332_v35, 16  ;;  %v2353_v6 = vshll.u32 %v2352_v21, 16 }
 0x7da   :  { %v2086_v30 = vpop.xlane.xlu0 %2085 }
 0x7db   :  { %v2087_v24 = vcvt.f32.s32 %v2086_v30 }
 0x7dd   :  { %v2090_v54 = vadd.s32 %v2089_v5, %v2087_v24 }
 0x7df   :  { %v2106_v15 = vpop.xlane.xlu1 %2105  ;;  %v2111_v33 = vadd.s32 512, %v2090_v54 }
 0x7e0   :  { %v2107_v55 = vcvt.f32.s32 %v2106_v15 }
 0x7e2   :  { %v2110_v34 = vadd.s32 %v2109_v31, %v2107_v55 }
 0x7e4   :  { %v1968_v59 = vpop.xlane.xlu0 %1967  ;;  %v2112_v7 = vadd.s32 512, %v2110_v34 }
 0x7e5   :  { %v1969_v9 = vcvt.f32.s32 %v1968_v59 }
 0x7e7   :  { %v1972_v14 = vadd.s32 %v1971_v44, %v1969_v9 }
 0x7e8   :  { %v1988_v19 = vpop.xlane.xlu1 %1987 }
 0x7e9   :  { %v1995_v11 = vsel %vm1993_vm5, %v1972_v14, 0  ;;  %v1989_v16 = vcvt.f32.s32 %v1988_v19 }
 0x7ea   :  { %v2115_v17 = vsel %vm2113_vm9, %v2111_v33, %v1995_v11  ;;  %vm2358_vm9 = vcmp.gt.f32.partialorder %v4479_v13, %v2240_v8 }
 0x7eb   :  { %v1992_v36 = vadd.s32 %v1991_v22, %v1989_v16 }
 0x7ed   :  { %v1996_v56 = vsel %vm1994_vm6, %v1992_v36, 0  ;;  %v2208_v12 = vpop.xlane.xlu0 %2207 }
 0x7ee   :  { %v2116_v28 = vsel %vm2114_vm10, %v2112_v7, %v1996_v56  ;;  %v2209_v58 = vcvt.f32.s32 %v2208_v12 }
 0x7f0   :  { %v2212_v60 = vadd.s32 %v2211_v3, %v2209_v58 }
 0x7f1   :  { %v2228_v48 = vpop.xlane.xlu1 %2227 }
 0x7f2   :  { %v2233_v61 = vadd.s32 1024, %v2212_v60  ;;  %v2229_v23 = vcvt.f32.s32 %v2228_v48 }
 0x7f4   :  { %v2237_v57 = vsel %vm2235_vm11, %v2233_v61, %v2115_v17  ;;  %v2232_v0 = vadd.s32 %v2231_v38, %v2229_v23 }
 0x7f5   :  { %v2330_v62 = vpop.xlane.xlu0 %2329 }
 0x7f6   :  { %v2234_v1 = vadd.s32 1024, %v2232_v0  ;;  %v2331_v41 = vcvt.f32.s32 %v2330_v62 }
 0x7f8   :  { %v2238_v4 = vsel %vm2236_vm12, %v2234_v1, %v2116_v28  ;;  %v2334_v32 = vadd.s32 %v2333_v40, %v2331_v41 }
 0x7f9   :  { %v2350_v45 = vpop.xlane.xlu1 %2349  ;;  %v581_v27 = vpop.permute.xlu0 %580 }
 0x7fa   :  { %v2355_v18 = vadd.s32 1536, %v2334_v32  ;;  %v2351_v26 = vcvt.f32.s32 %v2350_v45  ;;  %586 = vst.msk [vmem:[%s4627_s16] sm:$0xff] %vm573_vm8, %v581_v27 }
 0x7fc   :  { %v2359_v43 = vsel %vm2357_vm7, %v2355_v18, %v2237_v57  ;;  %v2354_v46 = vadd.s32 %v2353_v6, %v2351_v26 }
 0x7fd   :  { %2361 = vst.msk [vmem:[%s4628_s17] sm:$0xff] %vm573_vm8, %v2359_v43  ;;  %v583_v53 = vpop.permute.xlu1 %582 }
 0x7fe   :  { %v2356_v52 = vadd.s32 1536, %v2354_v46  ;;  %587 = vst.msk [vmem:[%s4627_s16 + $0x8] sm:$0xff] %vm573_vm8, %v583_v53 }
 0x800   :  { %v2360_v39 = vsel %vm2358_vm9, %v2356_v52, %v2238_v4 }
 0x801   :  { %2362 = vst.msk [vmem:[%s4628_s17 + $0x8] sm:$0xff] %vm573_vm8, %v2360_v39 }
 0x802   :  { %3259 = dma.done.wait [#allocation5], 256  }
 0x803   :  { %3260 = vsyncadd [#allocation5], 4294967040 }
 0x804   :  { %2386 = vsyncpa [#allocation4], 1 }
 0x805   :  { %2387 = vsyncpa [#allocation7], 1 }
 0x806   :  { %2388 = vsyncpa [#allocation10], 1 }
 0x807   :  { %2389 = vsyncpa [#allocation13], 1 }
 0x808   :  { %2390 = vsyncpa [#allocation5], 1 }

// kernel: reverse.3
= control target key start
LH: loop header
LB: loop body
LE: loop exit
PB: predicated region body
PF: predicated region fallthrough
CT: control target
= control target key end

     0   :  { %v2_v0 = vlaneseq  ;;  %s329_s0 = inlined_call_operand.vmem [shape: f32[2,1,49152], index: 0, kind: input, shape index: {}]   ;;  %s330_s1 = inlined_call_operand.vmem [shape: f32[2,1,49152], index: 1, kind: output, shape index: {}]  }
   0x2   :  { %v3_v1 = vsub.s32 127, %v2_v0 }
   0x4   :  { %4 = vset.pattern.permute.xlu0 %v3_v1 }
   0x5   :  { %s289_s6 = smov 0   ;;  %s291_s7 = smov 0  }
   0x6   :  { %s293_s8 = smov 0  }
   0x7 LB: > { %s219_s9 = sadd.s32 4294967295, %s277_s8   ;;  %s22_s10 = sadd.s32 1, %s273_s7  ;;  %s277_s8 = sphi %s293_s8, %s10_s8   ;;  %s273_s7 = sphi %s291_s7, %s332_s7   ;;  %s269_s6 = sphi %s289_s6, %s331_s6  }
   0x8   : > { %p23_p0 = scmp.ge.s32.totalorder %s22_s10, 384  ;;  %p221_p1 = scmp.ge.s32.totalorder %s277_s8, 384 }
   0x9   : > { %s45_s11 = sand.u32 (!%p221_p1), 1, %s277_s8   ;;  %s48_s12 = ssub.s32 (!%p221_p1), 383, %s273_s7 }
   0xa   : > { %s334_s10 = smov (%p23_p0, %s22_s10), 0  ;;  %43 = sbr.rel (%p221_p1) target bundleno = 17 (0x11), region = 16 }
   0xb   : > { %s222_s13 = sshll.u32 (!%p221_p1), %s45_s11, 1  ;;  %s223_s14 = sshll.u32 (!%p221_p1), %s48_s12, 1 }
   0xc   : > { %s54_s17 = scalar_lea.vmem (!%p221_p1), %s329_s0, %s223_s14  ;;  %s47_s18 = scalar_lea.vmem (!%p221_p1), [#allocation1], %s222_s13 }
   0xd   : > { %v70_v2 = vld [vmem:[%s54_s17] sm:$0x3] (!%p221_p1) }
   0xe   : > { %71 = vst [vmem:[%s47_s18] sm:$0x3] (!%p221_p1), %v70_v2 }
  0x11 PF: > { %p224_p2 = scmp.ge.s32.totalorder %s277_s8, 1  ;;  %p87_p3 = scmp.lt.s32.totalorder %s277_s8, 385 }
  0x13   : > { %p88_p4 = pnand %p224_p2, %p87_p3 }
  0x14   : > { %s98_s19 = sand.u32 (!%p88_p4), 1, %s219_s9   ;;  %s228_s23 = sshll.u32 (!%p88_p4), %s269_s6, 1 }
  0x15   : > { %91 = sbr.rel (%p88_p4) target bundleno = 177 (0xb1), region = 50  ;;  %s225_s20 = sshll.u32 (!%p88_p4), %s98_s19, 1 }
  0x16   : > { %s100_s21 = scalar_lea.vmem (!%p88_p4), [#allocation1], %s225_s20  ;;  %s104_s22 = scalar_lea.vmem (!%p88_p4), [#allocation3], %s225_s20 }
  0x17   : > { %v107_v3 = vld [vmem:[%s100_s21] sm:$0x3] (!%p88_p4)  ;;  %s129_s26 = scalar_lea.vmem (!%p88_p4), %s330_s1, %s228_s23 }
  0x18   : > { %108 = vst [vmem:[#allocation0] sm:$0x3] (!%p88_p4), %v107_v3 }
  0x1f   : > { %v110_v4 = vld [vmem:[#allocation0] sm:$0xff] }
  0x20   : > { %111 = vperm.xlu0 %4, %v110_v4  }
  0x9f   : > { %v112_v5 = vpop.permute.xlu0 %111 }
  0xa0   : > { %113 = vst [vmem:[#allocation2] sm:$0xff] %v112_v5 }
  0xa7   : > { %v117_v6 = vld [vmem:[#allocation2] sm:$0x3] }
  0xa8   : > { %119 = vst [vmem:[%s104_s22] sm:$0x3] %v117_v6 }
  0xaf   : > { %v145_v7 = vld [vmem:[%s104_s22] sm:$0x3] }
  0xb0   : > { %146 = vst [vmem:[%s129_s26] sm:$0x3] %v145_v7 }
  0xb1 PF: > { %s10_s8 = sadd.s32 1, %s277_s8   ;;  %s331_s6 = smov %s273_s7 }
  0xb2   : > { %p7_p5 = scmp.ge.s32.totalorder %s10_s8, 386   ;;  %s332_s7 = smov %s334_s10 }
  0xb4   :  { %9 = sbr.rel (!%p7_p5) target bundleno = 7 (0x7), region = 110 }

</bundles_post_ra>
